<compile_context>
chip_gen: v7x
topology: tpu7x:2x2x1
jax: 0.10.0
libtpu: 0.0.40
codegen_flags: <defaults>
</compile_context>

<pallas_src>
import functools

import jax
import jax.numpy as jnp
import numpy as np
from jax.experimental import pallas as pl
from jax.experimental.pallas import tpu as pltpu


# ------------------------------ fused kernel -------------------------------

def make_fused_kernel(Bt, L, vocab, emb_dim, filter_sizes, K, adaptive_out, O):
    """Whole forward pass (embedding + conv stack + pools + fc head) for Bt
    samples per grid step.  All shapes are static Python ints."""
    n = len(filter_sizes)
    pad = (K - 1) // 2

    # Static per-layer schedule: (L_in, C_in, C_out, maxpool3?)
    sched = []
    L_cur, c_in = L, emb_dim
    for li, c_out in enumerate(filter_sizes):
        pool = li < n - 1
        sched.append((L_cur, c_in, c_out, pool))
        if pool:
            L_cur //= 3
        c_in = c_out
    L_last, C_last = L_cur, filter_sizes[-1]

    # AdaptiveMaxPool1d(adaptive_out) bin edges (static).
    starts = [(i * L_last) // adaptive_out for i in range(adaptive_out)]
    ends = [-(-((i + 1) * L_last) // adaptive_out) for i in range(adaptive_out)]

    def shifted(x, d, L_in, C_in):
        """s[l] = x[l + d] for 0 <= l + d < L_in, else 0 (value-level halo,
        no VMEM scratch; only the |d| pad rows are zero-filled)."""
        if d == 0:
            return x
        z = jnp.zeros((abs(d), C_in), jnp.float32)
        if d > 0:
            return jnp.concatenate([x[d:, :], z], axis=0)
        return jnp.concatenate([z, x[:L_in + d, :]], axis=0)

    def kernel(*refs):
        xi_ref, emb_ref = refs[0], refs[1]
        conv_refs = refs[2:2 + 2 * n]
        (w1_ref, b1_ref, wa_ref, ba_ref,
         w2_ref, b2_ref) = refs[2 + 2 * n:8 + 2 * n]
        out_ref = refs[8 + 2 * n]

        emb = emb_ref[...]                                   # (vocab, E)
        col_ids = jax.lax.broadcasted_iota(jnp.int32, (L, vocab), 1)

        pooled_list = []
        for s in range(Bt):
            # ---- fused embedding: one-hot (L,vocab) @ (vocab,E) on the MXU --
            ids = xi_ref[s]                                  # (L, 1) int32
            onehot = jnp.where(ids == col_ids, 1.0, 0.0)     # (L, vocab) f32
            x = jnp.dot(onehot, emb, preferred_element_type=jnp.float32)

            # ---- conv stack: Conv1d(k=K, pad) + bias + ReLU + eval BN ------
            for li, (L_in, C_in, C_out, pool) in enumerate(sched):
                w_ref, bst_ref = conv_refs[2 * li], conv_refs[2 * li + 1]
                acc = jnp.zeros((L_in, C_out), jnp.float32)
                for k in range(K):                           # K accumulating dots
                    acc = acc + jnp.dot(shifted(x, k - pad, L_in, C_in),
                                        w_ref[k],
                                        preferred_element_type=jnp.float32)
                bst = bst_ref[...]                           # rows: bias, scale, shift
                y = jnp.maximum(acc + bst[0:1, :], 0.0)      # conv bias + ReLU
                y = y * bst[1:2, :] + bst[2:3, :]            # folded eval BatchNorm
                if pool:                                     # MaxPool1d(3), stride 3
                    Lp = L_in // 3
                    # TODO(synk): stride-3 row views would avoid this reshape if
                    # Mosaic materializes it; kept because it is known-good.
                    y = jnp.max(y[:3 * Lp, :].reshape(Lp, 3, C_out), axis=1)
                x = y                                        # Dropout == identity (eval)

            # ---- AdaptiveMaxPool1d(adaptive_out) over the length axis ------
            if L_last == adaptive_out:
                pooled = x
            elif (starts == list(range(adaptive_out))
                  and ends == [i + 2 for i in range(adaptive_out)]):
                # Every bin covers rows {i, i+1} (the 21 -> 20 case): one VPU max.
                pooled = jnp.maximum(x[0:adaptive_out, :],
                                     x[1:adaptive_out + 1, :])
            else:
                # Generic fallback (unused for the shipped config).
                pooled = jnp.concatenate(
                    [jnp.max(x[a:b, :], axis=0, keepdims=True)
                     for a, b in zip(starts, ends)], axis=0)
            pooled_list.append(pooled)                       # (adaptive_out, C_last)

        # ---- fc1 with the flatten folded in: h += pooled[:, j, :] @ W1[j] ---
        h = None
        for j in range(adaptive_out):
            if Bt > 1:
                rows = jnp.concatenate([p[j:j + 1, :] for p in pooled_list],
                                       axis=0)               # (Bt, C_last)
            else:
                rows = pooled_list[0][j:j + 1, :]
            part = jnp.dot(rows, w1_ref[j], preferred_element_type=jnp.float32)
            h = part if h is None else h + part
        h = jnp.maximum(h + b1_ref[...], 0.0)                # (Bt, 256)

        # ---- heads: att, fc2 -> log_softmax (head BNs folded into weights) --
        a = jnp.dot(h, wa_ref[...], preferred_element_type=jnp.float32) + ba_ref[...]
        z = jnp.dot(h, w2_ref[...], preferred_element_type=jnp.float32) + b2_ref[...]
        z = z - jnp.max(z, axis=-1, keepdims=True)
        logp = z - jnp.log(jnp.sum(jnp.exp(z), axis=-1, keepdims=True))

        # Single lane-contiguous output block (Bt, 2*O); split in the wrapper.
        out_ref[0, :, 0:O] = a
        out_ref[0, :, O:2 * O] = logp

    return kernel


# ------------------------------- wrapper ------------------------------------

def cnn_forward(x_idx, KP):
    """x_idx: (B, L, 1) int32 token ids.  Returns (att, log_softmax), each (B, O)."""
    B, L, _ = x_idx.shape
    emb = KP["emb"]
    vocab, E = emb.shape
    K = KP["K"]
    filter_sizes = KP["filter_sizes"]
    adaptive_out = KP["adaptive_out"]
    O = KP["w2"].shape[1]

    # Batch folding: two grid steps when possible (keeps both v7x TensorCores
    # busy); Bt samples per step amortizes grid overhead on 1-TC v5e/v6e and
    # gives the head matmuls M = Bt.
    n_steps = 2 if (B % 2 == 0 and B >= 2) else 1
    Bt = B // n_steps

    def full(shape):
        rank = len(shape)
        return pl.BlockSpec(shape, lambda i, _r=rank: (0,) * _r)

    inputs = [x_idx, emb]
    in_specs = [pl.BlockSpec((Bt, L, 1), lambda i: (i, 0, 0)), full(emb.shape)]
    for w, bst in KP["convs"]:
        inputs += [w, bst]
        in_specs += [full(w.shape), full(bst.shape)]
    for name in ("w1", "b1", "wa", "ba", "w2", "b2"):
        inputs.append(KP[name])
        in_specs.append(full(KP[name].shape))

    out = pl.pallas_call(
        make_fused_kernel(Bt, L, vocab, E, filter_sizes, K, adaptive_out, O),
        out_shape=jax.ShapeDtypeStruct((n_steps, Bt, 2 * O), jnp.float32),
        grid=(n_steps,),
        in_specs=in_specs,
        out_specs=pl.BlockSpec((1, Bt, 2 * O), lambda i: (i, 0, 0)),
        compiler_params=pltpu.CompilerParams(
            dimension_semantics=("parallel",)),
    )(*inputs)
    out = out.reshape(B, 2 * O)
    return out[:, :O], out[:, O:]


# -------------------------- parameters & folding ----------------------------

def init_params(key, vocab, emb_dim, filter_sizes, output_size, eps=1e-5):
    """'PyTorch-shaped' params (BN already folded to eval-mode scale/shift)."""
    ks = iter(jax.random.split(key, 64))

    def nrm(shape, scale):
        return (scale * jax.random.normal(next(ks), shape)).astype(jnp.float32)

    def bn_fold(c):
        gamma = 1.0 + nrm((c,), 0.1)
        beta = nrm((c,), 0.05)
        mean = jnp.zeros((c,), jnp.float32)                 # fresh running stats
        var = jnp.ones((c,), jnp.float32)
        scale = gamma / jnp.sqrt(var + eps)
        shift = beta - mean * scale
        return scale.reshape(1, c), shift.reshape(1, c)

    P = {"emb": nrm((vocab, emb_dim), 0.5)}
    convs = []
    c_in = emb_dim
    for c_out in filter_sizes:
        w = nrm((5, c_in, c_out), 0.1)                      # tap-major Conv1d weight
        b = nrm((1, c_out), 0.05)
        s, t = bn_fold(c_out)
        convs.append((w, b, s, t))
        c_in = c_out
    P["convs"] = convs
    f_in = 20 * filter_sizes[-1]
    P["w1"], P["b1"] = nrm((f_in, 256), 0.05), nrm((1, 256), 0.05)
    P["s1"], P["t1"] = bn_fold(256)
    P["w2"], P["b2"] = nrm((256, output_size), 0.05), nrm((1, output_size), 0.05)
    P["s2"], P["t2"] = bn_fold(output_size)
    P["wa"], P["ba"] = nrm((256, output_size), 0.05), nrm((1, output_size), 0.05)
    return P


def prepare_kernel_params(P, filter_sizes, adaptive_out=20):
    """One-time (init-time) weight folding for the fused kernel:
       * conv weights stay (K, C_in, C_out); bias/BN packed as (3, C_out)
       * fc1 weight stored as (adaptive_out, C_last, 256) with rows reordered
         so that block j holds the weights of pooled position j (the torch
         flatten is channel-major over (C_last, 20)); the kernel folds the
         flatten into fc1 by accumulating per-position dots.
       * head BatchNorms (bn1, bn2) folded into the fc2 / att weights+biases."""
    KP = {"emb": P["emb"], "K": 5, "filter_sizes": tuple(filter_sizes),
          "adaptive_out": adaptive_out}
    convs = []
    for (w, b, s, t) in P["convs"]:
        convs.append((w, jnp.concatenate([b, s, t], axis=0)))   # (3, C_out)
    KP["convs"] = convs
    C_last = filter_sizes[-1]
    H = P["w1"].shape[1]
    KP["w1"] = jnp.transpose(P["w1"].reshape(C_last, adaptive_out, H), (1, 0, 2))
    KP["b1"] = P["b1"]
    s1, t1, s2, t2 = P["s1"], P["t1"], P["s2"], P["t2"]
    KP["wa"] = P["wa"] * s1.T
    KP["ba"] = t1 @ P["wa"] + P["ba"]
    KP["w2"] = (P["w2"] * s1.T) * s2
    KP["b2"] = (t1 @ P["w2"] + P["b2"]) * s2 + t2
    return KP


# ------------------------------ pure-JAX reference --------------------------

def reference_forward(x_idx, P):
    B = x_idx.shape[0]
    h = P["emb"][x_idx[..., 0]]
    n = len(P["convs"])
    for i, (w, b, s, t) in enumerate(P["convs"]):
        K, _, C_out = w.shape
        L = h.shape[1]
        xp = jnp.pad(h, ((0, 0), (2, 2), (0, 0)))
        acc = jnp.zeros((B, L, C_out), jnp.float32)
        for k in range(K):
            acc = acc + jnp.einsum("blc,cd->bld", xp[:, k:k + L, :], w[k])
        acc = jnp.maximum(acc + b[None], 0.0) * s[None] + t[None]
        if i < n - 1:
            Lp = L // 3
            acc = acc[:, :3 * Lp, :].reshape(B, Lp, 3, C_out).max(axis=2)
        h = acc
    L_in = h.shape[1]
    rows = []
    for j in range(20):
        s_, e_ = (j * L_in) // 20, -(-((j + 1) * L_in) // 20)
        rows.append(h[:, s_:e_, :].max(axis=1))
    pooled = jnp.stack(rows, axis=1)
    feat = jnp.transpose(pooled, (0, 2, 1)).reshape(B, -1)
    hh = jnp.maximum(feat @ P["w1"] + P["b1"], 0.0) * P["s1"] + P["t1"]
    y = (hh @ P["w2"] + P["b2"]) * P["s2"] + P["t2"]
    a = hh @ P["wa"] + P["ba"]
    return a, jax.nn.log_softmax(y, axis=-1)


# ---------------------------------- main -------------------------------------

if __name__ == "__main__":
    # B=4 exercises the batched path: grid=(2,), Bt=2 samples per step.
    B, L, vocab, emb_dim, output_size = 4, 64, 50, 8, 4
    filter_sizes = [8, 16]

    k_par, k_in = jax.random.split(jax.random.PRNGKey(0))
    P = init_params(k_par, vocab, emb_dim, filter_sizes, output_size)
    KP = prepare_kernel_params(P, filter_sizes, adaptive_out=20)
    x_idx = jax.random.randint(k_in, (B, L, 1), 0, vocab, dtype=jnp.int32)

    fwd = jax.jit(functools.partial(cnn_forward, KP=KP))
    a, logp = fwd(x_idx)
    jax.block_until_ready((a, logp))

    a_ref, logp_ref = reference_forward(x_idx, P)
    # TPU f32 matmuls may use bf16 passes at default precision on both the XLA
    # and Mosaic sides, so 1e-5 is not a robust bound; 1e-2 still catches
    # layout / permutation / folding bugs.
    np.testing.assert_allclose(np.asarray(a), np.asarray(a_ref),
                               rtol=1e-2, atol=1e-2)
    np.testing.assert_allclose(np.asarray(logp), np.asarray(logp_ref),
                               rtol=1e-2, atol=1e-2)
    print("KERNEL_OK")
</pallas_src>

<mosaic_0001>
module attributes {stable_mosaic.version = 11 : i64} {
  func.func @kernel(%arg0: i32, %arg1: memref<2x64x1xi32, #tpu.memory_space<vmem>>, %arg2: memref<50x8xf32, #tpu.memory_space<vmem>>, %arg3: memref<5x8x8xf32, #tpu.memory_space<vmem>>, %arg4: memref<3x8xf32, #tpu.memory_space<vmem>>, %arg5: memref<5x8x16xf32, #tpu.memory_space<vmem>>, %arg6: memref<3x16xf32, #tpu.memory_space<vmem>>, %arg7: memref<20x16x256xf32, #tpu.memory_space<vmem>>, %arg8: memref<1x256xf32, #tpu.memory_space<vmem>>, %arg9: memref<256x4xf32, #tpu.memory_space<vmem>>, %arg10: memref<1x4xf32, #tpu.memory_space<vmem>>, %arg11: memref<256x4xf32, #tpu.memory_space<vmem>>, %arg12: memref<1x4xf32, #tpu.memory_space<vmem>>, %arg13: memref<1x2x8xf32, #tpu.memory_space<vmem>>) attributes {dimension_semantics = [#tpu.dimension_semantics<parallel>], iteration_bounds = array<i64: 2>, scalar_prefetch = 0 : i64, scratch_operands = 0 : i64, tpu.core_type = #tpu.core_type<tc>, window_params = [{transform_indices = @transform_0, window_bounds = array<i64: 2, 64, 1>}, {pipeline_mode = #tpu.pipeline_mode<synchronous>, transform_indices = @transform_1, window_bounds = array<i64: 50, 8>}, {pipeline_mode = #tpu.pipeline_mode<synchronous>, transform_indices = @transform_2, window_bounds = array<i64: 5, 8, 8>}, {pipeline_mode = #tpu.pipeline_mode<synchronous>, transform_indices = @transform_3, window_bounds = array<i64: 3, 8>}, {pipeline_mode = #tpu.pipeline_mode<synchronous>, transform_indices = @transform_4, window_bounds = array<i64: 5, 8, 16>}, {pipeline_mode = #tpu.pipeline_mode<synchronous>, transform_indices = @transform_5, window_bounds = array<i64: 3, 16>}, {pipeline_mode = #tpu.pipeline_mode<synchronous>, transform_indices = @transform_6, window_bounds = array<i64: 20, 16, 256>}, {pipeline_mode = #tpu.pipeline_mode<synchronous>, transform_indices = @transform_7, window_bounds = array<i64: 1, 256>}, {pipeline_mode = #tpu.pipeline_mode<synchronous>, transform_indices = @transform_8, window_bounds = array<i64: 256, 4>}, {pipeline_mode = #tpu.pipeline_mode<synchronous>, transform_indices = @transform_9, window_bounds = array<i64: 1, 4>}, {pipeline_mode = #tpu.pipeline_mode<synchronous>, transform_indices = @transform_10, window_bounds = array<i64: 256, 4>}, {pipeline_mode = #tpu.pipeline_mode<synchronous>, transform_indices = @transform_11, window_bounds = array<i64: 1, 4>}, {transform_indices = @transform_12, window_bounds = array<i64: 1, 2, 8>}]} {
    %c0 = arith.constant 0 : index
    %c0_0 = arith.constant 0 : index
    %0 = vector.load %arg2[%c0, %c0_0] : memref<50x8xf32, #tpu.memory_space<vmem>>, vector<50x8xf32>
    %1 = tpu.iota {dimensions = array<i32: 1>} : vector<64x50xi32>
    %c0_1 = arith.constant 0 : index
    %c0_2 = arith.constant 0 : index
    %c0_3 = arith.constant 0 : index
    %2 = vector.load %arg1[%c0_1, %c0_2, %c0_3] : memref<2x64x1xi32, #tpu.memory_space<vmem>>, vector<1x64x1xi32>
    %3 = vector.shape_cast %2 : vector<1x64x1xi32> to vector<64x1xi32>
    %4 = vector.broadcast %3 : vector<64x1xi32> to vector<64x50xi32>
    %5 = arith.cmpi eq, %4, %1 : vector<64x50xi32>
    %cst = arith.constant 1.000000e+00 : f32
    %cst_4 = arith.constant 0.000000e+00 : f32
    %6 = vector.broadcast %cst : f32 to vector<64x50xf32>
    %7 = vector.broadcast %cst_4 : f32 to vector<64x50xf32>
    %8 = arith.select %5, %6, %7 : vector<64x50xi1>, vector<64x50xf32>
    %cst_5 = arith.constant dense<0.000000e+00> : vector<64x8xf32>
    %9 = tpu.matmul %8, %0, %cst_5 {dimension_numbers = #tpu.dot_dimension_numbers<[1], [0], [0], [1], [0, 0, 1, 1], [], []>} : vector<64x50xf32>, vector<50x8xf32>, vector<64x8xf32> -> vector<64x8xf32>
    %cst_6 = arith.constant 0.000000e+00 : f32
    %10 = vector.broadcast %cst_6 : f32 to vector<64x8xf32>
    %cst_7 = arith.constant 0.000000e+00 : f32
    %11 = vector.broadcast %cst_7 : f32 to vector<2x8xf32>
    %12 = vector.extract_strided_slice %9 {offsets = [0, 0], sizes = [62, 8], strides = [1, 1]} : vector<64x8xf32> to vector<62x8xf32>
    %13 = tpu.concatenate %11, %12 in 0 : vector<2x8xf32>, vector<62x8xf32> -> vector<64x8xf32>
    %c0_8 = arith.constant 0 : index
    %c0_9 = arith.constant 0 : index
    %c0_10 = arith.constant 0 : index
    %14 = vector.load %arg3[%c0_8, %c0_9, %c0_10] : memref<5x8x8xf32, #tpu.memory_space<vmem>>, vector<1x8x8xf32>
    %15 = vector.shape_cast %14 : vector<1x8x8xf32> to vector<8x8xf32>
    %cst_11 = arith.constant dense<0.000000e+00> : vector<64x8xf32>
    %16 = tpu.matmul %13, %15, %cst_11 {dimension_numbers = #tpu.dot_dimension_numbers<[1], [0], [0], [1], [0, 0, 1, 1], [], []>} : vector<64x8xf32>, vector<8x8xf32>, vector<64x8xf32> -> vector<64x8xf32>
    %17 = arith.addf %10, %16 : vector<64x8xf32>
    %cst_12 = arith.constant 0.000000e+00 : f32
    %18 = vector.broadcast %cst_12 : f32 to vector<1x8xf32>
    %19 = vector.extract_strided_slice %9 {offsets = [0, 0], sizes = [63, 8], strides = [1, 1]} : vector<64x8xf32> to vector<63x8xf32>
    %20 = tpu.concatenate %18, %19 in 0 : vector<1x8xf32>, vector<63x8xf32> -> vector<64x8xf32>
    %c1 = arith.constant 1 : index
    %c0_13 = arith.constant 0 : index
    %c0_14 = arith.constant 0 : index
    %21 = vector.load %arg3[%c1, %c0_13, %c0_14] : memref<5x8x8xf32, #tpu.memory_space<vmem>>, vector<1x8x8xf32>
    %22 = vector.shape_cast %21 : vector<1x8x8xf32> to vector<8x8xf32>
    %cst_15 = arith.constant dense<0.000000e+00> : vector<64x8xf32>
    %23 = tpu.matmul %20, %22, %cst_15 {dimension_numbers = #tpu.dot_dimension_numbers<[1], [0], [0], [1], [0, 0, 1, 1], [], []>} : vector<64x8xf32>, vector<8x8xf32>, vector<64x8xf32> -> vector<64x8xf32>
    %24 = arith.addf %17, %23 : vector<64x8xf32>
    %c2 = arith.constant 2 : index
    %c0_16 = arith.constant 0 : index
    %c0_17 = arith.constant 0 : index
    %25 = vector.load %arg3[%c2, %c0_16, %c0_17] : memref<5x8x8xf32, #tpu.memory_space<vmem>>, vector<1x8x8xf32>
    %26 = vector.shape_cast %25 : vector<1x8x8xf32> to vector<8x8xf32>
    %cst_18 = arith.constant dense<0.000000e+00> : vector<64x8xf32>
    %27 = tpu.matmul %9, %26, %cst_18 {dimension_numbers = #tpu.dot_dimension_numbers<[1], [0], [0], [1], [0, 0, 1, 1], [], []>} : vector<64x8xf32>, vector<8x8xf32>, vector<64x8xf32> -> vector<64x8xf32>
    %28 = arith.addf %24, %27 : vector<64x8xf32>
    %cst_19 = arith.constant 0.000000e+00 : f32
    %29 = vector.broadcast %cst_19 : f32 to vector<1x8xf32>
    %30 = vector.extract_strided_slice %9 {offsets = [1, 0], sizes = [63, 8], strides = [1, 1]} : vector<64x8xf32> to vector<63x8xf32>
    %31 = tpu.concatenate %30, %29 in 0 : vector<63x8xf32>, vector<1x8xf32> -> vector<64x8xf32>
    %c3 = arith.constant 3 : index
    %c0_20 = arith.constant 0 : index
    %c0_21 = arith.constant 0 : index
    %32 = vector.load %arg3[%c3, %c0_20, %c0_21] : memref<5x8x8xf32, #tpu.memory_space<vmem>>, vector<1x8x8xf32>
    %33 = vector.shape_cast %32 : vector<1x8x8xf32> to vector<8x8xf32>
    %cst_22 = arith.constant dense<0.000000e+00> : vector<64x8xf32>
    %34 = tpu.matmul %31, %33, %cst_22 {dimension_numbers = #tpu.dot_dimension_numbers<[1], [0], [0], [1], [0, 0, 1, 1], [], []>} : vector<64x8xf32>, vector<8x8xf32>, vector<64x8xf32> -> vector<64x8xf32>
    %35 = arith.addf %28, %34 : vector<64x8xf32>
    %cst_23 = arith.constant 0.000000e+00 : f32
    %36 = vector.broadcast %cst_23 : f32 to vector<2x8xf32>
    %37 = vector.extract_strided_slice %9 {offsets = [2, 0], sizes = [62, 8], strides = [1, 1]} : vector<64x8xf32> to vector<62x8xf32>
    %38 = tpu.concatenate %37, %36 in 0 : vector<62x8xf32>, vector<2x8xf32> -> vector<64x8xf32>
    %c4 = arith.constant 4 : index
    %c0_24 = arith.constant 0 : index
    %c0_25 = arith.constant 0 : index
    %39 = vector.load %arg3[%c4, %c0_24, %c0_25] : memref<5x8x8xf32, #tpu.memory_space<vmem>>, vector<1x8x8xf32>
    %40 = vector.shape_cast %39 : vector<1x8x8xf32> to vector<8x8xf32>
    %cst_26 = arith.constant dense<0.000000e+00> : vector<64x8xf32>
    %41 = tpu.matmul %38, %40, %cst_26 {dimension_numbers = #tpu.dot_dimension_numbers<[1], [0], [0], [1], [0, 0, 1, 1], [], []>} : vector<64x8xf32>, vector<8x8xf32>, vector<64x8xf32> -> vector<64x8xf32>
    %42 = arith.addf %35, %41 : vector<64x8xf32>
    %c0_27 = arith.constant 0 : index
    %c0_28 = arith.constant 0 : index
    %43 = vector.load %arg4[%c0_27, %c0_28] : memref<3x8xf32, #tpu.memory_space<vmem>>, vector<3x8xf32>
    %44 = vector.extract_strided_slice %43 {offsets = [0, 0], sizes = [1, 8], strides = [1, 1]} : vector<3x8xf32> to vector<1x8xf32>
    %45 = vector.broadcast %44 : vector<1x8xf32> to vector<64x8xf32>
    %46 = arith.addf %42, %45 : vector<64x8xf32>
    %cst_29 = arith.constant 0.000000e+00 : f32
    %47 = vector.broadcast %cst_29 : f32 to vector<64x8xf32>
    %48 = arith.maximumf %46, %47 : vector<64x8xf32>
    %49 = vector.extract_strided_slice %43 {offsets = [1, 0], sizes = [1, 8], strides = [1, 1]} : vector<3x8xf32> to vector<1x8xf32>
    %50 = vector.broadcast %49 : vector<1x8xf32> to vector<64x8xf32>
    %51 = arith.mulf %48, %50 : vector<64x8xf32>
    %52 = vector.extract_strided_slice %43 {offsets = [2, 0], sizes = [1, 8], strides = [1, 1]} : vector<3x8xf32> to vector<1x8xf32>
    %53 = vector.broadcast %52 : vector<1x8xf32> to vector<64x8xf32>
    %54 = arith.addf %51, %53 : vector<64x8xf32>
    %55 = vector.extract_strided_slice %54 {offsets = [0, 0], sizes = [63, 8], strides = [1, 1]} : vector<64x8xf32> to vector<63x8xf32>
    %56 = vector.shape_cast %55 : vector<63x8xf32> to vector<21x3x8xf32>
    %cst_30 = arith.constant dense<0xFF800000> : vector<21x8xf32>
    %57 = vector.multi_reduction <maximumf>, %56, %cst_30 [1] : vector<21x3x8xf32> to vector<21x8xf32>
    %cst_31 = arith.constant 0.000000e+00 : f32
    %58 = vector.broadcast %cst_31 : f32 to vector<21x16xf32>
    %cst_32 = arith.constant 0.000000e+00 : f32
    %59 = vector.broadcast %cst_32 : f32 to vector<2x8xf32>
    %60 = vector.extract_strided_slice %57 {offsets = [0, 0], sizes = [19, 8], strides = [1, 1]} : vector<21x8xf32> to vector<19x8xf32>
    %61 = tpu.concatenate %59, %60 in 0 : vector<2x8xf32>, vector<19x8xf32> -> vector<21x8xf32>
    %c0_33 = arith.constant 0 : index
    %c0_34 = arith.constant 0 : index
    %c0_35 = arith.constant 0 : index
    %62 = vector.load %arg5[%c0_33, %c0_34, %c0_35] : memref<5x8x16xf32, #tpu.memory_space<vmem>>, vector<1x8x16xf32>
    %63 = vector.shape_cast %62 : vector<1x8x16xf32> to vector<8x16xf32>
    %cst_36 = arith.constant dense<0.000000e+00> : vector<21x16xf32>
    %64 = tpu.matmul %61, %63, %cst_36 {dimension_numbers = #tpu.dot_dimension_numbers<[1], [0], [0], [1], [0, 0, 1, 1], [], []>} : vector<21x8xf32>, vector<8x16xf32>, vector<21x16xf32> -> vector<21x16xf32>
    %65 = arith.addf %58, %64 : vector<21x16xf32>
    %cst_37 = arith.constant 0.000000e+00 : f32
    %66 = vector.broadcast %cst_37 : f32 to vector<1x8xf32>
    %67 = vector.extract_strided_slice %57 {offsets = [0, 0], sizes = [20, 8], strides = [1, 1]} : vector<21x8xf32> to vector<20x8xf32>
    %68 = tpu.concatenate %66, %67 in 0 : vector<1x8xf32>, vector<20x8xf32> -> vector<21x8xf32>
    %c1_38 = arith.constant 1 : index
    %c0_39 = arith.constant 0 : index
    %c0_40 = arith.constant 0 : index
    %69 = vector.load %arg5[%c1_38, %c0_39, %c0_40] : memref<5x8x16xf32, #tpu.memory_space<vmem>>, vector<1x8x16xf32>
    %70 = vector.shape_cast %69 : vector<1x8x16xf32> to vector<8x16xf32>
    %cst_41 = arith.constant dense<0.000000e+00> : vector<21x16xf32>
    %71 = tpu.matmul %68, %70, %cst_41 {dimension_numbers = #tpu.dot_dimension_numbers<[1], [0], [0], [1], [0, 0, 1, 1], [], []>} : vector<21x8xf32>, vector<8x16xf32>, vector<21x16xf32> -> vector<21x16xf32>
    %72 = arith.addf %65, %71 : vector<21x16xf32>
    %c2_42 = arith.constant 2 : index
    %c0_43 = arith.constant 0 : index
    %c0_44 = arith.constant 0 : index
    %73 = vector.load %arg5[%c2_42, %c0_43, %c0_44] : memref<5x8x16xf32, #tpu.memory_space<vmem>>, vector<1x8x16xf32>
    %74 = vector.shape_cast %73 : vector<1x8x16xf32> to vector<8x16xf32>
    %cst_45 = arith.constant dense<0.000000e+00> : vector<21x16xf32>
    %75 = tpu.matmul %57, %74, %cst_45 {dimension_numbers = #tpu.dot_dimension_numbers<[1], [0], [0], [1], [0, 0, 1, 1], [], []>} : vector<21x8xf32>, vector<8x16xf32>, vector<21x16xf32> -> vector<21x16xf32>
    %76 = arith.addf %72, %75 : vector<21x16xf32>
    %cst_46 = arith.constant 0.000000e+00 : f32
    %77 = vector.broadcast %cst_46 : f32 to vector<1x8xf32>
    %78 = vector.extract_strided_slice %57 {offsets = [1, 0], sizes = [20, 8], strides = [1, 1]} : vector<21x8xf32> to vector<20x8xf32>
    %79 = tpu.concatenate %78, %77 in 0 : vector<20x8xf32>, vector<1x8xf32> -> vector<21x8xf32>
    %c3_47 = arith.constant 3 : index
    %c0_48 = arith.constant 0 : index
    %c0_49 = arith.constant 0 : index
    %80 = vector.load %arg5[%c3_47, %c0_48, %c0_49] : memref<5x8x16xf32, #tpu.memory_space<vmem>>, vector<1x8x16xf32>
    %81 = vector.shape_cast %80 : vector<1x8x16xf32> to vector<8x16xf32>
    %cst_50 = arith.constant dense<0.000000e+00> : vector<21x16xf32>
    %82 = tpu.matmul %79, %81, %cst_50 {dimension_numbers = #tpu.dot_dimension_numbers<[1], [0], [0], [1], [0, 0, 1, 1], [], []>} : vector<21x8xf32>, vector<8x16xf32>, vector<21x16xf32> -> vector<21x16xf32>
    %83 = arith.addf %76, %82 : vector<21x16xf32>
    %cst_51 = arith.constant 0.000000e+00 : f32
    %84 = vector.broadcast %cst_51 : f32 to vector<2x8xf32>
    %85 = vector.extract_strided_slice %57 {offsets = [2, 0], sizes = [19, 8], strides = [1, 1]} : vector<21x8xf32> to vector<19x8xf32>
    %86 = tpu.concatenate %85, %84 in 0 : vector<19x8xf32>, vector<2x8xf32> -> vector<21x8xf32>
    %c4_52 = arith.constant 4 : index
    %c0_53 = arith.constant 0 : index
    %c0_54 = arith.constant 0 : index
    %87 = vector.load %arg5[%c4_52, %c0_53, %c0_54] : memref<5x8x16xf32, #tpu.memory_space<vmem>>, vector<1x8x16xf32>
    %88 = vector.shape_cast %87 : vector<1x8x16xf32> to vector<8x16xf32>
    %cst_55 = arith.constant dense<0.000000e+00> : vector<21x16xf32>
    %89 = tpu.matmul %86, %88, %cst_55 {dimension_numbers = #tpu.dot_dimension_numbers<[1], [0], [0], [1], [0, 0, 1, 1], [], []>} : vector<21x8xf32>, vector<8x16xf32>, vector<21x16xf32> -> vector<21x16xf32>
    %90 = arith.addf %83, %89 : vector<21x16xf32>
    %c0_56 = arith.constant 0 : index
    %c0_57 = arith.constant 0 : index
    %91 = vector.load %arg6[%c0_56, %c0_57] : memref<3x16xf32, #tpu.memory_space<vmem>>, vector<3x16xf32>
    %92 = vector.extract_strided_slice %91 {offsets = [0, 0], sizes = [1, 16], strides = [1, 1]} : vector<3x16xf32> to vector<1x16xf32>
    %93 = vector.broadcast %92 : vector<1x16xf32> to vector<21x16xf32>
    %94 = arith.addf %90, %93 : vector<21x16xf32>
    %cst_58 = arith.constant 0.000000e+00 : f32
    %95 = vector.broadcast %cst_58 : f32 to vector<21x16xf32>
    %96 = arith.maximumf %94, %95 : vector<21x16xf32>
    %97 = vector.extract_strided_slice %91 {offsets = [1, 0], sizes = [1, 16], strides = [1, 1]} : vector<3x16xf32> to vector<1x16xf32>
    %98 = vector.broadcast %97 : vector<1x16xf32> to vector<21x16xf32>
    %99 = arith.mulf %96, %98 : vector<21x16xf32>
    %100 = vector.extract_strided_slice %91 {offsets = [2, 0], sizes = [1, 16], strides = [1, 1]} : vector<3x16xf32> to vector<1x16xf32>
    %101 = vector.broadcast %100 : vector<1x16xf32> to vector<21x16xf32>
    %102 = arith.addf %99, %101 : vector<21x16xf32>
    %103 = vector.extract_strided_slice %102 {offsets = [0, 0], sizes = [20, 16], strides = [1, 1]} : vector<21x16xf32> to vector<20x16xf32>
    %104 = vector.extract_strided_slice %102 {offsets = [1, 0], sizes = [20, 16], strides = [1, 1]} : vector<21x16xf32> to vector<20x16xf32>
    %105 = arith.maximumf %103, %104 : vector<20x16xf32>
    %c1_59 = arith.constant 1 : index
    %c0_60 = arith.constant 0 : index
    %c0_61 = arith.constant 0 : index
    %106 = vector.load %arg1[%c1_59, %c0_60, %c0_61] : memref<2x64x1xi32, #tpu.memory_space<vmem>>, vector<1x64x1xi32>
    %107 = vector.shape_cast %106 : vector<1x64x1xi32> to vector<64x1xi32>
    %108 = vector.broadcast %107 : vector<64x1xi32> to vector<64x50xi32>
    %109 = arith.cmpi eq, %108, %1 : vector<64x50xi32>
    %cst_62 = arith.constant 1.000000e+00 : f32
    %cst_63 = arith.constant 0.000000e+00 : f32
    %110 = vector.broadcast %cst_62 : f32 to vector<64x50xf32>
    %111 = vector.broadcast %cst_63 : f32 to vector<64x50xf32>
    %112 = arith.select %109, %110, %111 : vector<64x50xi1>, vector<64x50xf32>
    %cst_64 = arith.constant dense<0.000000e+00> : vector<64x8xf32>
    %113 = tpu.matmul %112, %0, %cst_64 {dimension_numbers = #tpu.dot_dimension_numbers<[1], [0], [0], [1], [0, 0, 1, 1], [], []>} : vector<64x50xf32>, vector<50x8xf32>, vector<64x8xf32> -> vector<64x8xf32>
    %cst_65 = arith.constant 0.000000e+00 : f32
    %114 = vector.broadcast %cst_65 : f32 to vector<64x8xf32>
    %cst_66 = arith.constant 0.000000e+00 : f32
    %115 = vector.broadcast %cst_66 : f32 to vector<2x8xf32>
    %116 = vector.extract_strided_slice %113 {offsets = [0, 0], sizes = [62, 8], strides = [1, 1]} : vector<64x8xf32> to vector<62x8xf32>
    %117 = tpu.concatenate %115, %116 in 0 : vector<2x8xf32>, vector<62x8xf32> -> vector<64x8xf32>
    %c0_67 = arith.constant 0 : index
    %c0_68 = arith.constant 0 : index
    %c0_69 = arith.constant 0 : index
    %118 = vector.load %arg3[%c0_67, %c0_68, %c0_69] : memref<5x8x8xf32, #tpu.memory_space<vmem>>, vector<1x8x8xf32>
    %119 = vector.shape_cast %118 : vector<1x8x8xf32> to vector<8x8xf32>
    %cst_70 = arith.constant dense<0.000000e+00> : vector<64x8xf32>
    %120 = tpu.matmul %117, %119, %cst_70 {dimension_numbers = #tpu.dot_dimension_numbers<[1], [0], [0], [1], [0, 0, 1, 1], [], []>} : vector<64x8xf32>, vector<8x8xf32>, vector<64x8xf32> -> vector<64x8xf32>
    %121 = arith.addf %114, %120 : vector<64x8xf32>
    %cst_71 = arith.constant 0.000000e+00 : f32
    %122 = vector.broadcast %cst_71 : f32 to vector<1x8xf32>
    %123 = vector.extract_strided_slice %113 {offsets = [0, 0], sizes = [63, 8], strides = [1, 1]} : vector<64x8xf32> to vector<63x8xf32>
    %124 = tpu.concatenate %122, %123 in 0 : vector<1x8xf32>, vector<63x8xf32> -> vector<64x8xf32>
    %c1_72 = arith.constant 1 : index
    %c0_73 = arith.constant 0 : index
    %c0_74 = arith.constant 0 : index
    %125 = vector.load %arg3[%c1_72, %c0_73, %c0_74] : memref<5x8x8xf32, #tpu.memory_space<vmem>>, vector<1x8x8xf32>
    %126 = vector.shape_cast %125 : vector<1x8x8xf32> to vector<8x8xf32>
    %cst_75 = arith.constant dense<0.000000e+00> : vector<64x8xf32>
    %127 = tpu.matmul %124, %126, %cst_75 {dimension_numbers = #tpu.dot_dimension_numbers<[1], [0], [0], [1], [0, 0, 1, 1], [], []>} : vector<64x8xf32>, vector<8x8xf32>, vector<64x8xf32> -> vector<64x8xf32>
    %128 = arith.addf %121, %127 : vector<64x8xf32>
    %c2_76 = arith.constant 2 : index
    %c0_77 = arith.constant 0 : index
    %c0_78 = arith.constant 0 : index
    %129 = vector.load %arg3[%c2_76, %c0_77, %c0_78] : memref<5x8x8xf32, #tpu.memory_space<vmem>>, vector<1x8x8xf32>
    %130 = vector.shape_cast %129 : vector<1x8x8xf32> to vector<8x8xf32>
    %cst_79 = arith.constant dense<0.000000e+00> : vector<64x8xf32>
    %131 = tpu.matmul %113, %130, %cst_79 {dimension_numbers = #tpu.dot_dimension_numbers<[1], [0], [0], [1], [0, 0, 1, 1], [], []>} : vector<64x8xf32>, vector<8x8xf32>, vector<64x8xf32> -> vector<64x8xf32>
    %132 = arith.addf %128, %131 : vector<64x8xf32>
    %cst_80 = arith.constant 0.000000e+00 : f32
    %133 = vector.broadcast %cst_80 : f32 to vector<1x8xf32>
    %134 = vector.extract_strided_slice %113 {offsets = [1, 0], sizes = [63, 8], strides = [1, 1]} : vector<64x8xf32> to vector<63x8xf32>
    %135 = tpu.concatenate %134, %133 in 0 : vector<63x8xf32>, vector<1x8xf32> -> vector<64x8xf32>
    %c3_81 = arith.constant 3 : index
    %c0_82 = arith.constant 0 : index
    %c0_83 = arith.constant 0 : index
    %136 = vector.load %arg3[%c3_81, %c0_82, %c0_83] : memref<5x8x8xf32, #tpu.memory_space<vmem>>, vector<1x8x8xf32>
    %137 = vector.shape_cast %136 : vector<1x8x8xf32> to vector<8x8xf32>
    %cst_84 = arith.constant dense<0.000000e+00> : vector<64x8xf32>
    %138 = tpu.matmul %135, %137, %cst_84 {dimension_numbers = #tpu.dot_dimension_numbers<[1], [0], [0], [1], [0, 0, 1, 1], [], []>} : vector<64x8xf32>, vector<8x8xf32>, vector<64x8xf32> -> vector<64x8xf32>
    %139 = arith.addf %132, %138 : vector<64x8xf32>
    %cst_85 = arith.constant 0.000000e+00 : f32
    %140 = vector.broadcast %cst_85 : f32 to vector<2x8xf32>
    %141 = vector.extract_strided_slice %113 {offsets = [2, 0], sizes = [62, 8], strides = [1, 1]} : vector<64x8xf32> to vector<62x8xf32>
    %142 = tpu.concatenate %141, %140 in 0 : vector<62x8xf32>, vector<2x8xf32> -> vector<64x8xf32>
    %c4_86 = arith.constant 4 : index
    %c0_87 = arith.constant 0 : index
    %c0_88 = arith.constant 0 : index
    %143 = vector.load %arg3[%c4_86, %c0_87, %c0_88] : memref<5x8x8xf32, #tpu.memory_space<vmem>>, vector<1x8x8xf32>
    %144 = vector.shape_cast %143 : vector<1x8x8xf32> to vector<8x8xf32>
    %cst_89 = arith.constant dense<0.000000e+00> : vector<64x8xf32>
    %145 = tpu.matmul %142, %144, %cst_89 {dimension_numbers = #tpu.dot_dimension_numbers<[1], [0], [0], [1], [0, 0, 1, 1], [], []>} : vector<64x8xf32>, vector<8x8xf32>, vector<64x8xf32> -> vector<64x8xf32>
    %146 = arith.addf %139, %145 : vector<64x8xf32>
    %c0_90 = arith.constant 0 : index
    %c0_91 = arith.constant 0 : index
    %147 = vector.load %arg4[%c0_90, %c0_91] : memref<3x8xf32, #tpu.memory_space<vmem>>, vector<3x8xf32>
    %148 = vector.extract_strided_slice %147 {offsets = [0, 0], sizes = [1, 8], strides = [1, 1]} : vector<3x8xf32> to vector<1x8xf32>
    %149 = vector.broadcast %148 : vector<1x8xf32> to vector<64x8xf32>
    %150 = arith.addf %146, %149 : vector<64x8xf32>
    %cst_92 = arith.constant 0.000000e+00 : f32
    %151 = vector.broadcast %cst_92 : f32 to vector<64x8xf32>
    %152 = arith.maximumf %150, %151 : vector<64x8xf32>
    %153 = vector.extract_strided_slice %147 {offsets = [1, 0], sizes = [1, 8], strides = [1, 1]} : vector<3x8xf32> to vector<1x8xf32>
    %154 = vector.broadcast %153 : vector<1x8xf32> to vector<64x8xf32>
    %155 = arith.mulf %152, %154 : vector<64x8xf32>
    %156 = vector.extract_strided_slice %147 {offsets = [2, 0], sizes = [1, 8], strides = [1, 1]} : vector<3x8xf32> to vector<1x8xf32>
    %157 = vector.broadcast %156 : vector<1x8xf32> to vector<64x8xf32>
    %158 = arith.addf %155, %157 : vector<64x8xf32>
    %159 = vector.extract_strided_slice %158 {offsets = [0, 0], sizes = [63, 8], strides = [1, 1]} : vector<64x8xf32> to vector<63x8xf32>
    %160 = vector.shape_cast %159 : vector<63x8xf32> to vector<21x3x8xf32>
    %cst_93 = arith.constant dense<0xFF800000> : vector<21x8xf32>
    %161 = vector.multi_reduction <maximumf>, %160, %cst_93 [1] : vector<21x3x8xf32> to vector<21x8xf32>
    %cst_94 = arith.constant 0.000000e+00 : f32
    %162 = vector.broadcast %cst_94 : f32 to vector<21x16xf32>
    %cst_95 = arith.constant 0.000000e+00 : f32
    %163 = vector.broadcast %cst_95 : f32 to vector<2x8xf32>
    %164 = vector.extract_strided_slice %161 {offsets = [0, 0], sizes = [19, 8], strides = [1, 1]} : vector<21x8xf32> to vector<19x8xf32>
    %165 = tpu.concatenate %163, %164 in 0 : vector<2x8xf32>, vector<19x8xf32> -> vector<21x8xf32>
    %c0_96 = arith.constant 0 : index
    %c0_97 = arith.constant 0 : index
    %c0_98 = arith.constant 0 : index
    %166 = vector.load %arg5[%c0_96, %c0_97, %c0_98] : memref<5x8x16xf32, #tpu.memory_space<vmem>>, vector<1x8x16xf32>
    %167 = vector.shape_cast %166 : vector<1x8x16xf32> to vector<8x16xf32>
    %cst_99 = arith.constant dense<0.000000e+00> : vector<21x16xf32>
    %168 = tpu.matmul %165, %167, %cst_99 {dimension_numbers = #tpu.dot_dimension_numbers<[1], [0], [0], [1], [0, 0, 1, 1], [], []>} : vector<21x8xf32>, vector<8x16xf32>, vector<21x16xf32> -> vector<21x16xf32>
    %169 = arith.addf %162, %168 : vector<21x16xf32>
    %cst_100 = arith.constant 0.000000e+00 : f32
    %170 = vector.broadcast %cst_100 : f32 to vector<1x8xf32>
    %171 = vector.extract_strided_slice %161 {offsets = [0, 0], sizes = [20, 8], strides = [1, 1]} : vector<21x8xf32> to vector<20x8xf32>
    %172 = tpu.concatenate %170, %171 in 0 : vector<1x8xf32>, vector<20x8xf32> -> vector<21x8xf32>
    %c1_101 = arith.constant 1 : index
    %c0_102 = arith.constant 0 : index
    %c0_103 = arith.constant 0 : index
    %173 = vector.load %arg5[%c1_101, %c0_102, %c0_103] : memref<5x8x16xf32, #tpu.memory_space<vmem>>, vector<1x8x16xf32>
    %174 = vector.shape_cast %173 : vector<1x8x16xf32> to vector<8x16xf32>
    %cst_104 = arith.constant dense<0.000000e+00> : vector<21x16xf32>
    %175 = tpu.matmul %172, %174, %cst_104 {dimension_numbers = #tpu.dot_dimension_numbers<[1], [0], [0], [1], [0, 0, 1, 1], [], []>} : vector<21x8xf32>, vector<8x16xf32>, vector<21x16xf32> -> vector<21x16xf32>
    %176 = arith.addf %169, %175 : vector<21x16xf32>
    %c2_105 = arith.constant 2 : index
    %c0_106 = arith.constant 0 : index
    %c0_107 = arith.constant 0 : index
    %177 = vector.load %arg5[%c2_105, %c0_106, %c0_107] : memref<5x8x16xf32, #tpu.memory_space<vmem>>, vector<1x8x16xf32>
    %178 = vector.shape_cast %177 : vector<1x8x16xf32> to vector<8x16xf32>
    %cst_108 = arith.constant dense<0.000000e+00> : vector<21x16xf32>
    %179 = tpu.matmul %161, %178, %cst_108 {dimension_numbers = #tpu.dot_dimension_numbers<[1], [0], [0], [1], [0, 0, 1, 1], [], []>} : vector<21x8xf32>, vector<8x16xf32>, vector<21x16xf32> -> vector<21x16xf32>
    %180 = arith.addf %176, %179 : vector<21x16xf32>
    %cst_109 = arith.constant 0.000000e+00 : f32
    %181 = vector.broadcast %cst_109 : f32 to vector<1x8xf32>
    %182 = vector.extract_strided_slice %161 {offsets = [1, 0], sizes = [20, 8], strides = [1, 1]} : vector<21x8xf32> to vector<20x8xf32>
    %183 = tpu.concatenate %182, %181 in 0 : vector<20x8xf32>, vector<1x8xf32> -> vector<21x8xf32>
    %c3_110 = arith.constant 3 : index
    %c0_111 = arith.constant 0 : index
    %c0_112 = arith.constant 0 : index
    %184 = vector.load %arg5[%c3_110, %c0_111, %c0_112] : memref<5x8x16xf32, #tpu.memory_space<vmem>>, vector<1x8x16xf32>
    %185 = vector.shape_cast %184 : vector<1x8x16xf32> to vector<8x16xf32>
    %cst_113 = arith.constant dense<0.000000e+00> : vector<21x16xf32>
    %186 = tpu.matmul %183, %185, %cst_113 {dimension_numbers = #tpu.dot_dimension_numbers<[1], [0], [0], [1], [0, 0, 1, 1], [], []>} : vector<21x8xf32>, vector<8x16xf32>, vector<21x16xf32> -> vector<21x16xf32>
    %187 = arith.addf %180, %186 : vector<21x16xf32>
    %cst_114 = arith.constant 0.000000e+00 : f32
    %188 = vector.broadcast %cst_114 : f32 to vector<2x8xf32>
    %189 = vector.extract_strided_slice %161 {offsets = [2, 0], sizes = [19, 8], strides = [1, 1]} : vector<21x8xf32> to vector<19x8xf32>
    %190 = tpu.concatenate %189, %188 in 0 : vector<19x8xf32>, vector<2x8xf32> -> vector<21x8xf32>
    %c4_115 = arith.constant 4 : index
    %c0_116 = arith.constant 0 : index
    %c0_117 = arith.constant 0 : index
    %191 = vector.load %arg5[%c4_115, %c0_116, %c0_117] : memref<5x8x16xf32, #tpu.memory_space<vmem>>, vector<1x8x16xf32>
    %192 = vector.shape_cast %191 : vector<1x8x16xf32> to vector<8x16xf32>
    %cst_118 = arith.constant dense<0.000000e+00> : vector<21x16xf32>
    %193 = tpu.matmul %190, %192, %cst_118 {dimension_numbers = #tpu.dot_dimension_numbers<[1], [0], [0], [1], [0, 0, 1, 1], [], []>} : vector<21x8xf32>, vector<8x16xf32>, vector<21x16xf32> -> vector<21x16xf32>
    %194 = arith.addf %187, %193 : vector<21x16xf32>
    %c0_119 = arith.constant 0 : index
    %c0_120 = arith.constant 0 : index
    %195 = vector.load %arg6[%c0_119, %c0_120] : memref<3x16xf32, #tpu.memory_space<vmem>>, vector<3x16xf32>
    %196 = vector.extract_strided_slice %195 {offsets = [0, 0], sizes = [1, 16], strides = [1, 1]} : vector<3x16xf32> to vector<1x16xf32>
    %197 = vector.broadcast %196 : vector<1x16xf32> to vector<21x16xf32>
    %198 = arith.addf %194, %197 : vector<21x16xf32>
    %cst_121 = arith.constant 0.000000e+00 : f32
    %199 = vector.broadcast %cst_121 : f32 to vector<21x16xf32>
    %200 = arith.maximumf %198, %199 : vector<21x16xf32>
    %201 = vector.extract_strided_slice %195 {offsets = [1, 0], sizes = [1, 16], strides = [1, 1]} : vector<3x16xf32> to vector<1x16xf32>
    %202 = vector.broadcast %201 : vector<1x16xf32> to vector<21x16xf32>
    %203 = arith.mulf %200, %202 : vector<21x16xf32>
    %204 = vector.extract_strided_slice %195 {offsets = [2, 0], sizes = [1, 16], strides = [1, 1]} : vector<3x16xf32> to vector<1x16xf32>
    %205 = vector.broadcast %204 : vector<1x16xf32> to vector<21x16xf32>
    %206 = arith.addf %203, %205 : vector<21x16xf32>
    %207 = vector.extract_strided_slice %206 {offsets = [0, 0], sizes = [20, 16], strides = [1, 1]} : vector<21x16xf32> to vector<20x16xf32>
    %208 = vector.extract_strided_slice %206 {offsets = [1, 0], sizes = [20, 16], strides = [1, 1]} : vector<21x16xf32> to vector<20x16xf32>
    %209 = arith.maximumf %207, %208 : vector<20x16xf32>
    %210 = vector.extract_strided_slice %105 {offsets = [0, 0], sizes = [1, 16], strides = [1, 1]} : vector<20x16xf32> to vector<1x16xf32>
    %211 = vector.extract_strided_slice %209 {offsets = [0, 0], sizes = [1, 16], strides = [1, 1]} : vector<20x16xf32> to vector<1x16xf32>
    %212 = tpu.concatenate %210, %211 in 0 : vector<1x16xf32>, vector<1x16xf32> -> vector<2x16xf32>
    %c0_122 = arith.constant 0 : index
    %c0_123 = arith.constant 0 : index
    %c0_124 = arith.constant 0 : index
    %213 = vector.load %arg7[%c0_122, %c0_123, %c0_124] : memref<20x16x256xf32, #tpu.memory_space<vmem>>, vector<1x16x256xf32>
    %214 = vector.shape_cast %213 : vector<1x16x256xf32> to vector<16x256xf32>
    %cst_125 = arith.constant dense<0.000000e+00> : vector<2x256xf32>
    %215 = tpu.matmul %212, %214, %cst_125 {dimension_numbers = #tpu.dot_dimension_numbers<[1], [0], [0], [1], [0, 0, 1, 1], [], []>} : vector<2x16xf32>, vector<16x256xf32>, vector<2x256xf32> -> vector<2x256xf32>
    %216 = vector.extract_strided_slice %105 {offsets = [1, 0], sizes = [1, 16], strides = [1, 1]} : vector<20x16xf32> to vector<1x16xf32>
    %217 = vector.extract_strided_slice %209 {offsets = [1, 0], sizes = [1, 16], strides = [1, 1]} : vector<20x16xf32> to vector<1x16xf32>
    %218 = tpu.concatenate %216, %217 in 0 : vector<1x16xf32>, vector<1x16xf32> -> vector<2x16xf32>
    %c1_126 = arith.constant 1 : index
    %c0_127 = arith.constant 0 : index
    %c0_128 = arith.constant 0 : index
    %219 = vector.load %arg7[%c1_126, %c0_127, %c0_128] : memref<20x16x256xf32, #tpu.memory_space<vmem>>, vector<1x16x256xf32>
    %220 = vector.shape_cast %219 : vector<1x16x256xf32> to vector<16x256xf32>
    %cst_129 = arith.constant dense<0.000000e+00> : vector<2x256xf32>
    %221 = tpu.matmul %218, %220, %cst_129 {dimension_numbers = #tpu.dot_dimension_numbers<[1], [0], [0], [1], [0, 0, 1, 1], [], []>} : vector<2x16xf32>, vector<16x256xf32>, vector<2x256xf32> -> vector<2x256xf32>
    %222 = arith.addf %215, %221 : vector<2x256xf32>
    %223 = vector.extract_strided_slice %105 {offsets = [2, 0], sizes = [1, 16], strides = [1, 1]} : vector<20x16xf32> to vector<1x16xf32>
    %224 = vector.extract_strided_slice %209 {offsets = [2, 0], sizes = [1, 16], strides = [1, 1]} : vector<20x16xf32> to vector<1x16xf32>
    %225 = tpu.concatenate %223, %224 in 0 : vector<1x16xf32>, vector<1x16xf32> -> vector<2x16xf32>
    %c2_130 = arith.constant 2 : index
    %c0_131 = arith.constant 0 : index
    %c0_132 = arith.constant 0 : index
    %226 = vector.load %arg7[%c2_130, %c0_131, %c0_132] : memref<20x16x256xf32, #tpu.memory_space<vmem>>, vector<1x16x256xf32>
    %227 = vector.shape_cast %226 : vector<1x16x256xf32> to vector<16x256xf32>
    %cst_133 = arith.constant dense<0.000000e+00> : vector<2x256xf32>
    %228 = tpu.matmul %225, %227, %cst_133 {dimension_numbers = #tpu.dot_dimension_numbers<[1], [0], [0], [1], [0, 0, 1, 1], [], []>} : vector<2x16xf32>, vector<16x256xf32>, vector<2x256xf32> -> vector<2x256xf32>
    %229 = arith.addf %222, %228 : vector<2x256xf32>
    %230 = vector.extract_strided_slice %105 {offsets = [3, 0], sizes = [1, 16], strides = [1, 1]} : vector<20x16xf32> to vector<1x16xf32>
    %231 = vector.extract_strided_slice %209 {offsets = [3, 0], sizes = [1, 16], strides = [1, 1]} : vector<20x16xf32> to vector<1x16xf32>
    %232 = tpu.concatenate %230, %231 in 0 : vector<1x16xf32>, vector<1x16xf32> -> vector<2x16xf32>
    %c3_134 = arith.constant 3 : index
    %c0_135 = arith.constant 0 : index
    %c0_136 = arith.constant 0 : index
    %233 = vector.load %arg7[%c3_134, %c0_135, %c0_136] : memref<20x16x256xf32, #tpu.memory_space<vmem>>, vector<1x16x256xf32>
    %234 = vector.shape_cast %233 : vector<1x16x256xf32> to vector<16x256xf32>
    %cst_137 = arith.constant dense<0.000000e+00> : vector<2x256xf32>
    %235 = tpu.matmul %232, %234, %cst_137 {dimension_numbers = #tpu.dot_dimension_numbers<[1], [0], [0], [1], [0, 0, 1, 1], [], []>} : vector<2x16xf32>, vector<16x256xf32>, vector<2x256xf32> -> vector<2x256xf32>
    %236 = arith.addf %229, %235 : vector<2x256xf32>
    %237 = vector.extract_strided_slice %105 {offsets = [4, 0], sizes = [1, 16], strides = [1, 1]} : vector<20x16xf32> to vector<1x16xf32>
    %238 = vector.extract_strided_slice %209 {offsets = [4, 0], sizes = [1, 16], strides = [1, 1]} : vector<20x16xf32> to vector<1x16xf32>
    %239 = tpu.concatenate %237, %238 in 0 : vector<1x16xf32>, vector<1x16xf32> -> vector<2x16xf32>
    %c4_138 = arith.constant 4 : index
    %c0_139 = arith.constant 0 : index
    %c0_140 = arith.constant 0 : index
    %240 = vector.load %arg7[%c4_138, %c0_139, %c0_140] : memref<20x16x256xf32, #tpu.memory_space<vmem>>, vector<1x16x256xf32>
    %241 = vector.shape_cast %240 : vector<1x16x256xf32> to vector<16x256xf32>
    %cst_141 = arith.constant dense<0.000000e+00> : vector<2x256xf32>
    %242 = tpu.matmul %239, %241, %cst_141 {dimension_numbers = #tpu.dot_dimension_numbers<[1], [0], [0], [1], [0, 0, 1, 1], [], []>} : vector<2x16xf32>, vector<16x256xf32>, vector<2x256xf32> -> vector<2x256xf32>
    %243 = arith.addf %236, %242 : vector<2x256xf32>
    %244 = vector.extract_strided_slice %105 {offsets = [5, 0], sizes = [1, 16], strides = [1, 1]} : vector<20x16xf32> to vector<1x16xf32>
    %245 = vector.extract_strided_slice %209 {offsets = [5, 0], sizes = [1, 16], strides = [1, 1]} : vector<20x16xf32> to vector<1x16xf32>
    %246 = tpu.concatenate %244, %245 in 0 : vector<1x16xf32>, vector<1x16xf32> -> vector<2x16xf32>
    %c5 = arith.constant 5 : index
    %c0_142 = arith.constant 0 : index
    %c0_143 = arith.constant 0 : index
    %247 = vector.load %arg7[%c5, %c0_142, %c0_143] : memref<20x16x256xf32, #tpu.memory_space<vmem>>, vector<1x16x256xf32>
    %248 = vector.shape_cast %247 : vector<1x16x256xf32> to vector<16x256xf32>
    %cst_144 = arith.constant dense<0.000000e+00> : vector<2x256xf32>
    %249 = tpu.matmul %246, %248, %cst_144 {dimension_numbers = #tpu.dot_dimension_numbers<[1], [0], [0], [1], [0, 0, 1, 1], [], []>} : vector<2x16xf32>, vector<16x256xf32>, vector<2x256xf32> -> vector<2x256xf32>
    %250 = arith.addf %243, %249 : vector<2x256xf32>
    %251 = vector.extract_strided_slice %105 {offsets = [6, 0], sizes = [1, 16], strides = [1, 1]} : vector<20x16xf32> to vector<1x16xf32>
    %252 = vector.extract_strided_slice %209 {offsets = [6, 0], sizes = [1, 16], strides = [1, 1]} : vector<20x16xf32> to vector<1x16xf32>
    %253 = tpu.concatenate %251, %252 in 0 : vector<1x16xf32>, vector<1x16xf32> -> vector<2x16xf32>
    %c6 = arith.constant 6 : index
    %c0_145 = arith.constant 0 : index
    %c0_146 = arith.constant 0 : index
    %254 = vector.load %arg7[%c6, %c0_145, %c0_146] : memref<20x16x256xf32, #tpu.memory_space<vmem>>, vector<1x16x256xf32>
    %255 = vector.shape_cast %254 : vector<1x16x256xf32> to vector<16x256xf32>
    %cst_147 = arith.constant dense<0.000000e+00> : vector<2x256xf32>
    %256 = tpu.matmul %253, %255, %cst_147 {dimension_numbers = #tpu.dot_dimension_numbers<[1], [0], [0], [1], [0, 0, 1, 1], [], []>} : vector<2x16xf32>, vector<16x256xf32>, vector<2x256xf32> -> vector<2x256xf32>
    %257 = arith.addf %250, %256 : vector<2x256xf32>
    %258 = vector.extract_strided_slice %105 {offsets = [7, 0], sizes = [1, 16], strides = [1, 1]} : vector<20x16xf32> to vector<1x16xf32>
    %259 = vector.extract_strided_slice %209 {offsets = [7, 0], sizes = [1, 16], strides = [1, 1]} : vector<20x16xf32> to vector<1x16xf32>
    %260 = tpu.concatenate %258, %259 in 0 : vector<1x16xf32>, vector<1x16xf32> -> vector<2x16xf32>
    %c7 = arith.constant 7 : index
    %c0_148 = arith.constant 0 : index
    %c0_149 = arith.constant 0 : index
    %261 = vector.load %arg7[%c7, %c0_148, %c0_149] : memref<20x16x256xf32, #tpu.memory_space<vmem>>, vector<1x16x256xf32>
    %262 = vector.shape_cast %261 : vector<1x16x256xf32> to vector<16x256xf32>
    %cst_150 = arith.constant dense<0.000000e+00> : vector<2x256xf32>
    %263 = tpu.matmul %260, %262, %cst_150 {dimension_numbers = #tpu.dot_dimension_numbers<[1], [0], [0], [1], [0, 0, 1, 1], [], []>} : vector<2x16xf32>, vector<16x256xf32>, vector<2x256xf32> -> vector<2x256xf32>
    %264 = arith.addf %257, %263 : vector<2x256xf32>
    %265 = vector.extract_strided_slice %105 {offsets = [8, 0], sizes = [1, 16], strides = [1, 1]} : vector<20x16xf32> to vector<1x16xf32>
    %266 = vector.extract_strided_slice %209 {offsets = [8, 0], sizes = [1, 16], strides = [1, 1]} : vector<20x16xf32> to vector<1x16xf32>
    %267 = tpu.concatenate %265, %266 in 0 : vector<1x16xf32>, vector<1x16xf32> -> vector<2x16xf32>
    %c8 = arith.constant 8 : index
    %c0_151 = arith.constant 0 : index
    %c0_152 = arith.constant 0 : index
    %268 = vector.load %arg7[%c8, %c0_151, %c0_152] : memref<20x16x256xf32, #tpu.memory_space<vmem>>, vector<1x16x256xf32>
    %269 = vector.shape_cast %268 : vector<1x16x256xf32> to vector<16x256xf32>
    %cst_153 = arith.constant dense<0.000000e+00> : vector<2x256xf32>
    %270 = tpu.matmul %267, %269, %cst_153 {dimension_numbers = #tpu.dot_dimension_numbers<[1], [0], [0], [1], [0, 0, 1, 1], [], []>} : vector<2x16xf32>, vector<16x256xf32>, vector<2x256xf32> -> vector<2x256xf32>
    %271 = arith.addf %264, %270 : vector<2x256xf32>
    %272 = vector.extract_strided_slice %105 {offsets = [9, 0], sizes = [1, 16], strides = [1, 1]} : vector<20x16xf32> to vector<1x16xf32>
    %273 = vector.extract_strided_slice %209 {offsets = [9, 0], sizes = [1, 16], strides = [1, 1]} : vector<20x16xf32> to vector<1x16xf32>
    %274 = tpu.concatenate %272, %273 in 0 : vector<1x16xf32>, vector<1x16xf32> -> vector<2x16xf32>
    %c9 = arith.constant 9 : index
    %c0_154 = arith.constant 0 : index
    %c0_155 = arith.constant 0 : index
    %275 = vector.load %arg7[%c9, %c0_154, %c0_155] : memref<20x16x256xf32, #tpu.memory_space<vmem>>, vector<1x16x256xf32>
    %276 = vector.shape_cast %275 : vector<1x16x256xf32> to vector<16x256xf32>
    %cst_156 = arith.constant dense<0.000000e+00> : vector<2x256xf32>
    %277 = tpu.matmul %274, %276, %cst_156 {dimension_numbers = #tpu.dot_dimension_numbers<[1], [0], [0], [1], [0, 0, 1, 1], [], []>} : vector<2x16xf32>, vector<16x256xf32>, vector<2x256xf32> -> vector<2x256xf32>
    %278 = arith.addf %271, %277 : vector<2x256xf32>
    %279 = vector.extract_strided_slice %105 {offsets = [10, 0], sizes = [1, 16], strides = [1, 1]} : vector<20x16xf32> to vector<1x16xf32>
    %280 = vector.extract_strided_slice %209 {offsets = [10, 0], sizes = [1, 16], strides = [1, 1]} : vector<20x16xf32> to vector<1x16xf32>
    %281 = tpu.concatenate %279, %280 in 0 : vector<1x16xf32>, vector<1x16xf32> -> vector<2x16xf32>
    %c10 = arith.constant 10 : index
    %c0_157 = arith.constant 0 : index
    %c0_158 = arith.constant 0 : index
    %282 = vector.load %arg7[%c10, %c0_157, %c0_158] : memref<20x16x256xf32, #tpu.memory_space<vmem>>, vector<1x16x256xf32>
    %283 = vector.shape_cast %282 : vector<1x16x256xf32> to vector<16x256xf32>
    %cst_159 = arith.constant dense<0.000000e+00> : vector<2x256xf32>
    %284 = tpu.matmul %281, %283, %cst_159 {dimension_numbers = #tpu.dot_dimension_numbers<[1], [0], [0], [1], [0, 0, 1, 1], [], []>} : vector<2x16xf32>, vector<16x256xf32>, vector<2x256xf32> -> vector<2x256xf32>
    %285 = arith.addf %278, %284 : vector<2x256xf32>
    %286 = vector.extract_strided_slice %105 {offsets = [11, 0], sizes = [1, 16], strides = [1, 1]} : vector<20x16xf32> to vector<1x16xf32>
    %287 = vector.extract_strided_slice %209 {offsets = [11, 0], sizes = [1, 16], strides = [1, 1]} : vector<20x16xf32> to vector<1x16xf32>
    %288 = tpu.concatenate %286, %287 in 0 : vector<1x16xf32>, vector<1x16xf32> -> vector<2x16xf32>
    %c11 = arith.constant 11 : index
    %c0_160 = arith.constant 0 : index
    %c0_161 = arith.constant 0 : index
    %289 = vector.load %arg7[%c11, %c0_160, %c0_161] : memref<20x16x256xf32, #tpu.memory_space<vmem>>, vector<1x16x256xf32>
    %290 = vector.shape_cast %289 : vector<1x16x256xf32> to vector<16x256xf32>
    %cst_162 = arith.constant dense<0.000000e+00> : vector<2x256xf32>
    %291 = tpu.matmul %288, %290, %cst_162 {dimension_numbers = #tpu.dot_dimension_numbers<[1], [0], [0], [1], [0, 0, 1, 1], [], []>} : vector<2x16xf32>, vector<16x256xf32>, vector<2x256xf32> -> vector<2x256xf32>
    %292 = arith.addf %285, %291 : vector<2x256xf32>
    %293 = vector.extract_strided_slice %105 {offsets = [12, 0], sizes = [1, 16], strides = [1, 1]} : vector<20x16xf32> to vector<1x16xf32>
    %294 = vector.extract_strided_slice %209 {offsets = [12, 0], sizes = [1, 16], strides = [1, 1]} : vector<20x16xf32> to vector<1x16xf32>
    %295 = tpu.concatenate %293, %294 in 0 : vector<1x16xf32>, vector<1x16xf32> -> vector<2x16xf32>
    %c12 = arith.constant 12 : index
    %c0_163 = arith.constant 0 : index
    %c0_164 = arith.constant 0 : index
    %296 = vector.load %arg7[%c12, %c0_163, %c0_164] : memref<20x16x256xf32, #tpu.memory_space<vmem>>, vector<1x16x256xf32>
    %297 = vector.shape_cast %296 : vector<1x16x256xf32> to vector<16x256xf32>
    %cst_165 = arith.constant dense<0.000000e+00> : vector<2x256xf32>
    %298 = tpu.matmul %295, %297, %cst_165 {dimension_numbers = #tpu.dot_dimension_numbers<[1], [0], [0], [1], [0, 0, 1, 1], [], []>} : vector<2x16xf32>, vector<16x256xf32>, vector<2x256xf32> -> vector<2x256xf32>
    %299 = arith.addf %292, %298 : vector<2x256xf32>
    %300 = vector.extract_strided_slice %105 {offsets = [13, 0], sizes = [1, 16], strides = [1, 1]} : vector<20x16xf32> to vector<1x16xf32>
    %301 = vector.extract_strided_slice %209 {offsets = [13, 0], sizes = [1, 16], strides = [1, 1]} : vector<20x16xf32> to vector<1x16xf32>
    %302 = tpu.concatenate %300, %301 in 0 : vector<1x16xf32>, vector<1x16xf32> -> vector<2x16xf32>
    %c13 = arith.constant 13 : index
    %c0_166 = arith.constant 0 : index
    %c0_167 = arith.constant 0 : index
    %303 = vector.load %arg7[%c13, %c0_166, %c0_167] : memref<20x16x256xf32, #tpu.memory_space<vmem>>, vector<1x16x256xf32>
    %304 = vector.shape_cast %303 : vector<1x16x256xf32> to vector<16x256xf32>
    %cst_168 = arith.constant dense<0.000000e+00> : vector<2x256xf32>
    %305 = tpu.matmul %302, %304, %cst_168 {dimension_numbers = #tpu.dot_dimension_numbers<[1], [0], [0], [1], [0, 0, 1, 1], [], []>} : vector<2x16xf32>, vector<16x256xf32>, vector<2x256xf32> -> vector<2x256xf32>
    %306 = arith.addf %299, %305 : vector<2x256xf32>
    %307 = vector.extract_strided_slice %105 {offsets = [14, 0], sizes = [1, 16], strides = [1, 1]} : vector<20x16xf32> to vector<1x16xf32>
    %308 = vector.extract_strided_slice %209 {offsets = [14, 0], sizes = [1, 16], strides = [1, 1]} : vector<20x16xf32> to vector<1x16xf32>
    %309 = tpu.concatenate %307, %308 in 0 : vector<1x16xf32>, vector<1x16xf32> -> vector<2x16xf32>
    %c14 = arith.constant 14 : index
    %c0_169 = arith.constant 0 : index
    %c0_170 = arith.constant 0 : index
    %310 = vector.load %arg7[%c14, %c0_169, %c0_170] : memref<20x16x256xf32, #tpu.memory_space<vmem>>, vector<1x16x256xf32>
    %311 = vector.shape_cast %310 : vector<1x16x256xf32> to vector<16x256xf32>
    %cst_171 = arith.constant dense<0.000000e+00> : vector<2x256xf32>
    %312 = tpu.matmul %309, %311, %cst_171 {dimension_numbers = #tpu.dot_dimension_numbers<[1], [0], [0], [1], [0, 0, 1, 1], [], []>} : vector<2x16xf32>, vector<16x256xf32>, vector<2x256xf32> -> vector<2x256xf32>
    %313 = arith.addf %306, %312 : vector<2x256xf32>
    %314 = vector.extract_strided_slice %105 {offsets = [15, 0], sizes = [1, 16], strides = [1, 1]} : vector<20x16xf32> to vector<1x16xf32>
    %315 = vector.extract_strided_slice %209 {offsets = [15, 0], sizes = [1, 16], strides = [1, 1]} : vector<20x16xf32> to vector<1x16xf32>
    %316 = tpu.concatenate %314, %315 in 0 : vector<1x16xf32>, vector<1x16xf32> -> vector<2x16xf32>
    %c15 = arith.constant 15 : index
    %c0_172 = arith.constant 0 : index
    %c0_173 = arith.constant 0 : index
    %317 = vector.load %arg7[%c15, %c0_172, %c0_173] : memref<20x16x256xf32, #tpu.memory_space<vmem>>, vector<1x16x256xf32>
    %318 = vector.shape_cast %317 : vector<1x16x256xf32> to vector<16x256xf32>
    %cst_174 = arith.constant dense<0.000000e+00> : vector<2x256xf32>
    %319 = tpu.matmul %316, %318, %cst_174 {dimension_numbers = #tpu.dot_dimension_numbers<[1], [0], [0], [1], [0, 0, 1, 1], [], []>} : vector<2x16xf32>, vector<16x256xf32>, vector<2x256xf32> -> vector<2x256xf32>
    %320 = arith.addf %313, %319 : vector<2x256xf32>
    %321 = vector.extract_strided_slice %105 {offsets = [16, 0], sizes = [1, 16], strides = [1, 1]} : vector<20x16xf32> to vector<1x16xf32>
    %322 = vector.extract_strided_slice %209 {offsets = [16, 0], sizes = [1, 16], strides = [1, 1]} : vector<20x16xf32> to vector<1x16xf32>
    %323 = tpu.concatenate %321, %322 in 0 : vector<1x16xf32>, vector<1x16xf32> -> vector<2x16xf32>
    %c16 = arith.constant 16 : index
    %c0_175 = arith.constant 0 : index
    %c0_176 = arith.constant 0 : index
    %324 = vector.load %arg7[%c16, %c0_175, %c0_176] : memref<20x16x256xf32, #tpu.memory_space<vmem>>, vector<1x16x256xf32>
    %325 = vector.shape_cast %324 : vector<1x16x256xf32> to vector<16x256xf32>
    %cst_177 = arith.constant dense<0.000000e+00> : vector<2x256xf32>
    %326 = tpu.matmul %323, %325, %cst_177 {dimension_numbers = #tpu.dot_dimension_numbers<[1], [0], [0], [1], [0, 0, 1, 1], [], []>} : vector<2x16xf32>, vector<16x256xf32>, vector<2x256xf32> -> vector<2x256xf32>
    %327 = arith.addf %320, %326 : vector<2x256xf32>
    %328 = vector.extract_strided_slice %105 {offsets = [17, 0], sizes = [1, 16], strides = [1, 1]} : vector<20x16xf32> to vector<1x16xf32>
    %329 = vector.extract_strided_slice %209 {offsets = [17, 0], sizes = [1, 16], strides = [1, 1]} : vector<20x16xf32> to vector<1x16xf32>
    %330 = tpu.concatenate %328, %329 in 0 : vector<1x16xf32>, vector<1x16xf32> -> vector<2x16xf32>
    %c17 = arith.constant 17 : index
    %c0_178 = arith.constant 0 : index
    %c0_179 = arith.constant 0 : index
    %331 = vector.load %arg7[%c17, %c0_178, %c0_179] : memref<20x16x256xf32, #tpu.memory_space<vmem>>, vector<1x16x256xf32>
    %332 = vector.shape_cast %331 : vector<1x16x256xf32> to vector<16x256xf32>
    %cst_180 = arith.constant dense<0.000000e+00> : vector<2x256xf32>
    %333 = tpu.matmul %330, %332, %cst_180 {dimension_numbers = #tpu.dot_dimension_numbers<[1], [0], [0], [1], [0, 0, 1, 1], [], []>} : vector<2x16xf32>, vector<16x256xf32>, vector<2x256xf32> -> vector<2x256xf32>
    %334 = arith.addf %327, %333 : vector<2x256xf32>
    %335 = vector.extract_strided_slice %105 {offsets = [18, 0], sizes = [1, 16], strides = [1, 1]} : vector<20x16xf32> to vector<1x16xf32>
    %336 = vector.extract_strided_slice %209 {offsets = [18, 0], sizes = [1, 16], strides = [1, 1]} : vector<20x16xf32> to vector<1x16xf32>
    %337 = tpu.concatenate %335, %336 in 0 : vector<1x16xf32>, vector<1x16xf32> -> vector<2x16xf32>
    %c18 = arith.constant 18 : index
    %c0_181 = arith.constant 0 : index
    %c0_182 = arith.constant 0 : index
    %338 = vector.load %arg7[%c18, %c0_181, %c0_182] : memref<20x16x256xf32, #tpu.memory_space<vmem>>, vector<1x16x256xf32>
    %339 = vector.shape_cast %338 : vector<1x16x256xf32> to vector<16x256xf32>
    %cst_183 = arith.constant dense<0.000000e+00> : vector<2x256xf32>
    %340 = tpu.matmul %337, %339, %cst_183 {dimension_numbers = #tpu.dot_dimension_numbers<[1], [0], [0], [1], [0, 0, 1, 1], [], []>} : vector<2x16xf32>, vector<16x256xf32>, vector<2x256xf32> -> vector<2x256xf32>
    %341 = arith.addf %334, %340 : vector<2x256xf32>
    %342 = vector.extract_strided_slice %105 {offsets = [19, 0], sizes = [1, 16], strides = [1, 1]} : vector<20x16xf32> to vector<1x16xf32>
    %343 = vector.extract_strided_slice %209 {offsets = [19, 0], sizes = [1, 16], strides = [1, 1]} : vector<20x16xf32> to vector<1x16xf32>
    %344 = tpu.concatenate %342, %343 in 0 : vector<1x16xf32>, vector<1x16xf32> -> vector<2x16xf32>
    %c19 = arith.constant 19 : index
    %c0_184 = arith.constant 0 : index
    %c0_185 = arith.constant 0 : index
    %345 = vector.load %arg7[%c19, %c0_184, %c0_185] : memref<20x16x256xf32, #tpu.memory_space<vmem>>, vector<1x16x256xf32>
    %346 = vector.shape_cast %345 : vector<1x16x256xf32> to vector<16x256xf32>
    %cst_186 = arith.constant dense<0.000000e+00> : vector<2x256xf32>
    %347 = tpu.matmul %344, %346, %cst_186 {dimension_numbers = #tpu.dot_dimension_numbers<[1], [0], [0], [1], [0, 0, 1, 1], [], []>} : vector<2x16xf32>, vector<16x256xf32>, vector<2x256xf32> -> vector<2x256xf32>
    %348 = arith.addf %341, %347 : vector<2x256xf32>
    %c0_187 = arith.constant 0 : index
    %c0_188 = arith.constant 0 : index
    %349 = vector.load %arg8[%c0_187, %c0_188] : memref<1x256xf32, #tpu.memory_space<vmem>>, vector<1x256xf32>
    %350 = vector.broadcast %349 : vector<1x256xf32> to vector<2x256xf32>
    %351 = arith.addf %348, %350 : vector<2x256xf32>
    %cst_189 = arith.constant 0.000000e+00 : f32
    %352 = vector.broadcast %cst_189 : f32 to vector<2x256xf32>
    %353 = arith.maximumf %351, %352 : vector<2x256xf32>
    %c0_190 = arith.constant 0 : index
    %c0_191 = arith.constant 0 : index
    %354 = vector.load %arg9[%c0_190, %c0_191] : memref<256x4xf32, #tpu.memory_space<vmem>>, vector<256x4xf32>
    %cst_192 = arith.constant dense<0.000000e+00> : vector<2x4xf32>
    %355 = tpu.matmul %353, %354, %cst_192 {dimension_numbers = #tpu.dot_dimension_numbers<[1], [0], [0], [1], [0, 0, 1, 1], [], []>} : vector<2x256xf32>, vector<256x4xf32>, vector<2x4xf32> -> vector<2x4xf32>
    %c0_193 = arith.constant 0 : index
    %c0_194 = arith.constant 0 : index
    %356 = vector.load %arg10[%c0_193, %c0_194] : memref<1x4xf32, #tpu.memory_space<vmem>>, vector<1x4xf32>
    %357 = vector.broadcast %356 : vector<1x4xf32> to vector<2x4xf32>
    %358 = arith.addf %355, %357 : vector<2x4xf32>
    %c0_195 = arith.constant 0 : index
    %c0_196 = arith.constant 0 : index
    %359 = vector.load %arg11[%c0_195, %c0_196] : memref<256x4xf32, #tpu.memory_space<vmem>>, vector<256x4xf32>
    %cst_197 = arith.constant dense<0.000000e+00> : vector<2x4xf32>
    %360 = tpu.matmul %353, %359, %cst_197 {dimension_numbers = #tpu.dot_dimension_numbers<[1], [0], [0], [1], [0, 0, 1, 1], [], []>} : vector<2x256xf32>, vector<256x4xf32>, vector<2x4xf32> -> vector<2x4xf32>
    %c0_198 = arith.constant 0 : index
    %c0_199 = arith.constant 0 : index
    %361 = vector.load %arg12[%c0_198, %c0_199] : memref<1x4xf32, #tpu.memory_space<vmem>>, vector<1x4xf32>
    %362 = vector.broadcast %361 : vector<1x4xf32> to vector<2x4xf32>
    %363 = arith.addf %360, %362 : vector<2x4xf32>
    %cst_200 = arith.constant dense<0xFF800000> : vector<2xf32>
    %364 = vector.multi_reduction <maximumf>, %363, %cst_200 [1] : vector<2x4xf32> to vector<2xf32>
    %365 = vector.shape_cast %364 : vector<2xf32> to vector<2x1xf32>
    %366 = vector.broadcast %365 : vector<2x1xf32> to vector<2x4xf32>
    %367 = arith.subf %363, %366 : vector<2x4xf32>
    %368 = math.exp %367 : vector<2x4xf32>
    %cst_201 = arith.constant dense<0.000000e+00> : vector<2xf32>
    %369 = vector.multi_reduction <add>, %368, %cst_201 [1] : vector<2x4xf32> to vector<2xf32>
    %370 = vector.shape_cast %369 : vector<2xf32> to vector<2x1xf32>
    %371 = math.log %370 : vector<2x1xf32>
    %372 = vector.broadcast %371 : vector<2x1xf32> to vector<2x4xf32>
    %373 = arith.subf %367, %372 : vector<2x4xf32>
    %c0_202 = arith.constant 0 : index
    %c0_203 = arith.constant 0 : index
    %c0_204 = arith.constant 0 : index
    %374 = vector.load %arg13[%c0_202, %c0_203, %c0_204] : memref<1x2x8xf32, #tpu.memory_space<vmem>>, vector<1x2x4xf32>
    %375 = vector.shape_cast %374 : vector<1x2x4xf32> to vector<2x4xf32>
    %376 = vector.shape_cast %358 : vector<2x4xf32> to vector<1x2x4xf32>
    tpu.vector_store %arg13[%c0_202, %c0_203, %c0_204], %376 {strides = array<i32>} : memref<1x2x8xf32, #tpu.memory_space<vmem>>, vector<1x2x4xf32>,
    %c0_205 = arith.constant 0 : index
    %c0_206 = arith.constant 0 : index
    %c4_207 = arith.constant 4 : index
    %377 = vector.load %arg13[%c0_205, %c0_206, %c4_207] : memref<1x2x8xf32, #tpu.memory_space<vmem>>, vector<1x2x4xf32>
    %378 = vector.shape_cast %377 : vector<1x2x4xf32> to vector<2x4xf32>
    %379 = vector.shape_cast %373 : vector<2x4xf32> to vector<1x2x4xf32>
    tpu.vector_store %arg13[%c0_205, %c0_206, %c4_207], %379 {strides = array<i32>} : memref<1x2x8xf32, #tpu.memory_space<vmem>>, vector<1x2x4xf32>,
    return
  }
  func.func @transform_0(%arg0: i32) -> (i32, i32, i32) {
    %c0_i32 = arith.constant 0 : i32
    %c0_i32_0 = arith.constant 0 : i32
    %c0_i32_1 = arith.constant 0 : i32
    return %arg0, %c0_i32, %c0_i32_0 : i32, i32, i32
  }
  func.func @transform_1(%arg0: i32) -> (i32, i32) {
    %c0_i32 = arith.constant 0 : i32
    %c0_i32_0 = arith.constant 0 : i32
    %c0_i32_1 = arith.constant 0 : i32
    return %c0_i32, %c0_i32_0 : i32, i32
  }
  func.func @transform_2(%arg0: i32) -> (i32, i32, i32) {
    %c0_i32 = arith.constant 0 : i32
    %c0_i32_0 = arith.constant 0 : i32
    %c0_i32_1 = arith.constant 0 : i32
    %c0_i32_2 = arith.constant 0 : i32
    return %c0_i32, %c0_i32_0, %c0_i32_1 : i32, i32, i32
  }
  func.func @transform_3(%arg0: i32) -> (i32, i32) {
    %c0_i32 = arith.constant 0 : i32
    %c0_i32_0 = arith.constant 0 : i32
    %c0_i32_1 = arith.constant 0 : i32
    return %c0_i32, %c0_i32_0 : i32, i32
  }
  func.func @transform_4(%arg0: i32) -> (i32, i32, i32) {
    %c0_i32 = arith.constant 0 : i32
    %c0_i32_0 = arith.constant 0 : i32
    %c0_i32_1 = arith.constant 0 : i32
    %c0_i32_2 = arith.constant 0 : i32
    return %c0_i32, %c0_i32_0, %c0_i32_1 : i32, i32, i32
  }
  func.func @transform_5(%arg0: i32) -> (i32, i32) {
    %c0_i32 = arith.constant 0 : i32
    %c0_i32_0 = arith.constant 0 : i32
    %c0_i32_1 = arith.constant 0 : i32
    return %c0_i32, %c0_i32_0 : i32, i32
  }
  func.func @transform_6(%arg0: i32) -> (i32, i32, i32) {
    %c0_i32 = arith.constant 0 : i32
    %c0_i32_0 = arith.constant 0 : i32
    %c0_i32_1 = arith.constant 0 : i32
    %c0_i32_2 = arith.constant 0 : i32
    return %c0_i32, %c0_i32_0, %c0_i32_1 : i32, i32, i32
  }
  func.func @transform_7(%arg0: i32) -> (i32, i32) {
    %c0_i32 = arith.constant 0 : i32
    %c0_i32_0 = arith.constant 0 : i32
    %c0_i32_1 = arith.constant 0 : i32
    return %c0_i32, %c0_i32_0 : i32, i32
  }
  func.func @transform_8(%arg0: i32) -> (i32, i32) {
    %c0_i32 = arith.constant 0 : i32
    %c0_i32_0 = arith.constant 0 : i32
    %c0_i32_1 = arith.constant 0 : i32
    return %c0_i32, %c0_i32_0 : i32, i32
  }
  func.func @transform_9(%arg0: i32) -> (i32, i32) {
    %c0_i32 = arith.constant 0 : i32
    %c0_i32_0 = arith.constant 0 : i32
    %c0_i32_1 = arith.constant 0 : i32
    return %c0_i32, %c0_i32_0 : i32, i32
  }
  func.func @transform_10(%arg0: i32) -> (i32, i32) {
    %c0_i32 = arith.constant 0 : i32
    %c0_i32_0 = arith.constant 0 : i32
    %c0_i32_1 = arith.constant 0 : i32
    return %c0_i32, %c0_i32_0 : i32, i32
  }
  func.func @transform_11(%arg0: i32) -> (i32, i32) {
    %c0_i32 = arith.constant 0 : i32
    %c0_i32_0 = arith.constant 0 : i32
    %c0_i32_1 = arith.constant 0 : i32
    return %c0_i32, %c0_i32_0 : i32, i32
  }
  func.func @transform_12(%arg0: i32) -> (i32, i32, i32) {
    %c0_i32 = arith.constant 0 : i32
    %c0_i32_0 = arith.constant 0 : i32
    %c0_i32_1 = arith.constant 0 : i32
    return %arg0, %c0_i32, %c0_i32_0 : i32, i32, i32
  }
}

</mosaic_0001>

<bundles_post_ra>
// kernel: cnn_forward.1
= control target key start
LH: loop header
LB: loop body
LE: loop exit
PB: predicated region body
PF: predicated region fallthrough
CT: control target
= control target key end

     0   :  { %s11346_s0 = inlined_call_operand.vmem [shape: s32[4,64,1], index: 0, kind: input, shape index: {}]   ;;  %s11347_s1 = inlined_call_operand.hbm [shape: f32[50,8], index: 1, kind: input, shape index: {}]   ;;  %s11348_s2 = inlined_call_operand.hbm [shape: f32[5,8,8], index: 2, kind: input, shape index: {}]   ;;  %s11349_s3 = inlined_call_operand.hbm [shape: f32[3,8], index: 3, kind: input, shape index: {}]   ;;  %s11350_s4 = inlined_call_operand.vmem [shape: f32[5,8,16], index: 4, kind: input, shape index: {}]   ;;  %s11351_s5 = inlined_call_operand.hbm [shape: f32[3,16], index: 5, kind: input, shape index: {}]   ;;  %s11352_s6 = inlined_call_operand.hbm [shape: f32[20,16,256], index: 6, kind: input, shape index: {}]   ;;  %s11353_s7 = inlined_call_operand.hbm [shape: f32[1,256], index: 7, kind: input, shape index: {}]   ;;  %s11354_s8 = inlined_call_operand.hbm [shape: f32[256,4], index: 8, kind: input, shape index: {}]   ;;  %s11355_s9 = inlined_call_operand.hbm [shape: f32[1,4], index: 9, kind: input, shape index: {}]   ;;  %s11356_s10 = inlined_call_operand.vmem [shape: f32[256,4], index: 10, kind: input, shape index: {}]   ;;  %s11357_s11 = inlined_call_operand.vmem [shape: f32[1,4], index: 11, kind: input, shape index: {}]   ;;  %s11358_s12 = inlined_call_operand.vmem [shape: f32[2,2,8], index: 12, kind: output, shape index: {}]  }
   0x1   :  { %11364 = sst [smem:[#allocation21_spill]] %s11347_s1 }
   0x2   :  { %11365 = sst [smem:[#allocation22_spill]] %s11357_s11 }
   0x3   :  { %17 = vsyncpa [#allocation3], 0 }
   0x4   :  { %18 = vsyncpa [#allocation5], 0 }
   0x5   :  { %19 = vsyncpa [#allocation8], 0 }
   0x6   :  { %20 = vsyncpa [#allocation11], 0 }
   0x7   :  { %21 = vsyncpa [#allocation14], 0  ;;  %s9246_s21 = smov 0  }
   0x8 LB: > { %11366 = sst [smem:[#allocation20_spill]] %s9162_s21  ;;  %s9252_s22 = sadd.s32 4294967295, %s9162_s21   ;;  %s9162_s21 = sphi %s9246_s21, %s27_s21  }
   0x9   : > { %p7797_p0 = scmp.ge.s32.totalorder %s9162_s21, 1  ;;  %p315_p1 = scmp.lt.s32.totalorder %s9162_s21, 3 }
   0xa   : > { %p11360_p2 = scmp.eq.s32.totalorder %s9252_s22, 0  ;;  %s9164_s24 = smov [#allocation4]  }
   0xb   : > { %p9257_p3 = pnand %p7797_p0, %p315_p1  ;;  %s340_s25 = sshll.u32 %s9164_s24, 4  ;;  %s9261_s25 = int_to_ptr.vmem [resolvable:$true] %s340_s25 }
   0xc   : > { %s9165_s26 = smov [#allocation7]   ;;  %s9166_s29 = smov [#allocation10]  }
   0xd   : > { %s11367_s23 = scalar_select %p9257_p3, 1, 0 }
   0xe   : > { %p8831_p4 = pneg %p9257_p3  ;;  %s368_s27 = sshll.u32 %s9165_s26, 4  ;;  %s9265_s27 = int_to_ptr.vmem [resolvable:$true] %s368_s27 }
   0xf   : > { %s392_s30 = sshll.u32 %s9166_s29, 4  ;;  %s9167_s13 = smov [#allocation2]   ;;  %s9273_s30 = int_to_ptr.vmem [resolvable:$true] %s392_s30 }
  0x10   : > { %p9269_p5 = pnand %p11360_p2, %p8831_p4  ;;  %s9275_s14 = sshll.u32 %s9167_s13, 4  ;;  %s328_s14 = int_to_ptr.vmem [resolvable:$true] %s9275_s14 }
  0x11   : > { %s8912_s17 = scalar_lea.hbm %s11348_s2, 640 }
  0x12   : > { %p8913_p6 = scmp.ne.s32.totalorder %s11348_s2, %s8912_s17  ;;  %p9285_p7 = pneg %p9269_p5 }
  0x13   : > { %p8919_p10 = scmp.lt.u32.totalorder %s8912_s17, %s11348_s2 }
  0x14   : > { %p8915_p8 = pnand %p9285_p7, %p8913_p6 }
  0x16   : > { %p8916_p9 = pneg %p8915_p8 }
  0x18   : > { %p8921_p11 = pnand %p8919_p10, %p8916_p9 }
  0x1a   : > { %8924 = shalt.err (!%p8921_p11)
}
  0x1b   : > { %s8925_s29 = scalar_lea.vmem %s9261_s25, 640  ;;  %p8933_p1 = scmp.lt.s32.totalorder %s9261_s25, %s9261_s25 }
  0x1c   : > { %p8926_p12 = scmp.ne.s32.totalorder %s9261_s25, %s8925_s29  ;;  %p8934_p4 = scmp.lt.s32.totalorder %s8925_s29, %s8925_s29 }
  0x1e   : > { %p8928_p13 = pnand %p8926_p12, %p9285_p7  ;;  %p8935_p6 = por %p8934_p4, %p8933_p1 }
  0x20   : > { %p8929_p0 = pneg %p8928_p13 }
  0x22   : > { %p8936_p8 = pnand %p8935_p6, %p8929_p0 }
  0x24   : > { %8939 = shalt.err (!%p8936_p8)
}
  0x25   : > { %s11362_s13 = smov 128   ;;  %s11363_s15 = smov 8  }
  0x26   : > { %8837 = dma.hbm_to_vmem [thread:$0]  (!%p9269_p5), %s11348_s2, 640, %s9261_s25, [#allocation5], %s11362_s13, %s11362_s13, %s11363_s15  }
  0x27   : > { %s8940_s24 = scalar_lea.hbm %s11351_s5, 64 }
  0x28   : > { %p8941_p9 = scmp.ne.s32.totalorder %s11351_s5, %s8940_s24  ;;  %p8947_p12 = scmp.lt.u32.totalorder %s8940_s24, %s11351_s5 }
  0x2a   : > { %p8943_p10 = pnand %p8941_p9, %p9285_p7 }
  0x2c   : > { %p8944_p11 = pneg %p8943_p10 }
  0x2e   : > { %p8949_p13 = pnand %p8947_p12, %p8944_p11 }
  0x30   : > { %8952 = shalt.err (!%p8949_p13)
}
  0x31   : > { %s8953_s25 = scalar_lea.vmem %s9265_s27, 64  ;;  %p8961_p6 = scmp.lt.s32.totalorder %s9265_s27, %s9265_s27 }
  0x32   : > { %p8954_p0 = scmp.ne.s32.totalorder %s9265_s27, %s8953_s25  ;;  %p8962_p8 = scmp.lt.s32.totalorder %s8953_s25, %s8953_s25 }
  0x34   : > { %p8956_p1 = pnand %p8954_p0, %p9285_p7  ;;  %p8963_p9 = por %p8962_p8, %p8961_p6 }
  0x36   : > { %p8957_p4 = pneg %p8956_p1 }
  0x38   : > { %p8964_p10 = pnand %p8963_p9, %p8957_p4 }
  0x3a   : > { %8967 = shalt.err (!%p8964_p10)
}
  0x3b   : > { %8843 = dma.hbm_to_vmem [thread:$0]  (!%p9269_p5), %s11351_s5, 64, %s9265_s27, [#allocation8]  }
  0x3c   : > { %s8968_s18 = scalar_lea.hbm %s11353_s7, 32 }
  0x3d   : > { %p8969_p11 = scmp.ne.s32.totalorder %s11353_s7, %s8968_s18  ;;  %p8975_p0 = scmp.lt.u32.totalorder %s8968_s18, %s11353_s7 }
  0x3f   : > { %p8971_p12 = pnand %p8969_p11, %p9285_p7 }
  0x41   : > { %p8972_p13 = pneg %p8971_p12 }
  0x43   : > { %p8977_p1 = pnand %p8975_p0, %p8972_p13 }
  0x45   : > { %8980 = shalt.err (!%p8977_p1)
}
  0x46   : > { %s8981_s27 = scalar_lea.vmem %s9273_s30, 32  ;;  %p8989_p9 = scmp.lt.s32.totalorder %s9273_s30, %s9273_s30 }
  0x47   : > { %p8982_p4 = scmp.ne.s32.totalorder %s9273_s30, %s8981_s27  ;;  %p8990_p10 = scmp.lt.s32.totalorder %s8981_s27, %s8981_s27 }
  0x49   : > { %p8984_p6 = pnand %p8982_p4, %p9285_p7  ;;  %p8991_p11 = por %p8990_p10, %p8989_p9 }
  0x4b   : > { %p8985_p8 = pneg %p8984_p6 }
  0x4d   : > { %p8992_p12 = pnand %p8991_p11, %p8985_p8 }
  0x4f   : > { %8995 = shalt.err (!%p8992_p12)
}
  0x50   : > { %8849 = dma.hbm_to_vmem [thread:$0]  (!%p9269_p5), %s11353_s7, 32, %s9273_s30, [#allocation11]  }
  0x51   : > { %s11370_s1 = sld [smem:[#allocation21_spill]] }
  0x57   : > { %s8996_s17 = scalar_lea.hbm %s11370_s1, 896 }
  0x58   : > { %p8997_p13 = scmp.ne.s32.totalorder %s11370_s1, %s8996_s17  ;;  %p9003_p4 = scmp.lt.u32.totalorder %s8996_s17, %s11370_s1 }
  0x5a   : > { %p8999_p0 = pnand %p8997_p13, %p9285_p7 }
  0x5c   : > { %p9000_p1 = pneg %p8999_p0 }
  0x5e   : > { %p9005_p6 = pnand %p9003_p4, %p9000_p1 }
  0x60   : > { %9008 = shalt.err (!%p9005_p6)
}
  0x61   : > { %s9009_s29 = scalar_lea.vmem %s328_s14, 896  ;;  %p9017_p11 = scmp.lt.s32.totalorder %s328_s14, %s328_s14 }
  0x62   : > { %p9010_p8 = scmp.ne.s32.totalorder %s328_s14, %s9009_s29  ;;  %p9018_p12 = scmp.lt.s32.totalorder %s9009_s29, %s9009_s29 }
  0x64   : > { %p9012_p9 = pnand %p9010_p8, %p9285_p7  ;;  %p9019_p2 = por %p9018_p12, %p9017_p11 }
  0x66   : > { %p9013_p10 = pneg %p9012_p9 }
  0x68   : > { %p9020_p3 = pnand %p9019_p2, %p9013_p10 }
  0x6a   : > { %9023 = shalt.err (!%p9020_p3)
}
  0x6b   : > { %8834 = dma.hbm_to_vmem [thread:$0]  (!%p9269_p5), %s11370_s1, 896, %s328_s14, [#allocation3], %s11362_s13, %s11362_s13, %s11363_s15  }
  0x6c   : > { %s9170_s25 = smov [#allocation6]   ;;  %s9171_s21 = smov [#allocation9]  }
  0x6d   : > { %s354_s11 = sshll.u32 %s9170_s25, 4  ;;  %s378_s16 = sshll.u32 %s9171_s21, 4  ;;  %s355_s11 = int_to_ptr.vmem [resolvable:$true] %s354_s11  ;;  %s379_s16 = int_to_ptr.vmem [resolvable:$true] %s378_s16 }
  0x6e   : > { %s9024_s19 = scalar_lea.hbm %s11349_s3, 64 }
  0x6f   : > { %p9025_p2 = scmp.ne.s32.totalorder %s11349_s3, %s9024_s19  ;;  %p9031_p0 = scmp.lt.u32.totalorder %s9024_s19, %s11349_s3 }
  0x71   : > { %p9027_p3 = pnand %p9025_p2, %p9285_p7 }
  0x73   : > { %p9028_p13 = pneg %p9027_p3 }
  0x75   : > { %p9033_p1 = pnand %p9031_p0, %p9028_p13 }
  0x77   : > { %9036 = shalt.err (!%p9033_p1)
}
  0x78   : > { %s9037_s14 = scalar_lea.vmem %s355_s11, 64  ;;  %p9045_p9 = scmp.lt.s32.totalorder %s355_s11, %s355_s11 }
  0x79   : > { %p9038_p4 = scmp.ne.s32.totalorder %s355_s11, %s9037_s14  ;;  %p9046_p10 = scmp.lt.s32.totalorder %s9037_s14, %s9037_s14 }
  0x7b   : > { %p9040_p6 = pnand %p9038_p4, %p9285_p7  ;;  %p9047_p11 = por %p9046_p10, %p9045_p9 }
  0x7d   : > { %p9041_p8 = pneg %p9040_p6 }
  0x7f   : > { %p9048_p12 = pnand %p9047_p11, %p9041_p8 }
  0x81   : > { %9051 = shalt.err (!%p9048_p12)
}
  0x82   : > { %8840 = dma.hbm_to_vmem [thread:$0]  (!%p9269_p5), %s11349_s3, 64, %s355_s11, [#allocation5]  }
  0x83   : > { %s9052_s18 = scalar_lea.hbm %s11352_s6, 10240 }
  0x84   : > { %p9053_p2 = scmp.ne.s32.totalorder %s11352_s6, %s9052_s18  ;;  %p9059_p0 = scmp.lt.u32.totalorder %s9052_s18, %s11352_s6 }
  0x86   : > { %p9055_p3 = pnand %p9053_p2, %p9285_p7 }
  0x88   : > { %p9056_p13 = pneg %p9055_p3 }
  0x8a   : > { %p9061_p1 = pnand %p9059_p0, %p9056_p13 }
  0x8c   : > { %9064 = shalt.err (!%p9061_p1)
}
  0x8d   : > { %s9065_s30 = scalar_lea.vmem %s379_s16, 10240  ;;  %p9073_p9 = scmp.lt.s32.totalorder %s379_s16, %s379_s16 }
  0x8e   : > { %p9066_p4 = scmp.ne.s32.totalorder %s379_s16, %s9065_s30  ;;  %p9074_p10 = scmp.lt.s32.totalorder %s9065_s30, %s9065_s30 }
  0x90   : > { %p9068_p6 = pnand %p9066_p4, %p9285_p7  ;;  %p9075_p11 = por %p9074_p10, %p9073_p9 }
  0x92   : > { %p9069_p8 = pneg %p9068_p6 }
  0x94   : > { %p9076_p12 = pnand %p9075_p11, %p9069_p8 }
  0x96   : > { %9079 = shalt.err (!%p9076_p12)
}
  0x97   : > { %s9172_s11 = smov 256   ;;  %s9173_s14 = smov 16  }
  0x98   : > { %8846 = dma.hbm_to_vmem [thread:$0]  (!%p9269_p5), %s11352_s6, 10240, %s379_s16, [#allocation8], %s9172_s11, %s9172_s11, %s9173_s14  }
  0x99   : > { %s9174_s21 = smov [#allocation12]   ;;  %s9175_s18 = smov [#allocation13]  }
  0x9a   : > { %s402_s17 = sshll.u32 %s9174_s21, 4  ;;  %s416_s19 = sshll.u32 %s9175_s18, 4  ;;  %s403_s17 = int_to_ptr.vmem [resolvable:$true] %s402_s17  ;;  %s417_s19 = int_to_ptr.vmem [resolvable:$true] %s416_s19 }
  0x9b   : > { %s9080_s29 = scalar_lea.hbm %s11354_s8, 4096 }
  0x9c   : > { %p9081_p2 = scmp.ne.s32.totalorder %s11354_s8, %s9080_s29  ;;  %p9087_p0 = scmp.lt.u32.totalorder %s9080_s29, %s11354_s8 }
  0x9e   : > { %p9083_p3 = pnand %p9081_p2, %p9285_p7 }
  0xa0   : > { %p9084_p13 = pneg %p9083_p3 }
  0xa2   : > { %p9089_p1 = pnand %p9087_p0, %p9084_p13 }
  0xa4   : > { %9092 = shalt.err (!%p9089_p1)
}
  0xa5   : > { %s9093_s16 = scalar_lea.vmem %s403_s17, 4096  ;;  %p9101_p9 = scmp.lt.s32.totalorder %s403_s17, %s403_s17 }
  0xa6   : > { %p9094_p4 = scmp.ne.s32.totalorder %s403_s17, %s9093_s16  ;;  %p9102_p10 = scmp.lt.s32.totalorder %s9093_s16, %s9093_s16 }
  0xa8   : > { %p9096_p6 = pnand %p9094_p4, %p9285_p7  ;;  %p9103_p11 = por %p9102_p10, %p9101_p9 }
  0xaa   : > { %p9097_p8 = pneg %p9096_p6 }
  0xac   : > { %p9104_p12 = pnand %p9103_p11, %p9097_p8 }
  0xae   : > { %9107 = shalt.err (!%p9104_p12)
}
  0xaf   : > { %s11371_s13 = smov 8   ;;  %s11372_s11 = smov 128  }
  0xb0   : > { %8852 = dma.hbm_to_vmem [thread:$0]  (!%p9269_p5), %s11354_s8, 4096, %s403_s17, [#allocation11], %s11372_s11, %s11372_s11, %s11371_s13  }
  0xb1   : > { %s9108_s25 = scalar_lea.hbm %s11355_s9, 16 }
  0xb2   : > { %p9109_p2 = scmp.ne.s32.totalorder %s11355_s9, %s9108_s25  ;;  %p9115_p0 = scmp.lt.u32.totalorder %s9108_s25, %s11355_s9 }
  0xb4   : > { %p9111_p3 = pnand %p9109_p2, %p9285_p7 }
  0xb6   : > { %p9112_p13 = pneg %p9111_p3 }
  0xb8   : > { %p9117_p1 = pnand %p9115_p0, %p9112_p13 }
  0xba   : > { %9120 = shalt.err (!%p9117_p1)
}
  0xbb   : > { %s9121_s29 = scalar_lea.vmem %s417_s19, 16  ;;  %s9128_s17 = scalar_lea.vmem %s417_s19, 32 }
  0xbc   : > { %p9122_p4 = scmp.ne.s32.totalorder %s417_s19, %s9121_s29  ;;  %p9129_p9 = scmp.lt.s32.totalorder %s417_s19, %s417_s19 }
  0xbd   : > { %p9130_p10 = scmp.lt.s32.totalorder %s9128_s17, %s9121_s29 }
  0xbe   : > { %p9124_p6 = pnand %p9122_p4, %p9285_p7 }
  0xbf   : > { %p9131_p11 = por %p9130_p10, %p9129_p9 }
  0xc0   : > { %p9125_p8 = pneg %p9124_p6 }
  0xc2   : > { %p9132_p12 = pnand %p9131_p11, %p9125_p8 }
  0xc4   : > { %9135 = shalt.err (!%p9132_p12)
}
  0xc5   : > { %8855 = dma.hbm_to_vmem [thread:$0]  (!%p9269_p5), %s11355_s9, 16, %s417_s19, [#allocation14]  }
  0xc6   : > { %p11373_p2 = scmp.ne.s32.totalorder %s11367_s23, 0 }
  0xc7   : > { %p11374_p3 = scmp.eq.s32.totalorder (!%p11373_p2), %s9252_s22, 0 }
  0xc8   : > { %445 = sbr.rel (%p11373_p2) target bundleno = 2725 (0xaa5), region = 68 }
  0xcf   : > { %9141 = dma.done.wait (%p11374_p3), [#allocation3], 896   ;;  %p11375_p7 = pmov %p11374_p3 }
  0xd0   : > { %p11376_p13 = pmov %p11374_p3 }
  0xd1   : > { %9143 = vsyncadd (%p11375_p7), [#allocation3], 4294966400 }
  0xd2   : > { %9145 = dma.done.wait (%p11376_p13), [#allocation5], 704   ;;  %p11377_p0 = pmov %p11374_p3 }
  0xd4   : > { %9147 = vsyncadd (%p11377_p0), [#allocation5], 4294966592  ;;  %p11378_p1 = pmov %p11377_p0 }
  0xd5   : > { %p11379_p5 = pmov %p11377_p0 }
  0xd6   : > { %9149 = dma.done.wait (%p11378_p1), [#allocation8], 10304  }
  0xd7   : > { %9151 = vsyncadd (%p11379_p5), [#allocation8], 4294956992  ;;  %p11380_p4 = pmov %p11377_p0 }
  0xd8   : > { %p11381_p6 = pmov %p11377_p0 }
  0xd9   : > { %9153 = dma.done.wait (%p11380_p4), [#allocation11], 4128  }
  0xda   : > { %9155 = vsyncadd (%p11381_p6), [#allocation11], 4294963168  ;;  %p11382_p8 = pmov %p11377_p0 }
  0xdb   : > { %p11383_p9 = pmov %p11377_p0 }
  0xdc   : > { %9157 = dma.done.wait (%p11382_p8), [#allocation14], 16  }
  0xdd   : > { %9159 = vsyncadd (%p11383_p9), [#allocation14], 4294967280  ;;  %s7816_s23 = sshll.u32 %s9252_s22, 1  ;;  %v9176_v0 = vmov 0   ;;  %v526_v6 = vld [vmem:[#allocation2] sm:$0xff]  ;;  %v527_v7 = vld [vmem:[#allocation2 + $0x8] sm:$0xff]  ;;  %v533_v27 = vlaneseq }
  0xde   : > { %8898 = vset.pattern.permute.xlu1 %v9176_v0  ;;  %8897 = vset.pattern.permute.xlu0 %v9176_v0  ;;  %p516_p10 = scmp.lt.s32.totalorder %s7816_s23, 3  ;;  %v9486_v9 = vpack.c.bf16 %v527_v7, %v526_v6  ;;  %v528_v10 = vld [vmem:[#allocation2 + $0x10] sm:$0xff]  ;;  %v529_v11 = vld [vmem:[#allocation2 + $0x18] sm:$0xff]  ;;  %v530_v13 = vld [vmem:[#allocation2 + $0x20] sm:$0xff]  ;;  %vm608_vm0 = vcmask 1041408   ;;  %vm583_vm1 = vcmask 408576  }
  0xdf   : > { %v9488_v12 = vpack.c.bf16 %v529_v11, %v528_v10  ;;  %v531_v14 = vld [vmem:[#allocation2 + $0x28] sm:$0xff]  ;;  %v9501_v20 = vld [vmem:[#allocation2 + $0x30] sm:$0x3]  ;;  %v9515_v28 = vand.u32 127, %v533_v27  ;;  %v9177_v31 = vmov 0.0   ;;  %v762_v46 = vld [vmem:[#allocation4 + $0x8] sm:$0xff] }
  0xe0   : > { %s11387_s23 = smov (!%p516_p10, %s7816_s23), 3  ;;  %8528 = vmatprep.subr.bf16.mxu0 %v9486_v9  ;;  %v9495_v17 = vpack.c.bf16 %v531_v14, %v530_v13  ;;  %8695 = vmatprep.subr.mxu1 %v762_v46  ;;  %v9542_v47 = vld [vmem:[#allocation4] sm:$0xff]  ;;  %vm743_vm10 = vcmask 1040384   ;;  %vm1139_vm11 = vcmask 1046528   ;;  %vm763_vm12 = vcmask 64512   ;;  %p522_p11 = scmp.lt.s32.totalorder %s9252_s22, 1 }
  0xe1   : > { %s7994_s28 = sshll.u32 %s11387_s23, 6  ;;  %8530 = vmatpush3.bf16.msra.mxu0 %v9486_v9  ;;  %8696 = vmatpush3.msra.mxu1 %v762_v46  ;;  %vm1289_vm13 = vcmask 1045504   ;;  %s11384_s30 = sld [smem:[#allocation22_spill]] }
  0xe2   : > { %s9478_s13 = scalar_lea.vmem %s11346_s0, %s7994_s28  ;;  %8532 = vmatprep.subr.bf16.mxu0 %v9488_v12  ;;  %8265 = vmatprep.subr.mxu1 %v9542_v47  ;;  %s11389_s22 = smov (!%p522_p11, %s9252_s22), 1 }
  0xe3   : > { %v537_v1 = vld [vmem:[%s9478_s13 + $0x10] sm:$0xff]  ;;  %v535_v2 = vld [vmem:[%s9478_s13] sm:$0xff]  ;;  %v538_v3 = vld [vmem:[%s9478_s13 + $0x18] sm:$0xff]  ;;  %s7819_s21 = sshll.u32 %s11389_s22, 1  ;;  %s9180_s22 = smov 4  }
  0xe4   : > { %550 = vperm.xlu1 %8898, %v537_v1   ;;  %544 = vperm.xlu0 %8897, %v535_v2   ;;  %v536_v4 = vld [vmem:[%s9478_s13 + $0x8] sm:$0xff]  ;;  %v539_v8 = vld [vmem:[%s9478_s13 + $0x20] sm:$0xff]  ;;  %v542_v15 = vld [vmem:[%s9478_s13 + $0x38] sm:$0xff]  ;;  %s525_s26 = scalar_lea.vmem %s11358_s12, %s7819_s21 }
  0xe5   : > { %v540_v5 = vld [vmem:[%s9478_s13 + $0x28] sm:$0xff]  ;;  %v541_v16 = vld [vmem:[%s9478_s13 + $0x30] sm:$0xff]  ;;  %v7893_v19 = vld [vmem:[%s9478_s13 + $0x40] sm:$0xff]  ;;  %8534 = vmatpush3.bf16.msra.mxu0 %v9488_v12 }
  0xe6   : > { %v7894_v18 = vld [vmem:[%s9478_s13 + $0x48] sm:$0xff]  ;;  %8536 = vmatprep.subr.bf16.mxu0 %v9495_v17  ;;  %v7896_v21 = vld [vmem:[%s9478_s13 + $0x58] sm:$0xff]  ;;  %v7895_v22 = vld [vmem:[%s9478_s13 + $0x50] sm:$0xff] }
  0xe7   : > { %v7898_v23 = vld [vmem:[%s9478_s13 + $0x68] sm:$0xff]  ;;  %v7897_v24 = vld [vmem:[%s9478_s13 + $0x60] sm:$0xff]  ;;  %v7900_v25 = vld [vmem:[%s9478_s13 + $0x78] sm:$0xff] }
  0xe8   : > { %553 = vperm.xlu1 %8898, %v538_v3   ;;  %547 = vperm.xlu0 %8897, %v536_v4   ;;  %v7899_v26 = vld [vmem:[%s9478_s13 + $0x70] sm:$0xff] }
  0xe9   : > { %8538 = vmatpush3.bf16.msra.mxu0 %v9495_v17 }
  0xea   : > { %8237 = vmatprep.subr.msk.mxu0 %vm608_vm0, %v9501_v20 }
  0xec   : > { %559 = vperm.xlu1 %8898, %v540_v5   ;;  %556 = vperm.xlu0 %8897, %v539_v8  }
  0xed   : > { %8238 = vmatpush3.msk.msra.mxu0 %vm608_vm0, %v9501_v20 }
  0xee   : > { %8251 = vmatprep.subr.mxu0 %v762_v46 }
  0xf0   : > { %565 = vperm.xlu1 %8898, %v542_v15   ;;  %562 = vperm.xlu0 %8897, %v541_v16  }
  0xf4   : > { %3161 = vperm.xlu1 %8898, %v7894_v18   ;;  %3158 = vperm.xlu0 %8897, %v7893_v19  }
  0xf8   : > { %3167 = vperm.xlu1 %8898, %v7896_v21   ;;  %3164 = vperm.xlu0 %8897, %v7895_v22  }
  0xfc   : > { %3173 = vperm.xlu1 %8898, %v7898_v23   ;;  %3170 = vperm.xlu0 %8897, %v7897_v24  }
 0x100   : > { %3179 = vperm.xlu1 %8898, %v7900_v25   ;;  %3176 = vperm.xlu0 %8897, %v7899_v26  }
 0x163   : > { %v551_v29 = vpop.permute.xlu1 %550  ;;  %v545_v30 = vpop.permute.xlu0 %544 }
 0x164   : > { %vm567_vm2 = vcmp.eq.s32.totalorder %v545_v30, %v9515_v28  ;;  %vm569_vm3 = vcmp.eq.s32.totalorder %v551_v29, %v9515_v28 }
 0x165   : > { %v575_v32 = vsel %vm567_vm2, 1.0, %v9177_v31  ;;  %v577_v35 = vsel %vm569_vm3, 1.0, %v9177_v31 }
 0x166   : > { %8239 = vmatprep.mubr.msk.f32.mxu0 %vm583_vm1, %v575_v32 }
 0x167   : > { %v554_v33 = vpop.permute.xlu1 %553  ;;  %v548_v34 = vpop.permute.xlu0 %547 }
 0x168   : > { %vm568_vm4 = vcmp.eq.s32.totalorder %v548_v34, %v9515_v28  ;;  %vm570_vm5 = vcmp.eq.s32.totalorder %v554_v33, %v9515_v28 }
 0x169   : > { %v576_v36 = vsel %vm568_vm4, 1.0, %v9177_v31  ;;  %v578_v39 = vsel %vm570_vm5, 1.0, %v9177_v31 }
 0x16a   : > { %8240 = vmatmul.mubr.msk.f32.vlgmr.msra.gmra.mrb[0].mxu0 %vm583_vm1, %v576_v36 }
 0x16b   : > { %v560_v37 = vpop.permute.xlu1 %559  ;;  %v557_v38 = vpop.permute.xlu0 %556  ;;  %8242 = vmatprep.mubr.msk.f32.mxu0 %vm583_vm1, %v577_v35  ;;  %8252 = vmatpush3.msra.mxu0 %v762_v46 }
 0x16c   : > { %vm571_vm6 = vcmp.eq.s32.totalorder %v557_v38, %v9515_v28  ;;  %vm572_vm7 = vcmp.eq.s32.totalorder %v560_v37, %v9515_v28  ;;  %8321 = vmatprep.subr.mxu0 %v9177_v31 }
 0x16d   : > { %v579_v40 = vsel %vm571_vm6, 1.0, %v9177_v31  ;;  %v580_v43 = vsel %vm572_vm7, 1.0, %v9177_v31 }
 0x16e   : > { %8243 = vmatmul.mubr.msk.f32.gmra.mrb[2].mxu0 %vm583_vm1, %v578_v39 }
 0x16f   : > { %v566_v41 = vpop.permute.xlu1 %565  ;;  %v563_v42 = vpop.permute.xlu0 %562  ;;  %8245 = vmatprep.mubr.msk.f32.mxu0 %vm583_vm1, %v579_v40 }
 0x170   : > { %vm573_vm8 = vcmp.eq.s32.totalorder %v563_v42, %v9515_v28  ;;  %vm574_vm9 = vcmp.eq.s32.totalorder %v566_v41, %v9515_v28  ;;  %v1009_v41 = vld [vmem:[#allocation4 + $0x10] sm:$0xff] }
 0x171   : > { %v581_v44 = vsel %vm573_vm8, 1.0, %v9177_v31  ;;  %v582_v45 = vsel %vm574_vm9, 1.0, %v9177_v31  ;;  %vm9178_vm8 = vmmov 0   ;;  %vm2566_vm9 = vcmask 1042434  }
 0x172   : > { %8246 = vmatmul.mubr.msk.f32.gmra.mrb[4].mxu0 %vm583_vm1, %v580_v43 }
 0x173   : > { %8248 = vmatprep.mubr.msk.f32.mxu0 %vm583_vm1, %v581_v44 }
 0x176   : > { %8249 = vmatmul.mubr.msk.f32.gmra.mrb[6].mxu0 %vm583_vm1, %v582_v45 }
 0x23d   : > { %v9545_v48 = vpop.f32.mrb[0].mxu0 }
 0x23e   : > { %v726_v49 = vrot.slane %v9545_v48, 6  ;;  %v745_v50 = vrot.slane %v9545_v48, 7  ;;  %v9549_v51 = vpop.f32.mrb[1].mxu0  ;;  %v1141_v52 = vrot.slane %v9545_v48, 1  ;;  %v1291_v57 = vrot.slane %v9545_v48, 2 }
 0x23f   : > { %v744_v53 = vrot.slane %v9549_v51, 7  ;;  %v725_v54 = vrot.slane %v9549_v51, 6  ;;  %v1140_v55 = vrot.slane %v9549_v51, 1  ;;  %v1290_v56 = vrot.slane %v9549_v51, 2 }
 0x241   : > { %v9557_v58 = vpop.f32.mrb[2].mxu0  ;;  %v760_v59 = vsel %vm743_vm10, 0.0, %v744_v53  ;;  %v746_v60 = vsel %vm743_vm10, %v744_v53, %v745_v50  ;;  %v9564_v61 = vsel %vm608_vm0, %v725_v54, %v726_v49  ;;  %v9572_v1 = vsel %vm1139_vm11, %v1140_v55, %v1141_v52 }
 0x242   : > { %v9566_v62 = vpop.f32.mrb[3].mxu0  ;;  %8253 = vmatprep.mubr.msk.f32.mxu0 %vm763_vm12, %v760_v59  ;;  %v749_v63 = vrot.slane %v9557_v58, 7  ;;  %v730_v0 = vrot.slane %v9557_v58, 6  ;;  %v1145_v2 = vrot.slane %v9557_v58, 1  ;;  %v9581_v7 = vsel %vm1289_vm13, %v1290_v56, %v1291_v57 }
 0x243   : > { %v1143_v3 = vrot.slane %v9566_v62, 1  ;;  %8254 = vmatmul.mubr.msk.f32.vlgmr.msra.gmra.mrb[8].mxu0 %vm763_vm12, %v746_v60  ;;  %v747_v4 = vrot.slane %v9566_v62, 7  ;;  %v728_v5 = vrot.slane %v9566_v62, 6  ;;  %v1293_v6 = vrot.slane %v9566_v62, 2 }
 0x244   : > { %v1295_v8 = vrot.slane %v9557_v58, 2 }
 0x245   : > { %v9584_v10 = vpop.f32.mrb[4].mxu0  ;;  %v748_v11 = vsel %vm743_vm10, %v745_v50, %v747_v4  ;;  %v750_v13 = vsel %vm743_vm10, %v747_v4, %v749_v63  ;;  %v729_v14 = vsel %vm608_vm0, %v726_v49, %v728_v5  ;;  %v731_v15 = vsel %vm608_vm0, %v728_v5, %v730_v0  ;;  %v1158_v5 = vld [vmem:[#allocation4 + $0x18] sm:$0xff] }
 0x246   : > { %v9590_v16 = vpop.f32.mrb[5].mxu0  ;;  %8256 = vmatprep.mubr.msk.f32.mxu0 %vm763_vm12, %v748_v11  ;;  %v753_v18 = vrot.slane %v9584_v10, 7  ;;  %v734_v19 = vrot.slane %v9584_v10, 6  ;;  %v9596_v21 = vsel %vm1139_vm11, %v1141_v52, %v1143_v3  ;;  %v9599_v22 = vsel %vm1139_vm11, %v1143_v3, %v1145_v2 }
 0x247   : > { %8257 = vmatmul.mubr.msk.f32.gmra.mrb[10].mxu0 %vm763_vm12, %v750_v13  ;;  %v751_v23 = vrot.slane %v9590_v16, 7  ;;  %v732_v24 = vrot.slane %v9590_v16, 6  ;;  %v1147_v25 = vrot.slane %v9590_v16, 1  ;;  %v1149_v26 = vrot.slane %v9584_v10, 1 }
 0x248   : > { %v9607_v29 = vsel %vm1289_vm13, %v1291_v57, %v1293_v6  ;;  %v9610_v30 = vsel %vm1289_vm13, %v1293_v6, %v1295_v8  ;;  %v1297_v32 = vrot.slane %v9590_v16, 2  ;;  %v1299_v33 = vrot.slane %v9584_v10, 2  ;;  %8323 = vmatprep.mubr.msk.f32.mxu0 %vm9178_vm8, %v9177_v31 }
 0x249   : > { %v9614_v34 = vpop.f32.mrb[6].mxu0  ;;  %v752_v35 = vsel %vm743_vm10, %v749_v63, %v751_v23  ;;  %v754_v36 = vsel %vm743_vm10, %v751_v23, %v753_v18  ;;  %v733_v37 = vsel %vm608_vm0, %v730_v0, %v732_v24  ;;  %v735_v38 = vsel %vm608_vm0, %v732_v24, %v734_v19  ;;  %v1439_v24 = vld [vmem:[#allocation6] sm:$0x7] }
 0x24a   : > { %v708_v39 = vpop.f32.mrb[7].mxu0  ;;  %8259 = vmatprep.mubr.msk.f32.mxu1 %vm763_vm12, %v752_v35  ;;  %v757_v40 = vrot.slane %v9614_v34, 7  ;;  %v738_v42 = vrot.slane %v9614_v34, 6  ;;  %v1148_v43 = vsel %vm1139_vm11, %v1145_v2, %v1147_v25  ;;  %v1150_v44 = vsel %vm1139_vm11, %v1147_v25, %v1149_v26 }
 0x24b   : > { %8260 = vmatmul.mubr.msk.f32.vlgmr.msra.gmra.mrb[0].mxu1 %vm763_vm12, %v754_v36  ;;  %v755_v45 = vrot.slane %v708_v39, 7  ;;  %v736_v46 = vrot.slane %v708_v39, 6  ;;  %v1151_v49 = vrot.slane %v708_v39, 1  ;;  %v1153_v50 = vrot.slane %v9614_v34, 1 }
 0x24c   : > { %8266 = vmatpush3.msra.mxu1 %v9542_v47  ;;  %v1298_v52 = vsel %vm1289_vm13, %v1295_v8, %v1297_v32  ;;  %v1300_v53 = vsel %vm1289_vm13, %v1297_v32, %v1299_v33  ;;  %v1301_v55 = vrot.slane %v708_v39, 2  ;;  %v1303_v56 = vrot.slane %v9614_v34, 2 }
 0x24d   : > { %v756_v57 = vsel %vm743_vm10, %v753_v18, %v755_v45  ;;  %v758_v59 = vsel %vm743_vm10, %v755_v45, %v757_v40  ;;  %8279 = vmatprep.subr.mxu1 %v1009_v41  ;;  %v737_v60 = vsel %vm608_vm0, %v734_v19, %v736_v46  ;;  %v739_v63 = vsel %vm608_vm0, %v736_v46, %v738_v42 }
 0x24e   : > { %8262 = vmatprep.mubr.msk.f32.mxu1 %vm763_vm12, %v756_v57  ;;  %v1152_v47 = vsel %vm1139_vm11, %v1149_v26, %v1151_v49  ;;  %v1154_v0 = vsel %vm1139_vm11, %v1151_v49, %v1153_v50  ;;  %v1302_v2 = vsel %vm1289_vm13, %v1299_v33, %v1301_v55  ;;  %v741_v3 = vsel %vm608_vm0, 0.0, %v725_v54  ;;  %v1308_v54 = vld [vmem:[#allocation4 + $0x20] sm:$0xff] }
 0x24f   : > { %8263 = vmatmul.mubr.msk.f32.gmra.mrb[2].mxu1 %vm763_vm12, %v758_v59  ;;  %v1304_v4 = vsel %vm1289_vm13, %v1301_v55, %v1303_v56  ;;  %v9179_v25 = vmov 1966171168  }
 0x250   : > { %8267 = vmatprep.mubr.msk.f32.mxu1 %vm763_vm12, %v741_v3  ;;  %v1494_v26 = vunpack.c.l.s4 %v9179_v25 }
 0x253   : > { %8268 = vmatmul.mubr.msk.f32.vlgmr.msra.gmra.mrb[4].mxu1 %vm763_vm12, %v9564_v61 }
 0x254   : > { %8280 = vmatpush3.msra.mxu1 %v1009_v41  ;;  %8270 = vmatprep.mubr.msk.f32.mxu1 %vm763_vm12, %v729_v14 }
 0x255   : > { %8293 = vmatprep.subr.mxu1 %v1158_v5 }
 0x257   : > { %8271 = vmatmul.mubr.msk.f32.gmra.mrb[6].mxu1 %vm763_vm12, %v731_v15 }
 0x258   : > { %8273 = vmatprep.mubr.msk.f32.mxu1 %vm763_vm12, %v733_v37 }
 0x25b   : > { %8274 = vmatmul.mubr.msk.f32.gmra.mrb[0].mxu1 %vm763_vm12, %v735_v38 }
 0x25c   : > { %8276 = vmatprep.mubr.msk.f32.mxu1 %vm763_vm12, %v737_v60 }
 0x25f   : > { %8277 = vmatmul.mubr.msk.f32.gmra.mrb[2].mxu1 %vm763_vm12, %v739_v63 }
 0x260   : > { %8281 = vmatprep.mubr.msk.f32.mxu1 %vm763_vm12, %v9549_v51  ;;  %v3159_v51 = vpop.permute.xlu0 %3158 }
 0x261   : > { %vm3181_vm14 = vcmp.eq.s32.totalorder %v3159_v51, %v9515_v28 }
 0x263   : > { %8282 = vmatmul.mubr.msk.f32.vlgmr.msra.gmra.mrb[4].mxu1 %vm763_vm12, %v9545_v48  ;;  %v1156_v48 = vsel %vm1139_vm11, %v1153_v50, 0.0 }
 0x264   : > { %8294 = vmatpush3.msra.mxu1 %v1158_v5  ;;  %8284 = vmatprep.mubr.msk.f32.mxu1 %vm763_vm12, %v9566_v62  ;;  %v3165_v61 = vpop.permute.xlu0 %3164 }
 0x265   : > { %8307 = vmatprep.subr.mxu1 %v1308_v54  ;;  %vm3183_vm2 = vcmp.eq.s32.totalorder %v3165_v61, %v9515_v28 }
 0x267   : > { %8285 = vmatmul.mubr.msk.f32.gmra.mrb[6].mxu1 %vm763_vm12, %v9557_v58  ;;  %v3162_v58 = vpop.permute.xlu1 %3161 }
 0x268   : > { %8287 = vmatprep.mubr.msk.f32.mxu1 %vm763_vm12, %v9590_v16  ;;  %vm3182_vm15 = vcmp.eq.s32.totalorder %v3162_v58, %v9515_v28 }
 0x26b   : > { %8288 = vmatmul.mubr.msk.f32.gmra.mrb[0].mxu1 %vm763_vm12, %v9584_v10  ;;  %v3168_v62 = vpop.permute.xlu1 %3167 }
 0x26c   : > { %8290 = vmatprep.mubr.msk.f32.mxu1 %vm763_vm12, %v708_v39  ;;  %vm3184_vm3 = vcmp.eq.s32.totalorder %v3168_v62, %v9515_v28 }
 0x26d   : > { %v3192_v10 = vsel %vm3184_vm3, 1.0, %v9177_v31  ;;  %vm2560_vm3 = vcmask 1046534  }
 0x26f   : > { %8291 = vmatmul.mubr.msk.f32.gmra.mrb[2].mxu1 %vm763_vm12, %v9614_v34  ;;  %v3174_v6 = vpop.permute.xlu1 %3173 }
 0x270   : > { %8295 = vmatprep.mubr.msk.f32.mxu1 %vm763_vm12, %v9572_v1  ;;  %v3171_v1 = vpop.permute.xlu0 %3170  ;;  %vm3186_vm5 = vcmp.eq.s32.totalorder %v3174_v6, %v9515_v28 }
 0x271   : > { %vm3185_vm4 = vcmp.eq.s32.totalorder %v3171_v1, %v9515_v28  ;;  %v3194_v13 = vsel %vm3186_vm5, 1.0, %v9177_v31  ;;  %vm2564_vm5 = vcmask 1041409  }
 0x273   : > { %8296 = vmatmul.mubr.msk.f32.vlgmr.msra.gmra.mrb[4].mxu1 %vm763_vm12, %v9596_v21  ;;  %v3180_v11 = vpop.permute.xlu1 %3179 }
 0x274   : > { %8308 = vmatpush3.msra.mxu1 %v1308_v54  ;;  %8298 = vmatprep.mubr.msk.f32.mxu1 %vm763_vm12, %v9599_v22  ;;  %v3177_v8 = vpop.permute.xlu0 %3176  ;;  %vm3188_vm7 = vcmp.eq.s32.totalorder %v3180_v11, %v9515_v28  ;;  %v7874_v22 = vld [vmem:[%s11350_s4 + $0x8] sm:$0xff] }
 0x275   : > { %8540 = vmatprep.subr.bf16.mxu1 %v9486_v9  ;;  %vm3187_vm6 = vcmp.eq.s32.totalorder %v3177_v8, %v9515_v28  ;;  %v3196_v15 = vsel %vm3188_vm7, 1.0, %v9177_v31  ;;  %8322 = vmatpush3.msra.mxu0 %v7874_v22  ;;  %v9741_v28 = vshrl.u32 %v533_v27, 7  ;;  %v1495_v27 = vunpack.c.0.s8 %v1494_v26 }
 0x276   : > { %v3195_v14 = vsel %vm3187_vm6, 1.0, %v9177_v31  ;;  %8332 = vmatprep.subr.mxu0 %v9177_v31  ;;  %vm2904_vm6 = vcmask 1043456   ;;  %vm3015_vm7 = vcmask 1042432  }
 0x277   : > { %8299 = vmatmul.mubr.msk.f32.gmra.mrb[6].mxu1 %vm763_vm12, %v1148_v43  ;;  %v9744_v23 = vsub.s32 0, %v9741_v28  ;;  %v1474_v34 = vsub.s32 2, %v9741_v28  ;;  %v9763_v49 = vsub.s32 %v1495_v27, %v9741_v28 }
 0x278   : > { %8301 = vmatprep.mubr.msk.f32.mxu1 %vm763_vm12, %v1150_v44 }
 0x279   : > { %v9760_v42 = vrot.slane %v1439_v24, %v1474_v34 }
 0x27b   : > { %8302 = vmatmul.mubr.msk.f32.gmra.mrb[0].mxu1 %vm763_vm12, %v1152_v47 }
 0x27c   : > { %8304 = vmatprep.mubr.msk.f32.mxu1 %vm763_vm12, %v1154_v0 }
 0x27f   : > { %8305 = vmatmul.mubr.msk.f32.gmra.mrb[2].mxu1 %vm763_vm12, %v1156_v48 }
 0x280   : > { %8309 = vmatprep.mubr.msk.f32.mxu1 %vm763_vm12, %v9581_v7  ;;  %v3191_v7 = vsel %vm3183_vm2, 1.0, %v9177_v31  ;;  %vm2558_vm2 = vcmask 1045509  }
 0x283   : > { %8310 = vmatmul.mubr.msk.f32.vlgmr.msra.gmra.mrb[4].mxu1 %vm763_vm12, %v9607_v29  ;;  %v9747_v29 = vrot.slane %v1439_v24, %v9744_v23 }
 0x284   : > { %8312 = vmatprep.mubr.msk.f32.mxu1 %vm763_vm12, %v9610_v30  ;;  %8542 = vmatpush3.bf16.msra.mxu1 %v9486_v9  ;;  %v1306_v9 = vsel %vm1289_vm13, %v1303_v56, 0.0  ;;  %v9750_v30 = vsub.s32 1, %v9741_v28 }
 0x285   : > { %8544 = vmatprep.subr.bf16.mxu1 %v9488_v12 }
 0x286   : > { %v9755_v38 = vrot.slane %v1439_v24, %v9750_v30 }
 0x287   : > { %8313 = vmatmul.mubr.msk.f32.gmra.mrb[6].mxu1 %vm763_vm12, %v1298_v52 }
 0x288   : > { %8315 = vmatprep.mubr.msk.f32.mxu1 %vm763_vm12, %v1300_v53  ;;  %8546 = vmatpush3.bf16.msra.mxu1 %v9488_v12  ;;  %v3189_v12 = vsel %vm3181_vm14, 1.0, %v9177_v31  ;;  %vm2554_vm14 = vcmask 1043459  }
 0x289   : > { %8548 = vmatprep.subr.bf16.mxu1 %v9495_v17 }
 0x28b   : > { %8316 = vmatmul.mubr.msk.f32.gmra.mrb[0].mxu1 %vm763_vm12, %v1302_v2 }
 0x28c   : > { %8318 = vmatprep.mubr.msk.f32.mxu1 %vm763_vm12, %v1304_v4  ;;  %8550 = vmatpush3.bf16.msra.mxu1 %v9495_v17  ;;  %v3190_v17 = vsel %vm3182_vm15, 1.0, %v9177_v31  ;;  %vm2556_vm15 = vcmask 1044484  }
 0x28d   : > { %8388 = vmatprep.subr.msk.mxu1 %vm608_vm0, %v9501_v20 }
 0x28f   : > { %8319 = vmatmul.mubr.msk.f32.gmra.mrb[2].mxu1 %vm763_vm12, %v1306_v9 }
 0x290   : > { %8390 = vmatprep.mubr.msk.f32.mxu1 %vm583_vm1, %v3189_v12  ;;  %8389 = vmatpush3.msk.msra.mxu1 %vm608_vm0, %v9501_v20  ;;  %v3193_v20 = vsel %vm3185_vm4, 1.0, %v9177_v31  ;;  %vm2562_vm4 = vcmask 1047559  }
 0x291   : > { %8472 = vmatprep.subr.mxu1 %v9177_v31 }
 0x293   : > { %8391 = vmatmul.mubr.msk.f32.vlgmr.msra.gmra.mrb[8].mxu1 %vm583_vm1, %v3190_v17 }
 0x294   : > { %8393 = vmatprep.mubr.msk.f32.mxu1 %vm583_vm1, %v3191_v7  ;;  %8473 = vmatpush3.msra.mxu1 %v7874_v22 }
 0x295   : > { %8483 = vmatprep.subr.mxu1 %v9177_v31 }
 0x297   : > { %8394 = vmatmul.mubr.msk.f32.gmra.mrb[10].mxu1 %vm583_vm1, %v3192_v10 }
 0x298   : > { %8396 = vmatprep.mubr.msk.f32.mxu1 %vm583_vm1, %v3193_v20 }
 0x29b   : > { %8397 = vmatmul.mubr.msk.f32.gmra.mrb[12].mxu1 %vm583_vm1, %v3194_v13 }
 0x29c   : > { %8399 = vmatprep.mubr.msk.f32.mxu1 %vm583_vm1, %v3195_v14 }
 0x29f   : > { %8400 = vmatmul.mubr.msk.f32.gmra.mrb[14].mxu1 %vm583_vm1, %v3196_v15  ;;  %vm2387_vm1 = vcmask 59392  }
 0x2a0   : > { %8474 = vmatprep.mubr.msk.f32.mxu1 %vm9178_vm8, %v9177_v31 }
 0x316   : > { %v8255_v16 = vpop.f32.mrb[8].mxu0 }
 0x317   : > { %v847_v18 = vpop.f32.mrb[9].mxu0 }
 0x31a   : > { %v8258_v19 = vpop.f32.mrb[10].mxu0 }
 0x31b   : > { %v857_v21 = vpop.f32.mrb[11].mxu0 }
 0x356   : > { %v8311_v32 = vpop.f32.mrb[4].mxu1 }
 0x357   : > { %v8697_v33 = vadd.f32 %v8311_v32, %v8255_v16  ;;  %v1392_v35 = vpop.f32.mrb[5].mxu1 }
 0x358   : > { %v8698_v36 = vadd.f32 %v1392_v35, %v847_v18 }
 0x359   : > { %v1445_v37 = vadd.f32 %v8697_v33, %v9747_v29 }
 0x35a   : > { %v1444_v39 = vadd.f32 %v8698_v36, %v9747_v29  ;;  %v8314_v40 = vpop.f32.mrb[6].mxu1 }
 0x35b   : > { %v1453_v41 = vmax.f32 %v1445_v37, 0.0  ;;  %v8699_v43 = vadd.f32 %v8314_v40, %v8258_v19  ;;  %v1402_v44 = vpop.f32.mrb[7].mxu1 }
 0x35c   : > { %v1452_v45 = vmax.f32 %v1444_v39, 0.0  ;;  %v8700_v46 = vadd.f32 %v1402_v44, %v857_v21 }
 0x35d   : > { %v1465_v50 = vmul.f32 %v9755_v38, %v1453_v41  ;;  %v1447_v52 = vadd.f32 %v8699_v43, %v9747_v29 }
 0x35e   : > { %v1464_v53 = vmul.f32 %v9755_v38, %v1452_v45  ;;  %v1446_v55 = vadd.f32 %v8700_v46, %v9747_v29  ;;  %v8317_v56 = vpop.f32.mrb[0].mxu1 }
 0x35f   : > { %v1477_v57 = vadd.f32 %v9760_v42, %v1465_v50  ;;  %v1455_v59 = vmax.f32 %v1447_v52, 0.0  ;;  %v9771_v60 = vadd.f32 %v8317_v56, %v9747_v29  ;;  %v1412_v63 = vpop.f32.mrb[1].mxu1 }
 0x360   : > { %v1476_v47 = vadd.f32 %v9760_v42, %v1464_v53  ;;  %v1454_v0 = vmax.f32 %v1446_v55, 0.0  ;;  %v9779_v51 = vadd.f32 %v9747_v29, %v1412_v63 }
 0x361   : > { %v1541_v2 = vcombine.high %v1477_v57, %v1477_v57  ;;  %v1548_v3 = vrot.slane %v1477_v57, %v9763_v49  ;;  %v1467_v4 = vmul.f32 %v9755_v38, %v1455_v59  ;;  %v1457_v12 = vmax.f32 %v9771_v60, 0.0 }
 0x362   : > { %v1492_v5 = vcombine.high %v1476_v47, %v1476_v47  ;;  %v1499_v54 = vrot.slane %v1476_v47, %v9763_v49  ;;  %v1466_v48 = vmul.f32 %v9755_v38, %v1454_v0  ;;  %v9781_v58 = vpop.f32.mrb[2].mxu1 }
 0x363   : > { %v1555_v61 = vrot.slane %v1541_v2, %v9763_v49  ;;  %v1556_v62 = vcombine.high %v1548_v3, %v1548_v3  ;;  %v1564_v9 = vrot.slane %v1548_v3, %v9763_v49  ;;  %v9786_v1 = vpop.f32.mrb[3].mxu1  ;;  %v1479_v8 = vadd.f32 %v9760_v42, %v1467_v4 }
 0x364   : > { %v1506_v17 = vrot.slane %v1492_v5, %v9763_v49  ;;  %v1507_v6 = vcombine.high %v1499_v54, %v1499_v54  ;;  %v1515_v7 = vrot.slane %v1499_v54, %v9763_v49  ;;  %v9796_v18 = vadd.f32 %v9760_v42, %v1466_v48 }
 0x365   : > { %v1557_v10 = vcombine.high %v1555_v61, %v1555_v61  ;;  %v1571_v20 = vrot.slane %v1555_v61, %v9763_v49  ;;  %v1578_v11 = vrot.slane %v1556_v62, %v9763_v49  ;;  %v1586_v13 = vcombine.high %v1564_v9, %v1564_v9 }
 0x366   : > { %v1508_v14 = vcombine.high %v1506_v17, %v1506_v17  ;;  %v1522_v15 = vrot.slane %v1506_v17, %v9763_v49  ;;  %v1529_v16 = vrot.slane %v1507_v6, %v9763_v49  ;;  %v9798_v19 = vpop.f32.mrb[8].mxu1  ;;  %v1537_v33 = vcombine.high %v1515_v7, %v1515_v7 }
 0x367   : > { %v9801_v21 = vrot.slane %v1557_v10, %v9763_v49  ;;  %v1587_v22 = vcombine.high %v1571_v20, %v1571_v20  ;;  %v1588_v24 = vcombine.high %v1578_v11, %v1578_v11  ;;  %v1952_v25 = vcombine.low %v1578_v11, %v1586_v13  ;;  %v9803_v26 = vpop.f32.mrb[9].mxu1 }
 0x368   : > { %v1536_v32 = vrot.slane %v1508_v14, %v9763_v49  ;;  %v1539_v35 = vcombine.high %v1529_v16, %v1529_v16  ;;  %v1883_v36 = vcombine.low %v1515_v7, %v1529_v16  ;;  %v1943_v27 = vrot.slane %v1564_v9, %v9763_v49 }
 0x369   : > { %v1959_v37 = vrot.slane %v1952_v25, %v9763_v49  ;;  %v1966_v39 = vrot.slane %v1588_v24, %v9763_v49  ;;  %v1975_v40 = vcombine.low %v1571_v20, %v9801_v21  ;;  %v1989_v41 = vrot.slane %v1587_v22, %v9763_v49 }
 0x36a   : > { %v1890_v43 = vrot.slane %v1883_v36, %v9763_v49  ;;  %v1897_v44 = vrot.slane %v1537_v33, %v9763_v49  ;;  %v1906_v45 = vcombine.low %v1539_v35, %v1522_v15  ;;  %v9813_v46 = vpop.f32.mrb[10].mxu1  ;;  %v7869_v53 = vcombine.high %v1522_v15, %v1536_v32 }
 0x36b   : > { %v1967_v50 = vcombine.low %v1959_v37, %v1966_v39  ;;  %v1982_v52 = vrot.slane %v1975_v40, %v9763_v49  ;;  %v1639_v55 = vcombine.high %v1479_v8, %v1479_v8  ;;  %v9816_v56 = vpop.f32.mrb[11].mxu1  ;;  %v1920_v63 = vrot.slane %v1536_v32, %v9763_v49 }
 0x36c   : > { %v1898_v57 = vcombine.low %v1890_v43, %v1897_v44  ;;  %v1913_v59 = vrot.slane %v1906_v45, %v9763_v49  ;;  %v1646_v47 = vrot.slane %v1479_v8, %v9763_v49  ;;  %v1936_v3 = vrot.slane %v7869_v53, %v9763_v49 }
 0x36d   : > { %v1974_v0 = vrot.slane %v1967_v50, %v9763_v49  ;;  %v1990_v2 = vcombine.low %v1982_v52, %v1989_v41  ;;  %v1653_v4 = vrot.slane %v1639_v55, %v9763_v49 }
 0x36e   : > { %v1905_v5 = vrot.slane %v1898_v57, %v9763_v49  ;;  %v1921_v54 = vcombine.low %v1913_v59, %v1920_v63  ;;  %v1654_v48 = vcombine.high %v1646_v47, %v1646_v47  ;;  %v1662_v61 = vrot.slane %v1646_v47, %v9763_v49  ;;  %v9826_v62 = vpop.f32.mrb[12].mxu1 }
 0x36f   : > { %v1997_v9 = vrot.slane %v1990_v2, %v9763_v49  ;;  %v2409_v17 = vsel %vm2387_vm1, %v1974_v0, -inf  ;;  %v1944_v6 = vcombine.low %v1936_v3, %v1943_v27  ;;  %v1655_v7 = vcombine.high %v1653_v4, %v1653_v4  ;;  %v9830_v8 = vpop.f32.mrb[13].mxu1 }
 0x370   : > { %v2410_v10 = vrot.slane %v2409_v17, 4  ;;  %v1928_v20 = vrot.slane %v1921_v54, %v9763_v49  ;;  %v2388_v11 = vsel %vm2387_vm1, %v1905_v5, -inf  ;;  %v9835_v13 = vrot.slane %v1653_v4, %v9763_v49 }
 0x371   : > { %v2416_v14 = vsel %vm2387_vm1, %v1997_v9, -inf  ;;  %v1951_v15 = vrot.slane %v1944_v6, %v9763_v49  ;;  %v2389_v16 = vrot.slane %v2388_v11, 4  ;;  %v1676_v22 = vrot.slane %v1654_v48, %v9763_v49 }
 0x372   : > { %v2411_v24 = vmax.f32 %v2409_v17, %v2410_v10  ;;  %v2417_v25 = vrot.slane %v2416_v14, 4  ;;  %v2395_v32 = vsel %vm2387_vm1, %v1928_v20, -inf  ;;  %v9842_v33 = vrot.slane %v1655_v7, %v9763_v49  ;;  %v9844_v35 = vpop.f32.mrb[14].mxu1 }
 0x373   : > { %v2390_v36 = vmax.f32 %v2388_v11, %v2389_v16  ;;  %v2396_v27 = vrot.slane %v2395_v32, 4  ;;  %v2402_v37 = vsel %vm2387_vm1, %v1951_v15, -inf  ;;  %v1684_v39 = vcombine.high %v1662_v61, %v1662_v61  ;;  %v9847_v40 = vpop.f32.mrb[15].mxu1 }
 0x374   : > { %v2412_v41 = vrot.slane %v2411_v24, 2  ;;  %v2418_v43 = vmax.f32 %v2416_v14, %v2417_v25  ;;  %v2403_v44 = vrot.slane %v2402_v37, 4  ;;  %v1686_v45 = vcombine.high %v1676_v22, %v1676_v22 }
 0x375   : > { %v2391_v50 = vrot.slane %v2390_v36, 2  ;;  %v2397_v52 = vmax.f32 %v2395_v32, %v2396_v27  ;;  %v2067_v53 = vcombine.low %v1662_v61, %v1676_v22  ;;  %v2081_v55 = vrot.slane %v1684_v39, %v9763_v49 }
 0x376   : > { %v2413_v57 = vmax.f32 %v2411_v24, %v2412_v41  ;;  %v2419_v59 = vrot.slane %v2418_v43, 2  ;;  %v2404_v63 = vmax.f32 %v2402_v37, %v2403_v44  ;;  %v2090_v47 = vcombine.low %v1686_v45, %v9835_v13 }
 0x377   : > { %v9851_v0 = vmax.f32 %v2390_v36, %v2391_v50  ;;  %v2398_v2 = vrot.slane %v2397_v52, 2  ;;  %v2074_v3 = vrot.slane %v2067_v53, %v9763_v49  ;;  %v2104_v4 = vrot.slane %v9842_v33, %v9763_v49 }
 0x378   : > { %v2414_v5 = vrot.slane %v2413_v57, 1  ;;  %v9856_v54 = vmax.f32 %v2418_v43, %v2419_v59  ;;  %v2405_v48 = vrot.slane %v2404_v63, 2  ;;  %v2097_v61 = vrot.slane %v2090_v47, %v9763_v49 }
 0x379   : > { %v2399_v9 = vmax.f32 %v2397_v52, %v2398_v2  ;;  %v2082_v17 = vcombine.low %v2074_v3, %v2081_v55  ;;  %v1456_v6 = vmax.f32 %v9779_v51, 0.0  ;;  %v2393_v7 = vrot.slane %v9851_v0, 1 }
 0x37a   : > { %v2406_v10 = vmax.f32 %v2404_v63, %v2405_v48  ;;  %v2105_v20 = vcombine.low %v2097_v61, %v2104_v4  ;;  %v1589_v11 = vcombine.high %v9801_v21, %v9801_v21  ;;  %v7871_v15 = vcombine.high %v9835_v13, %v9842_v33 }
 0x37b   : > { %v2089_v14 = vrot.slane %v2082_v17, %v9763_v49  ;;  %v1590_v16 = vcombine.high %v9796_v18, %v9796_v18  ;;  %v1597_v22 = vrot.slane %v9796_v18, %v9763_v49  ;;  %v9870_v24 = vmax.f32 %v2413_v57, %v2414_v5 }
 0x37c   : > { %v2421_v51 = vrot.slane %v9856_v54, 1  ;;  %v2112_v25 = vrot.slane %v2105_v20, %v9763_v49  ;;  %v1469_v21 = vmul.f32 %v9755_v38, %v1457_v12  ;;  %v2400_v32 = vrot.slane %v2399_v9, 1 }
 0x37d   : > { %v2444_v36 = vsel %vm2387_vm1, %v2089_v14, -inf  ;;  %v1604_v27 = vrot.slane %v1590_v16, %v9763_v49  ;;  %v1605_v37 = vcombine.high %v1597_v22, %v1597_v22  ;;  %v2407_v39 = vrot.slane %v2406_v10, 1 }
 0x37e   : > { %v2445_v41 = vrot.slane %v2444_v36, 4  ;;  %v2451_v18 = vsel %vm2387_vm1, %v2112_v25, -inf  ;;  %v1613_v43 = vrot.slane %v1597_v22, %v9763_v49  ;;  %v1481_v53 = vadd.f32 %v9760_v42, %v1469_v21 }
 0x37f   : > { %v2452_v44 = vrot.slane %v2451_v18, 4  ;;  %v1606_v45 = vcombine.high %v1604_v27, %v1604_v27  ;;  %v1620_v50 = vrot.slane %v1604_v27, %v9763_v49  ;;  %v1627_v60 = vrot.slane %v1605_v37, %v9763_v49 }
 0x380   : > { %v2446_v52 = vmax.f32 %v2444_v36, %v2445_v41  ;;  %v1998_v12 = vcombine.low %v1589_v11, %v1613_v43  ;;  %v1468_v55 = vmul.f32 %v9755_v38, %v1456_v6  ;;  %v1737_v20 = vcombine.high %v1481_v53, %v1481_v53 }
 0x381   : > { %v2453_v57 = vmax.f32 %v2451_v18, %v2452_v44  ;;  %v1634_v59 = vrot.slane %v1606_v45, %v9763_v49  ;;  %v1636_v63 = vcombine.high %v1620_v50, %v1620_v50  ;;  %v2012_v47 = vrot.slane %v1627_v60, %v9763_v49 }
 0x382   : > { %v2447_v2 = vrot.slane %v2446_v52, 2  ;;  %v2005_v3 = vrot.slane %v1998_v12, %v9763_v49  ;;  %v7870_v4 = vcombine.high %v1613_v43, %v1627_v60  ;;  %v2035_v5 = vrot.slane %v1620_v50, %v9763_v49 }
 0x383   : > { %v2454_v48 = vrot.slane %v2453_v57, 2  ;;  %v1638_v61 = vcombine.high %v1634_v59, %v1634_v59  ;;  %v2044_v17 = vcombine.low %v1634_v59, %v1636_v63  ;;  %v1744_v16 = vrot.slane %v1481_v53, %v9763_v49 }
 0x384   : > { %v2448_v11 = vmax.f32 %v2446_v52, %v2447_v2  ;;  %v2013_v14 = vcombine.low %v2005_v3, %v2012_v47  ;;  %v2028_v6 = vrot.slane %v7870_v4, %v9763_v49  ;;  %v9891_v22 = vmax.f32 %v2399_v9, %v2400_v32 }
 0x385   : > { %v2051_v25 = vrot.slane %v2044_v17, %v9763_v49  ;;  %v2058_v21 = vrot.slane %v1638_v61, %v9763_v49  ;;  %v1751_v36 = vrot.slane %v1737_v20, %v9763_v49  ;;  %v1752_v41 = vcombine.high %v1744_v16, %v1744_v16 }
 0x386   : > { %v2020_v27 = vrot.slane %v2013_v14, %v9763_v49  ;;  %v2036_v37 = vcombine.low %v2028_v6, %v2035_v5  ;;  %v1480_v18 = vadd.f32 %v9760_v42, %v1468_v55  ;;  %v9898_v43 = vmax.f32 %v2406_v10, %v2407_v39 }
 0x387   : > { %v9900_v44 = vmax.f32 %v2453_v57, %v2454_v48  ;;  %v2059_v45 = vcombine.low %v2051_v25, %v2058_v21  ;;  %v1753_v50 = vcombine.high %v1751_v36, %v1751_v36  ;;  %v2449_v9 = vrot.slane %v2448_v11, 1 }
 0x388   : > { %v2043_v32 = vrot.slane %v2036_v37, %v9763_v49  ;;  %v2423_v60 = vsel %vm2387_vm1, %v2020_v27, -inf  ;;  %v1767_v52 = vrot.slane %v1751_v36, %v9763_v49  ;;  %v9907_v59 = vrot.slane %v1752_v41, %v9763_v49 }
 0x389   : > { %v2066_v12 = vrot.slane %v2059_v45, %v9763_v49  ;;  %v2424_v53 = vrot.slane %v2423_v60, 4  ;;  %v1781_v10 = vrot.slane %v1753_v50, %v9763_v49  ;;  %v1760_v55 = vrot.slane %v1744_v16, %v9763_v49 }
 0x38a   : > { %v2430_v39 = vsel %vm2387_vm1, %v2043_v32, -inf  ;;  %v1783_v57 = vcombine.high %v1767_v52, %v1767_v52  ;;  %v1688_v63 = vcombine.high %v1480_v18, %v1480_v18  ;;  %v2456_v5 = vrot.slane %v9900_v44, 1 }
 0x38b   : > { %v2425_v47 = vmax.f32 %v2423_v60, %v2424_v53  ;;  %v2431_v2 = vrot.slane %v2430_v39, 4  ;;  %v2437_v3 = vsel %vm2387_vm1, %v2066_v12, -inf  ;;  %v1785_v4 = vcombine.high %v1781_v10, %v1781_v10 }
 0x38c   : > { %v2438_v48 = vrot.slane %v2437_v3, 4  ;;  %v7872_v61 = vcombine.high %v1760_v55, %v9907_v59  ;;  %v2228_v17 = vcombine.low %v1781_v10, %v1783_v57  ;;  %v2219_v14 = vrot.slane %v1767_v52, %v9763_v49 }
 0x38d   : > { %v2426_v20 = vrot.slane %v2425_v47, 2  ;;  %v2242_v6 = vrot.slane %v1785_v4, %v9763_v49  ;;  %v1695_v16 = vrot.slane %v1480_v18, %v9763_v49  ;;  %v1702_v27 = vrot.slane %v1688_v63, %v9763_v49 }
 0x38e   : > { %v2439_v25 = vmax.f32 %v2437_v3, %v2438_v48  ;;  %v2212_v21 = vrot.slane %v7872_v61, %v9763_v49  ;;  %v2235_v36 = vrot.slane %v2228_v17, %v9763_v49  ;;  %v9921_v37 = vmax.f32 %v2448_v11, %v2449_v9 }
 0x38f   : > { %v9923_v41 = vmax.f32 %v2430_v39, %v2431_v2  ;;  %v1703_v45 = vcombine.high %v1695_v16, %v1695_v16  ;;  %v1711_v50 = vrot.slane %v1695_v16, %v9763_v49  ;;  %v9926_v32 = vmax.f32 %v2425_v47, %v2426_v20 }
 0x390   : > { %v2220_v60 = vcombine.low %v2212_v21, %v2219_v14  ;;  %v2243_v52 = vcombine.low %v2235_v36, %v2242_v6  ;;  %v1704_v12 = vcombine.high %v1702_v27, %v1702_v27  ;;  %v2440_v18 = vrot.slane %v2439_v25, 2 }
 0x391   : > { %v1718_v53 = vrot.slane %v1702_v27, %v9763_v49  ;;  %v1725_v10 = vrot.slane %v1703_v45, %v9763_v49  ;;  %v1733_v57 = vcombine.high %v1711_v50, %v1711_v50  ;;  %v2196_v11 = vrot.slane %v9907_v59, %v9763_v49 }
 0x392   : > { %v2227_v9 = vrot.slane %v2220_v60, %v9763_v49  ;;  %v2250_v39 = vrot.slane %v2243_v52, %v9763_v49  ;;  %v1732_v63 = vrot.slane %v1704_v12, %v9763_v49  ;;  %v2120_v3 = vrot.slane %v7871_v15, %v9763_v49 }
 0x393   : > { %v1734_v47 = vcombine.high %v1718_v53, %v1718_v53  ;;  %v1735_v2 = vcombine.high %v1725_v10, %v1725_v10  ;;  %v2127_v4 = vrot.slane %v1711_v50, %v9763_v49  ;;  %v2428_v48 = vrot.slane %v9926_v32, 1 }
 0x394   : > { %v2433_v61 = vrot.slane %v9923_v41, 2  ;;  %v2493_v59 = vsel %vm2387_vm1, %v2250_v39, -inf  ;;  %v1736_v17 = vcombine.high %v1732_v63, %v1732_v63  ;;  %v9943_v20 = vmax.f32 %v2439_v25, %v2440_v18 }
 0x395   : > { %v2494_v14 = vrot.slane %v2493_v59, 4  ;;  %v2128_v6 = vcombine.low %v2120_v3, %v2127_v4  ;;  %v2136_v16 = vcombine.low %v1725_v10, %v1733_v57  ;;  %v9946_v21 = vsel %vm2387_vm1, %v2227_v9, -inf }
 0x396   : > { %v2150_v13 = vrot.slane %v1735_v2, %v9763_v49  ;;  %v2159_v33 = vcombine.low %v1718_v53, %v1732_v63  ;;  %v2182_v15 = vcombine.low %v1736_v17, %v1760_v55  ;;  %v2173_v45 = vrot.slane %v1734_v47, %v9763_v49 }
 0x397   : > { %v2135_v36 = vrot.slane %v2128_v6, %v9763_v49  ;;  %v2143_v27 = vrot.slane %v2136_v16, %v9763_v49  ;;  %v1451_v25 = vadd.f32 %v9781_v58, %v9747_v29  ;;  %v9954_v50 = vmax.f32 %v2493_v59, %v2494_v14 }
 0x398   : > { %v2166_v60 = vrot.slane %v2159_v33, %v9763_v49  ;;  %v2189_v52 = vrot.slane %v2182_v15, %v9763_v49  ;;  %v1450_v12 = vadd.f32 %v9747_v29, %v9786_v1  ;;  %v2442_v55 = vrot.slane %v9943_v20, 1 }
 0x399   : > { %v2151_v18 = vcombine.low %v2143_v27, %v2150_v13  ;;  %v2458_v53 = vsel %vm2387_vm1, %v2135_v36, -inf  ;;  %v1459_v10 = vmax.f32 %v1451_v25, 0.0  ;;  %v2487_v63 = vrot.slane %v9946_v21, 4 }
 0x39a   : > { %v2174_v57 = vcombine.low %v2166_v60, %v2173_v45  ;;  %v9962_v9 = vcombine.low %v2189_v52, %v2196_v11  ;;  %v2459_v39 = vrot.slane %v2458_v53, 4  ;;  %v1458_v58 = vmax.f32 %v1450_v12, 0.0 }
 0x39b   : > { %v2158_v47 = vrot.slane %v2151_v18, %v9763_v49  ;;  %v1471_v2 = vmul.f32 %v9755_v38, %v1459_v10  ;;  %v3335_v3 = vrot.slane %v9798_v19, 6  ;;  %v2496_v1 = vrot.slane %v9954_v50, 2 }
 0x39c   : > { %v2181_v4 = vrot.slane %v2174_v57, %v9763_v49  ;;  %v2460_v59 = vmax.f32 %v2458_v53, %v2459_v39  ;;  %v1470_v17 = vmul.f32 %v9755_v38, %v1458_v58  ;;  %v2204_v11 = vrot.slane %v9962_v9, %v9763_v49 }
 0x39d   : > { %v2465_v14 = vsel %vm2387_vm1, %v2158_v47, -inf  ;;  %v1483_v6 = vadd.f32 %v9760_v42, %v1471_v2  ;;  %v9978_v16 = vmax.f32 %v9851_v0, %v2393_v7  ;;  %v9986_v60 = vmax.f32 %v9856_v54, %v2421_v51 }
 0x39e   : > { %v2461_v13 = vrot.slane %v2460_v59, 2  ;;  %v2466_v33 = vrot.slane %v2465_v14, 4  ;;  %v2472_v15 = vsel %vm2387_vm1, %v2181_v4, -inf  ;;  %v1482_v36 = vadd.f32 %v9760_v42, %v1470_v17 }
 0x39f   : > { %v2473_v27 = vrot.slane %v2472_v15, 4  ;;  %v1835_v45 = vcombine.high %v1483_v6, %v1483_v6  ;;  %v1842_v25 = vrot.slane %v1483_v6, %v9763_v49 }
 0x3a0   : > { %v2462_v52 = vmax.f32 %v2460_v59, %v2461_v13  ;;  %v2467_v12 = vmax.f32 %v2465_v14, %v2466_v33  ;;  %v1786_v18 = vcombine.high %v1482_v36, %v1482_v36  ;;  %v1793_v0 = vrot.slane %v1482_v36, %v9763_v49 }
 0x3a1   : > { %v2474_v7 = vmax.f32 %v2472_v15, %v2473_v27  ;;  %v1849_v53 = vrot.slane %v1835_v45, %v9763_v49  ;;  %v1850_v10 = vcombine.high %v1842_v25, %v1842_v25  ;;  %v1858_v57 = vrot.slane %v1842_v25, %v9763_v49 }
 0x3a2   : > { %v2463_v39 = vrot.slane %v2462_v52, 1  ;;  %v2468_v58 = vrot.slane %v2467_v12, 2  ;;  %v1800_v47 = vrot.slane %v1786_v18, %v9763_v49  ;;  %v1801_v2 = vcombine.high %v1793_v0, %v1793_v0 }
 0x3a3   : > { %v2475_v54 = vrot.slane %v2474_v7, 2  ;;  %v1851_v51 = vcombine.high %v1849_v53, %v1849_v53  ;;  %v1865_v4 = vrot.slane %v1849_v53, %v9763_v49  ;;  %v1872_v59 = vrot.slane %v1850_v10, %v9763_v49 }
 0x3a4   : > { %v9994_v17 = vmax.f32 %v2462_v52, %v2463_v39  ;;  %v2469_v14 = vmax.f32 %v2467_v12, %v2468_v58  ;;  %v1880_v6 = vcombine.high %v1858_v57, %v1858_v57  ;;  %v2311_v13 = vrot.slane %v1858_v57, %v9763_v49 }
 0x3a5   : > { %v1879_v33 = vrot.slane %v1851_v51, %v9763_v49  ;;  %v1881_v15 = vcombine.high %v1865_v4, %v1865_v4  ;;  %v1882_v36 = vcombine.high %v1872_v59, %v1872_v59  ;;  %v1802_v27 = vcombine.high %v1800_v47, %v1800_v47 }
 0x3a6   : > { %v2320_v45 = vcombine.low %v1872_v59, %v1880_v6  ;;  %v1809_v25 = vrot.slane %v1793_v0, %v9763_v49  ;;  %v1816_v18 = vrot.slane %v1800_v47, %v9763_v49  ;;  %v1823_v53 = vrot.slane %v1801_v2, %v9763_v49 }
 0x3a7   : > { %v2334_v52 = vrot.slane %v1882_v36, %v9763_v49  ;;  %v2343_v12 = vcombine.low %v1865_v4, %v1879_v33  ;;  %v10003_v10 = vrot.slane %v1881_v15, %v9763_v49  ;;  %v1830_v57 = vrot.slane %v1802_v27, %v9763_v49 }
 0x3a8   : > { %v2327_v39 = vrot.slane %v2320_v45, %v9763_v49  ;;  %v1831_v58 = vcombine.high %v1809_v25, %v1809_v25  ;;  %v1833_v51 = vcombine.high %v1823_v53, %v1823_v53  ;;  %v2251_v59 = vcombine.low %v1809_v25, %v1823_v53 }
 0x3a9   : > { %v10008_v0 = vrot.slane %v2343_v12, %v9763_v49  ;;  %v2288_v47 = vrot.slane %v1830_v57, %v9763_v49  ;;  %v7873_v2 = vcombine.high %v1816_v18, %v1830_v57  ;;  %v10014_v4 = vmax.f32 %v9926_v32, %v2428_v48 }
 0x3aa   : > { %v2335_v6 = vcombine.low %v2327_v39, %v2334_v52  ;;  %v2258_v33 = vrot.slane %v2251_v59, %v9763_v49  ;;  %v2265_v15 = vrot.slane %v1831_v58, %v9763_v49  ;;  %v2274_v36 = vcombine.low %v1833_v51, %v1816_v18 }
 0x3ab   : > { %v2304_v27 = vrot.slane %v7873_v2, %v9763_v49  ;;  %v2434_v45 = vmax.f32 %v9923_v41, %v2433_v61  ;;  %v2581_v25 = vsel %vm2566_vm9, %v9891_v22, %v9978_v16  ;;  %v10028_v32 = vmax.f32 %v9943_v20, %v2442_v55 }
 0x3ac   : > { %v2266_v48 = vcombine.low %v2258_v33, %v2265_v15  ;;  %v2281_v53 = vrot.slane %v2274_v36, %v9763_v49  ;;  %v2582_v18 = vsel %vm2554_vm14, %v9898_v43, %v2581_v25  ;;  %v10036_v41 = vmax.f32 %v9900_v44, %v2456_v5 }
 0x3ad   : > { %v2312_v61 = vcombine.low %v2304_v27, %v2311_v13  ;;  %v2435_v52 = vrot.slane %v2434_v45, 1  ;;  %v2583_v12 = vsel %vm2556_vm15, %v9870_v24, %v2582_v18  ;;  %v2470_v57 = vrot.slane %v2469_v14, 1 }
 0x3ae   : > { %v2273_v20 = vrot.slane %v2266_v48, %v9763_v49  ;;  %v2289_v55 = vcombine.low %v2281_v53, %v2288_v47  ;;  %v2584_v39 = vsel %vm2558_vm2, %v9986_v60, %v2583_v12  ;;  %v2476_v58 = vmax.f32 %v2474_v7, %v2475_v54 }
 0x3af   : > { %v2319_v51 = vrot.slane %v2312_v61, %v9763_v49  ;;  %v10044_v59 = vmax.f32 %v2434_v45, %v2435_v52  ;;  %v2585_v44 = vsel %vm2560_vm3, %v10014_v4, %v2584_v39  ;;  %v10048_v5 = vmax.f32 %v2469_v14, %v2470_v57  ;;  %v2579_v14 = vld [vmem:[%s11350_s4] sm:$0xff] }
 0x3b0   : > { %v2296_v13 = vrot.slane %v2289_v55, %v9763_v49  ;;  %v2500_v2 = vsel %vm2387_vm1, %v2273_v20, -inf  ;;  %v2477_v33 = vrot.slane %v2476_v58, 1  ;;  %v2479_v47 = vsel %vm2387_vm1, %v2204_v11, -inf }
 0x3b1   : > { %v2501_v7 = vrot.slane %v2500_v2, 4  ;;  %v2514_v54 = vsel %vm2387_vm1, %v2319_v51, -inf  ;;  %v2586_v15 = vsel %vm2562_vm4, %v10044_v59, %v2585_v44  ;;  %v2480_v36 = vrot.slane %v2479_v47, 4 }
 0x3b2   : > { %v2507_v27 = vsel %vm2387_vm1, %v2296_v13, -inf  ;;  %v2515_v45 = vrot.slane %v2514_v54, 4  ;;  %v2599_v25 = vsel %vm743_vm10, 0.0, %v2586_v15  ;;  %v10064_v48 = vmax.f32 %v2476_v58, %v2477_v33 }
 0x3b3   : > { %v2502_v9 = vmax.f32 %v2500_v2, %v2501_v7  ;;  %v2508_v11 = vrot.slane %v2507_v27, 4  ;;  %8324 = vmatmul.mubr.msk.f32.vlgmr.msra.gmra.mrb[12].mxu0 %vm763_vm12, %v2599_v25  ;;  %v2481_v53 = vmax.f32 %v2479_v47, %v2480_v36  ;;  %v2488_v18 = vmax.f32 %v9946_v21, %v2487_v63 }
 0x3b4   : > { %v2516_v61 = vmax.f32 %v2514_v54, %v2515_v45  ;;  %v3352_v52 = vrot.slane %v9798_v19, 7  ;;  %8333 = vmatpush3.msra.mxu0 %v2579_v14  ;;  %8326 = vmatprep.mubr.msk.f32.mxu0 %vm9178_vm8, %v9177_v31  ;;  %v2587_v12 = vsel %vm2564_vm5, %v9921_v37, %v10028_v32  ;;  %v2342_v57 = vrot.slane %v2335_v6, %v9763_v49 }
 0x3b5   : > { %v2503_v20 = vrot.slane %v2502_v9, 2  ;;  %v2509_v55 = vmax.f32 %v2507_v27, %v2508_v11  ;;  %v2482_v39 = vrot.slane %v2481_v53, 2  ;;  %v2489_v58 = vrot.slane %v2488_v18, 2  ;;  %8343 = vmatprep.subr.mxu0 %v9177_v31 }
 0x3b6   : > { %v2588_v21 = vsel %vm2566_vm9, %v10036_v41, %v2587_v12  ;;  %v2497_v63 = vmax.f32 %v9954_v50, %v2496_v1  ;;  %v2517_v51 = vrot.slane %v2516_v61, 2  ;;  %v2521_v44 = vsel %vm2387_vm1, %v2342_v57, -inf }
 0x3b7   : > { %v2504_v13 = vmax.f32 %v2502_v9, %v2503_v20  ;;  %v2510_v2 = vrot.slane %v2509_v55, 2  ;;  %v2483_v33 = vmax.f32 %v2481_v53, %v2482_v39  ;;  %v2490_v6 = vmax.f32 %v2488_v18, %v2489_v58 }
 0x3b8   : > { %v2589_v47 = vsel %vm2554_vm14, %v9994_v17, %v2588_v21  ;;  %v2498_v7 = vrot.slane %v2497_v63, 1  ;;  %v2518_v54 = vmax.f32 %v2516_v61, %v2517_v51  ;;  %v2522_v15 = vrot.slane %v2521_v44, 4 }
 0x3b9   : > { %v2505_v14 = vrot.slane %v2504_v13, 1  ;;  %v2484_v36 = vrot.slane %v2483_v33, 1  ;;  %v2491_v27 = vrot.slane %v2490_v6, 1  ;;  %v2590_v45 = vsel %vm2556_vm15, %v10048_v5, %v2589_v47 }
 0x3ba   : > { %v2591_v50 = vsel %vm2558_vm2, %v10064_v48, %v2590_v45  ;;  %v10090_v1 = vmax.f32 %v2497_v63, %v2498_v7  ;;  %v2511_v25 = vmax.f32 %v2509_v55, %v2510_v2  ;;  %v2519_v9 = vrot.slane %v2518_v54, 1 }
 0x3bb   : > { %v10092_v11 = vmax.f32 %v2483_v33, %v2484_v36  ;;  %v10094_v53 = vmax.f32 %v2490_v6, %v2491_v27  ;;  %v10096_v18 = vmax.f32 %v2504_v13, %v2505_v14  ;;  %v2523_v61 = vmax.f32 %v2521_v44, %v2522_v15 }
 0x3bc   : > { %v2512_v12 = vrot.slane %v2511_v25, 1  ;;  %v10098_v57 = vmax.f32 %v2518_v54, %v2519_v9  ;;  %v2555_v20 = vsel %vm2554_vm14, %v9891_v22, %v9978_v16  ;;  %v2565_v39 = vsel %vm2564_vm5, %v10028_v32, %v10044_v59 }
 0x3bd   : > { %v2592_v55 = vsel %vm2560_vm3, %v10092_v11, %v2591_v50  ;;  %v2524_v58 = vrot.slane %v2523_v61, 2  ;;  %v2594_v21 = vsel %vm2564_vm5, %v10096_v18, %v10090_v1  ;;  %v2557_v63 = vsel %vm2556_vm15, %v9898_v43, %v2555_v20 }
 0x3be   : > { %v2593_v51 = vsel %vm2562_vm4, %v10094_v53, %v2592_v55  ;;  %v10115_v44 = vmax.f32 %v2511_v25, %v2512_v12  ;;  %v2559_v13 = vsel %vm2558_vm2, %v9870_v24, %v2557_v63  ;;  %v2567_v2 = vsel %vm2566_vm9, %v9921_v37, %v2565_v39 }
 0x3bf   : > { %8327 = vmatmul.mubr.msk.f32.gmra.mrb[14].mxu0 %vm763_vm12, %v2593_v51  ;;  %v2525_v33 = vmax.f32 %v2523_v61, %v2524_v58  ;;  %v2561_v6 = vsel %vm2560_vm3, %v9986_v60, %v2559_v13  ;;  %v2568_v47 = vsel %vm2554_vm14, %v10036_v41, %v2567_v2  ;;  %v2573_v7 = vsel %vm2564_vm5, %v10090_v1, %v10094_v53 }
 0x3c0   : > { %8329 = vmatprep.mubr.msk.f32.mxu0 %vm9178_vm8, %v9177_v31  ;;  %v2595_v54 = vsel %vm2566_vm9, %v10115_v44, %v2594_v21  ;;  %v2563_v15 = vsel %vm2562_vm4, %v10014_v4, %v2561_v6  ;;  %v2569_v14 = vsel %vm2556_vm15, %v9994_v17, %v2568_v47  ;;  %v2574_v36 = vsel %vm2566_vm9, %v10096_v18, %v2573_v7 }
 0x3c1   : > { %v2526_v27 = vrot.slane %v2525_v33, 1  ;;  %v2596_v45 = vsel %vm2554_vm14, %v10098_v57, %v2595_v54  ;;  %v2578_v50 = vsel %vm608_vm0, 0.0, %v2563_v15  ;;  %v2570_v25 = vsel %vm2558_vm2, %v10048_v5, %v2569_v14 }
 0x3c2   : > { %v2571_v9 = vsel %vm2560_vm3, %v10064_v48, %v2570_v25  ;;  %v2575_v61 = vsel %vm2554_vm14, %v10115_v44, %v2574_v36  ;;  %v2779_v12 = vsel %vm2564_vm5, %v9891_v22, %v9978_v16  ;;  %v2786_v20 = vsel %vm2564_vm5, %v10036_v41, %v9921_v37 }
 0x3c3   : > { %v2527_v39 = vmax.f32 %v2525_v33, %v2526_v27  ;;  %v2572_v55 = vsel %vm2562_vm4, %v10092_v11, %v2571_v9  ;;  %v10158_v58 = vsel %vm2556_vm15, %v10098_v57, %v2575_v61  ;;  %v2780_v21 = vsel %vm2566_vm9, %v9898_v43, %v2779_v12 }
 0x3c4   : > { %v2781_v63 = vsel %vm2554_vm14, %v9870_v24, %v2780_v21  ;;  %v2787_v16 = vsel %vm2566_vm9, %v9994_v17, %v2786_v20  ;;  %v2358_v51 = vcombine.low %v10008_v0, %v10003_v10  ;;  %v2793_v13 = vsel %vm2564_vm5, %v10115_v44, %v10096_v18 }
 0x3c5   : > { %v2597_v2 = vsel %vm2556_vm15, %v2527_v39, %v2596_v45  ;;  %v2782_v33 = vsel %vm2556_vm15, %v9986_v60, %v2781_v63  ;;  %v2788_v6 = vsel %vm2554_vm14, %v10048_v5, %v2787_v16  ;;  %v2794_v47 = vsel %vm2566_vm9, %v10098_v57, %v2793_v13  ;;  %v7881_v45 = vld [vmem:[%s11350_s4 + $0x10] sm:$0xff] }
 0x3c6   : > { %8330 = vmatmul.mubr.msk.f32.gmra.mrb[16].mxu0 %vm763_vm12, %v2597_v2  ;;  %v2783_v10 = vsel %vm2558_vm2, %v10014_v4, %v2782_v33  ;;  %v2789_v0 = vsel %vm2556_vm15, %v10064_v48, %v2788_v6  ;;  %v2365_v7 = vrot.slane %v2358_v51, %v9763_v49  ;;  %v10185_v54 = vsel %vm2554_vm14, %v2527_v39, %v2794_v47 }
 0x3c7   : > { %8334 = vmatprep.mubr.msk.f32.mxu0 %vm9178_vm8, %v9177_v31  ;;  %v2784_v15 = vsel %vm2560_vm3, %v10044_v59, %v2783_v10  ;;  %v2790_v14 = vsel %vm2558_vm2, %v10092_v11, %v2789_v0  ;;  %v2886_v36 = vsel %vm2564_vm5, %v9898_v43, %v9891_v22  ;;  %v2893_v27 = vsel %vm2564_vm5, %v9994_v17, %v10036_v41 }
 0x3c8   : > { %v10204_v25 = vsel %vm2562_vm4, %v10028_v32, %v2784_v15  ;;  %v2791_v9 = vsel %vm2560_vm3, %v10094_v53, %v2790_v14  ;;  %v2528_v61 = vsel %vm2387_vm1, %v2365_v7, -inf  ;;  %v2887_v22 = vsel %vm2566_vm9, %v9870_v24, %v2886_v36 }
 0x3c9   : > { %v10213_v12 = vsel %vm2562_vm4, %v10090_v1, %v2791_v9  ;;  %v2529_v20 = vrot.slane %v2528_v61, 4  ;;  %v2888_v21 = vsel %vm2554_vm14, %v9986_v60, %v2887_v22  ;;  %v2894_v63 = vsel %vm2566_vm9, %v10048_v5, %v2893_v27 }
 0x3ca   : > { %8335 = vmatmul.mubr.msk.f32.vlgmr.msra.gmra.mrb[18].mxu0 %vm763_vm12, %v2578_v50  ;;  %v2889_v16 = vsel %vm2556_vm15, %v10014_v4, %v2888_v21  ;;  %v2895_v51 = vsel %vm2554_vm14, %v10064_v48, %v2894_v63  ;;  %v2900_v13 = vsel %vm2564_vm5, %v10098_v57, %v10115_v44  ;;  %v2998_v2 = vsel %vm2564_vm5, %v9870_v24, %v9898_v43 }
 0x3cb   : > { %8344 = vmatpush3.msra.mxu0 %v7881_v45  ;;  %8337 = vmatprep.mubr.msk.f32.mxu0 %vm9178_vm8, %v9177_v31  ;;  %v2530_v33 = vmax.f32 %v2528_v61, %v2529_v20  ;;  %v2890_v50 = vsel %vm2558_vm2, %v10044_v59, %v2889_v16  ;;  %v2896_v6 = vsel %vm2556_vm15, %v10092_v11, %v2895_v51  ;;  %v3351_v47 = vrot.slane %v9803_v26, 7 }
 0x3cc   : > { %8354 = vmatprep.subr.mxu0 %v9177_v31  ;;  %v2891_v10 = vsel %vm2560_vm3, %v10028_v32, %v2890_v50  ;;  %v2897_v24 = vsel %vm2558_vm2, %v10094_v53, %v2896_v6  ;;  %v2901_v43 = vsel %vm2566_vm9, %v2527_v39, %v2900_v13  ;;  %v2999_v0 = vsel %vm2566_vm9, %v9986_v60, %v2998_v2 }
 0x3cd   : > { %v2531_v7 = vrot.slane %v2530_v33, 2  ;;  %v10247_v15 = vsel %vm2562_vm4, %v9921_v37, %v2891_v10  ;;  %v2898_v14 = vsel %vm2560_vm3, %v10090_v1, %v2897_v24  ;;  %v3000_v36 = vsel %vm2554_vm14, %v10014_v4, %v2999_v0 }
 0x3ce   : > { %8338 = vmatmul.mubr.msk.f32.gmra.mrb[20].mxu0 %vm763_vm12, %v2572_v55  ;;  %v10256_v27 = vsel %vm2562_vm4, %v10096_v18, %v2898_v14  ;;  %v3001_v60 = vsel %vm2556_vm15, %v10044_v59, %v3000_v36  ;;  %v3005_v45 = vsel %vm2564_vm5, %v10048_v5, %v9994_v17  ;;  %v3012_v9 = vsel %vm2564_vm5, %v2527_v39, %v10098_v57 }
 0x3cf   : > { %8340 = vmatprep.mubr.msk.f32.mxu0 %vm9178_vm8, %v9177_v31  ;;  %v2532_v4 = vmax.f32 %v2530_v33, %v2531_v7  ;;  %v3002_v55 = vsel %vm2558_vm2, %v10028_v32, %v3001_v60  ;;  %v3006_v61 = vsel %vm2566_vm9, %v10064_v48, %v3005_v45  ;;  %v10276_v59 = vsel %vm743_vm10, %v3351_v47, %v3352_v52 }
 0x3d0   : > { %v3003_v17 = vsel %vm2560_vm3, %v9921_v37, %v3002_v55  ;;  %v3007_v5 = vsel %vm2554_vm14, %v10092_v11, %v3006_v61  ;;  %v3354_v57 = vrot.slane %v9816_v56, 7  ;;  %v3356_v32 = vrot.slane %v9813_v46, 7 }
 0x3d1   : > { %v2533_v39 = vrot.slane %v2532_v4, 1  ;;  %v10286_v48 = vsel %vm2562_vm4, %v10036_v41, %v3003_v17  ;;  %v3008_v22 = vsel %vm2556_vm15, %v10094_v53, %v3007_v5  ;;  %v3358_v20 = vrot.slane %v9830_v8, 7 }
 0x3d2   : > { %8341 = vmatmul.mubr.msk.f32.gmra.mrb[22].mxu0 %vm763_vm12, %v10158_v58  ;;  %v3009_v37 = vsel %vm2558_vm2, %v10090_v1, %v3008_v22  ;;  %v10298_v11 = vsel %vm743_vm10, %v3352_v52, %v3354_v57  ;;  %v10301_v21 = vsel %vm743_vm10, %v3354_v57, %v3356_v32  ;;  %v3360_v41 = vrot.slane %v9826_v62, 7  ;;  %v7885_v52 = vld [vmem:[%s11350_s4 + $0x18] sm:$0xff] }
 0x3d3   : > { %8345 = vmatprep.mubr.msk.f32.mxu0 %vm9178_vm8, %v9177_v31  ;;  %v2534_v53 = vmax.f32 %v2532_v4, %v2533_v39  ;;  %v3010_v58 = vsel %vm2560_vm3, %v10096_v18, %v3009_v37  ;;  %v10309_v63 = vsel %vm743_vm10, %v3356_v32, %v3358_v20  ;;  %v3362_v1 = vrot.slane %v9847_v40, 7 }
 0x3d4   : > { %v10317_v16 = vsel %vm2562_vm4, %v10115_v44, %v3010_v58  ;;  %v10320_v51 = vsel %vm743_vm10, %v3358_v20, %v3360_v41  ;;  %v3364_v13 = vrot.slane %v9844_v35, 7  ;;  %v3334_v18 = vrot.slane %v9803_v26, 6 }
 0x3d5   : > { %v2796_v2 = vsel %vm2556_vm15, %v2534_v53, %v10185_v54  ;;  %v10327_v33 = vsel %vm2554_vm14, %v2534_v53, %v2901_v43  ;;  %v10330_v50 = vsel %vm2566_vm9, %v2534_v53, %v3012_v9  ;;  %v10333_v6 = vsel %vm743_vm10, %v3360_v41, %v3362_v1 }
 0x3d6   : > { %v3744_v44 = vrot.slane %v9816_v56, 1  ;;  %v3891_v10 = vrot.slane %v9816_v56, 2  ;;  %8346 = vmatmul.mubr.msk.f32.vlgmr.msra.gmra.mrb[24].mxu0 %vm763_vm12, %v10204_v25  ;;  %v10340_v24 = vsel %vm743_vm10, %v3362_v1, %v3364_v13  ;;  %v10349_v54 = vsel %vm608_vm0, %v3334_v18, %v3335_v3 }
 0x3d7   : > { %8355 = vmatpush3.msra.mxu0 %v7885_v52  ;;  %8348 = vmatprep.mubr.msk.f32.mxu0 %vm9178_vm8, %v9177_v31  ;;  %v3337_v43 = vrot.slane %v9816_v56, 6  ;;  %v3339_v0 = vrot.slane %v9813_v46, 6  ;;  %v3341_v25 = vrot.slane %v9830_v8, 6  ;;  %v3343_v7 = vrot.slane %v9826_v62, 6 }
 0x3d8   : > { %8365 = vmatprep.subr.mxu0 %v9177_v31  ;;  %v3345_v14 = vrot.slane %v9847_v40, 6  ;;  %v3347_v36 = vrot.slane %v9844_v35, 6  ;;  %v3741_v60 = vrot.slane %v9803_v26, 1  ;;  %v3742_v55 = vrot.slane %v9798_v19, 1 }
 0x3d9   : > { %v10362_v45 = vsel %vm608_vm0, %v3335_v3, %v3337_v43  ;;  %v10365_v9 = vsel %vm608_vm0, %v3337_v43, %v3339_v0  ;;  %v10368_v4 = vsel %vm608_vm0, %v3339_v0, %v3341_v25  ;;  %v10374_v61 = vsel %vm608_vm0, %v3341_v25, %v3343_v7 }
 0x3da   : > { %8349 = vmatmul.mubr.msk.f32.gmra.mrb[26].mxu0 %vm763_vm12, %v10213_v12  ;;  %v10377_v17 = vsel %vm608_vm0, %v3343_v7, %v3345_v14  ;;  %v10380_v3 = vsel %vm608_vm0, %v3345_v14, %v3347_v36  ;;  %v3746_v5 = vrot.slane %v9813_v46, 1  ;;  %v10386_v57 = vsel %vm1139_vm11, %v3741_v60, %v3742_v55  ;;  %v7889_v14 = vld [vmem:[%s11350_s4 + $0x20] sm:$0xff] }
 0x3db   : > { %8351 = vmatprep.mubr.msk.f32.mxu0 %vm9178_vm8, %v9177_v31  ;;  %v10389_v32 = vsel %vm1139_vm11, %v3742_v55, %v3744_v44  ;;  %v3748_v12 = vrot.slane %v9830_v8, 1  ;;  %v3750_v39 = vrot.slane %v9826_v62, 1  ;;  %v3752_v20 = vrot.slane %v9847_v40, 1 }
 0x3dc   : > { %v10394_v22 = vsel %vm1139_vm11, %v3744_v44, %v3746_v5  ;;  %v3754_v37 = vrot.slane %v9844_v35, 1  ;;  %v3888_v41 = vrot.slane %v9803_v26, 2  ;;  %v3889_v1 = vrot.slane %v9798_v19, 2 }
 0x3dd   : > { %v10400_v53 = vsel %vm1139_vm11, %v3746_v5, %v3748_v12  ;;  %v10403_v58 = vsel %vm1139_vm11, %v3748_v12, %v3750_v39  ;;  %v3893_v52 = vrot.slane %v9813_v46, 2  ;;  %v10409_v13 = vsel %vm1139_vm11, %v3750_v39, %v3752_v20  ;;  %v8903_v39 = vld [vmem:[#allocation4 + $0x8] sm:$0xff] }
 0x3de   : > { %8352 = vmatmul.mubr.msk.f32.gmra.mrb[28].mxu0 %vm763_vm12, %v2796_v2  ;;  %v10414_v44 = vsel %vm1139_vm11, %v3752_v20, %v3754_v37  ;;  %v3895_v43 = vrot.slane %v9830_v8, 2  ;;  %v10420_v0 = vsel %vm1289_vm13, %v3888_v41, %v3889_v1  ;;  %v10423_v25 = vsel %vm1289_vm13, %v3889_v1, %v3891_v10 }
 0x3df   : > { %8356 = vmatprep.mubr.msk.f32.mxu0 %vm9178_vm8, %v9177_v31  ;;  %v10426_v2 = vsel %vm1289_vm13, %v3891_v10, %v3893_v52  ;;  %v3897_v7 = vrot.slane %v9826_v62, 2  ;;  %v3899_v60 = vrot.slane %v9847_v40, 2  ;;  %v3901_v55 = vrot.slane %v9844_v35, 2 }
 0x3e0   : > { %v10433_v36 = vsel %vm1289_vm13, %v3893_v52, %v3895_v43 }
 0x3e1   : > { %v10438_v5 = vsel %vm1289_vm13, %v3895_v43, %v3897_v7  ;;  %v10443_v10 = vsel %vm1289_vm13, %v3897_v7, %v3899_v60  ;;  %v10448_v12 = vsel %vm1289_vm13, %v3899_v60, %v3901_v55 }
 0x3e2   : > { %8357 = vmatmul.mubr.msk.f32.vlgmr.msra.gmra.mrb[30].mxu0 %vm763_vm12, %v10247_v15  ;;  %v2905_v15 = vsel %vm2904_vm6, %v10327_v33, 0.0  ;;  %v3016_v33 = vsel %vm3015_vm7, %v10330_v50, 0.0 }
 0x3e3   : > { %8366 = vmatpush3.msra.mxu0 %v7889_v14  ;;  %8359 = vmatprep.mubr.msk.f32.mxu0 %vm9178_vm8, %v9177_v31 }
 0x3e4   : > { %8402 = vmatprep.subr.mxu0 %v8903_v39 }
 0x3e6   : > { %8360 = vmatmul.mubr.msk.f32.gmra.mrb[32].mxu0 %vm763_vm12, %v10256_v27  ;;  %v8904_v27 = vld [vmem:[#allocation4] sm:$0xff] }
 0x3e7   : > { %8362 = vmatprep.mubr.msk.f32.mxu0 %vm9178_vm8, %v9177_v31 }
 0x3ea   : > { %8363 = vmatmul.mubr.msk.f32.gmra.mrb[34].mxu0 %vm763_vm12, %v2905_v15 }
 0x3eb   : > { %8367 = vmatprep.mubr.msk.f32.mxu0 %vm9178_vm8, %v9177_v31 }
 0x3ee   : > { %8368 = vmatmul.mubr.msk.f32.vlgmr.msra.gmra.mrb[36].mxu0 %vm763_vm12, %v10286_v48  ;;  %v3367_v48 = vsel %vm743_vm10, 0.0, %v3351_v47  ;;  %v3350_v47 = vsel %vm608_vm0, 0.0, %v3334_v18 }
 0x3ef   : > { %8403 = vmatpush3.msra.mxu0 %v8903_v39  ;;  %8370 = vmatprep.mubr.msk.f32.mxu0 %vm9178_vm8, %v9177_v31 }
 0x3f0   : > { %8416 = vmatprep.subr.mxu0 %v8904_v27 }
 0x3f2   : > { %8371 = vmatmul.mubr.msk.f32.gmra.mrb[38].mxu0 %vm763_vm12, %v10317_v16  ;;  %v8905_v16 = vld [vmem:[#allocation4 + $0x10] sm:$0xff] }
 0x3f3   : > { %8373 = vmatprep.mubr.msk.f32.mxu0 %vm9178_vm8, %v9177_v31 }
 0x3f6   : > { %8374 = vmatmul.mubr.msk.f32.gmra.mrb[40].mxu0 %vm763_vm12, %v3016_v33 }
 0x3f7   : > { %8404 = vmatprep.mubr.msk.f32.mxu0 %vm763_vm12, %v3367_v48 }
 0x3fa   : > { %8405 = vmatmul.mubr.msk.f32.vlgmr.msra.gmra.mrb[42].mxu0 %vm763_vm12, %v10276_v59  ;;  %v8906_v59 = vld [vmem:[#allocation4 + $0x18] sm:$0xff] }
 0x3fb   : > { %8417 = vmatpush3.msra.mxu0 %v8904_v27  ;;  %8407 = vmatprep.mubr.msk.f32.mxu0 %vm763_vm12, %v10298_v11  ;;  %v8907_v11 = vld [vmem:[#allocation4 + $0x20] sm:$0xff] }
 0x3fc   : > { %8430 = vmatprep.subr.mxu0 %v8905_v16 }
 0x3fe   : > { %8408 = vmatmul.mubr.msk.f32.gmra.mrb[44].mxu0 %vm763_vm12, %v10301_v21 }
 0x3ff   : > { %8410 = vmatprep.mubr.msk.f32.mxu0 %vm763_vm12, %v10309_v63 }
 0x402   : > { %8411 = vmatmul.mubr.msk.f32.gmra.mrb[46].mxu0 %vm763_vm12, %v10320_v51 }
 0x403   : > { %8413 = vmatprep.mubr.msk.f32.mxu0 %vm763_vm12, %v10333_v6 }
 0x406   : > { %8414 = vmatmul.mubr.msk.f32.gmra.mrb[48].mxu0 %vm763_vm12, %v10340_v24 }
 0x407   : > { %8418 = vmatprep.mubr.msk.f32.mxu0 %vm763_vm12, %v3350_v47 }
 0x40a   : > { %8419 = vmatmul.mubr.msk.f32.vlgmr.msra.gmra.mrb[42].mxu0 %vm763_vm12, %v10349_v54 }
 0x40b   : > { %8431 = vmatpush3.msra.mxu0 %v8905_v16  ;;  %8421 = vmatprep.mubr.msk.f32.mxu0 %vm763_vm12, %v10362_v45 }
 0x40c   : > { %8444 = vmatprep.subr.mxu0 %v8906_v59 }
 0x40e   : > { %8422 = vmatmul.mubr.msk.f32.gmra.mrb[44].mxu0 %vm763_vm12, %v10365_v9 }
 0x40f   : > { %8424 = vmatprep.mubr.msk.f32.mxu0 %vm763_vm12, %v10368_v4 }
 0x412   : > { %8425 = vmatmul.mubr.msk.f32.gmra.mrb[46].mxu0 %vm763_vm12, %v10374_v61 }
 0x413   : > { %8427 = vmatprep.mubr.msk.f32.mxu0 %vm763_vm12, %v10377_v17 }
 0x416   : > { %8428 = vmatmul.mubr.msk.f32.gmra.mrb[48].mxu0 %vm763_vm12, %v10380_v3 }
 0x417   : > { %8432 = vmatprep.mubr.msk.f32.mxu0 %vm763_vm12, %v9803_v26  ;;  %v3904_v26 = vsel %vm1289_vm13, %v3901_v55, 0.0 }
 0x41a   : > { %8433 = vmatmul.mubr.msk.f32.vlgmr.msra.gmra.mrb[42].mxu0 %vm763_vm12, %v9798_v19  ;;  %v3757_v19 = vsel %vm1139_vm11, %v3754_v37, 0.0 }
 0x41b   : > { %8445 = vmatpush3.msra.mxu0 %v8906_v59  ;;  %8435 = vmatprep.mubr.msk.f32.mxu0 %vm763_vm12, %v9816_v56 }
 0x41c   : > { %8458 = vmatprep.subr.mxu0 %v8907_v11 }
 0x41e   : > { %8436 = vmatmul.mubr.msk.f32.gmra.mrb[44].mxu0 %vm763_vm12, %v9813_v46 }
 0x41f   : > { %8438 = vmatprep.mubr.msk.f32.mxu0 %vm763_vm12, %v9830_v8 }
 0x422   : > { %8439 = vmatmul.mubr.msk.f32.gmra.mrb[46].mxu0 %vm763_vm12, %v9826_v62 }
 0x423   : > { %8441 = vmatprep.mubr.msk.f32.mxu0 %vm763_vm12, %v9847_v40 }
 0x426   : > { %8442 = vmatmul.mubr.msk.f32.gmra.mrb[48].mxu0 %vm763_vm12, %v9844_v35 }
 0x427   : > { %8446 = vmatprep.mubr.msk.f32.mxu0 %vm763_vm12, %v10386_v57 }
 0x42a   : > { %8447 = vmatmul.mubr.msk.f32.vlgmr.msra.gmra.mrb[42].mxu0 %vm763_vm12, %v10389_v32 }
 0x42b   : > { %8459 = vmatpush3.msra.mxu0 %v8907_v11  ;;  %8449 = vmatprep.mubr.msk.f32.mxu0 %vm763_vm12, %v10394_v22 }
 0x42e   : > { %8450 = vmatmul.mubr.msk.f32.gmra.mrb[44].mxu0 %vm763_vm12, %v10400_v53 }
 0x42f   : > { %8452 = vmatprep.mubr.msk.f32.mxu0 %vm763_vm12, %v10403_v58 }
 0x432   : > { %8453 = vmatmul.mubr.msk.f32.gmra.mrb[46].mxu0 %vm763_vm12, %v10409_v13 }
 0x433   : > { %8455 = vmatprep.mubr.msk.f32.mxu0 %vm763_vm12, %v10414_v44  ;;  %v3109_v44 = vld [vmem:[#allocation7] sm:$0x7] }
 0x434   : > { %v10565_v60 = vrot.slane %v3109_v44, %v9750_v30  ;;  %v10570_v15 = vrot.slane %v3109_v44, %v1474_v34 }
 0x436   : > { %8456 = vmatmul.mubr.msk.f32.gmra.mrb[48].mxu0 %vm763_vm12, %v3757_v19 }
 0x437   : > { %8460 = vmatprep.mubr.msk.f32.mxu0 %vm763_vm12, %v10420_v0 }
 0x43a   : > { %8461 = vmatmul.mubr.msk.f32.vlgmr.msra.gmra.mrb[42].mxu0 %vm763_vm12, %v10423_v25  ;;  %v10561_v25 = vrot.slane %v3109_v44, %v9744_v23 }
 0x43b   : > { %8463 = vmatprep.mubr.msk.f32.mxu0 %vm763_vm12, %v10426_v2 }
 0x43e   : > { %8464 = vmatmul.mubr.msk.f32.gmra.mrb[44].mxu0 %vm763_vm12, %v10433_v36 }
 0x43f   : > { %8466 = vmatprep.mubr.msk.f32.mxu0 %vm763_vm12, %v10438_v5 }
 0x442   : > { %8467 = vmatmul.mubr.msk.f32.gmra.mrb[46].mxu0 %vm763_vm12, %v10443_v10 }
 0x443   : > { %8469 = vmatprep.mubr.msk.f32.mxu0 %vm763_vm12, %v10448_v12 }
 0x446   : > { %8470 = vmatmul.mubr.msk.f32.gmra.mrb[48].mxu0 %vm763_vm12, %v3904_v26 }
 0x486   : > { %v2675_v46 = vpop.f32.mrb[12].mxu0 }
 0x487   : > { %v8325_v56 = vpop.f32.mrb[13].mxu0 }
 0x492   : > { %v2680_v62 = vpop.f32.mrb[14].mxu0 }
 0x493   : > { %v8328_v8 = vpop.f32.mrb[15].mxu0 }
 0x499   : > { %v2685_v40 = vpop.f32.mrb[16].mxu0 }
 0x49a   : > { %v8331_v21 = vpop.f32.mrb[17].mxu0 }
 0x49d   : > { %v2762_v63 = vpop.f32.mrb[18].mxu0 }
 0x49e   : > { %v2763_v51 = vadd.f32 %v2762_v63, %v2675_v46  ;;  %v8336_v18 = vpop.f32.mrb[19].mxu0 }
 0x4a1   : > { %v2767_v50 = vpop.f32.mrb[20].mxu0 }
 0x4a2   : > { %v2768_v6 = vadd.f32 %v2767_v50, %v2680_v62  ;;  %v8339_v24 = vpop.f32.mrb[21].mxu0 }
 0x4a5   : > { %v2772_v54 = vpop.f32.mrb[22].mxu0 }
 0x4a6   : > { %v2773_v45 = vadd.f32 %v2772_v54, %v2685_v40  ;;  %v8342_v9 = vpop.f32.mrb[23].mxu0 }
 0x4a9   : > { %v2869_v35 = vpop.f32.mrb[24].mxu0 }
 0x4aa   : > { %v2883_v4 = vadd.f32 %v2869_v35, %v2763_v51  ;;  %v8347_v61 = vpop.f32.mrb[25].mxu0 }
 0x4ad   : > { %v2874_v17 = vpop.f32.mrb[26].mxu0 }
 0x4ae   : > { %v2884_v3 = vadd.f32 %v2874_v17, %v2768_v6  ;;  %v8350_v57 = vpop.f32.mrb[27].mxu0 }
 0x4b1   : > { %v2879_v32 = vpop.f32.mrb[28].mxu0 }
 0x4b2   : > { %v2885_v22 = vadd.f32 %v2879_v32, %v2773_v45  ;;  %v8353_v20 = vpop.f32.mrb[29].mxu0 }
 0x4b5   : > { %v2981_v37 = vpop.f32.mrb[30].mxu0 }
 0x4b6   : > { %v2995_v41 = vadd.f32 %v2981_v37, %v2883_v4  ;;  %v8358_v53 = vpop.f32.mrb[31].mxu0 }
 0x4b9   : > { %v2986_v58 = vpop.f32.mrb[32].mxu0 }
 0x4ba   : > { %v2996_v1 = vadd.f32 %v2986_v58, %v2884_v3  ;;  %v8361_v52 = vpop.f32.mrb[33].mxu0 }
 0x4bd   : > { %v2991_v13 = vpop.f32.mrb[34].mxu0 }
 0x4be   : > { %v2997_v43 = vadd.f32 %v2991_v13, %v2885_v22  ;;  %v8364_v0 = vpop.f32.mrb[35].mxu0 }
 0x4c1   : > { %v3092_v2 = vpop.f32.mrb[36].mxu0 }
 0x4c2   : > { %v3106_v7 = vadd.f32 %v3092_v2, %v2995_v41  ;;  %v8369_v14 = vpop.f32.mrb[37].mxu0 }
 0x4c4   : > { %v3114_v36 = vadd.f32 %v10561_v25, %v3106_v7 }
 0x4c5   : > { %v3097_v55 = vpop.f32.mrb[38].mxu0 }
 0x4c6   : > { %v3117_v5 = vmax.f32 %v3114_v36, 0.0  ;;  %v3107_v10 = vadd.f32 %v3097_v55, %v2996_v1  ;;  %v8372_v12 = vpop.f32.mrb[39].mxu0 }
 0x4c8   : > { %v3124_v39 = vmul.f32 %v10565_v60, %v3117_v5  ;;  %v3115_v27 = vadd.f32 %v10561_v25, %v3107_v10 }
 0x4c9   : > { %v3102_v33 = vpop.f32.mrb[40].mxu0 }
 0x4ca   : > { %v3118_v48 = vmax.f32 %v3115_v27, 0.0  ;;  %v3108_v16 = vadd.f32 %v3102_v33, %v2997_v43  ;;  %v8375_v47 = vpop.f32.mrb[41].mxu0  ;;  %v3131_v59 = vadd.f32 %v10570_v15, %v3124_v39 }
 0x4cc   : > { %v3125_v11 = vmul.f32 %v10565_v60, %v3118_v48  ;;  %v3116_v19 = vadd.f32 %v10561_v25, %v3108_v16  ;;  %v3137_v56 = vrot.slane %v3131_v59, 1 }
 0x4ce   : > { %v3132_v26 = vadd.f32 %v10570_v15, %v3125_v11  ;;  %v3119_v46 = vmax.f32 %v3116_v19, 0.0 }
 0x4d0   : > { %v3138_v62 = vrot.slane %v3132_v26, 1  ;;  %v3126_v28 = vmul.f32 %v10565_v60, %v3119_v46 }
 0x4d2   : > { %v3139_v34 = vsel %vm1139_vm11, %v3137_v56, %v3138_v62  ;;  %v3133_v8 = vadd.f32 %v10570_v15, %v3126_v28 }
 0x4d3   : > { %v10580_v40 = vmax.f32 %v3131_v59, %v3139_v34 }
 0x4d4   : > { %v3140_v21 = vrot.slane %v3133_v8, 1 }
 0x4d6   : > { %v3141_v63 = vsel %vm1139_vm11, %v3138_v62, %v3140_v21  ;;  %v10583_v51 = vmax.f32 %v3133_v8, %v3140_v21 }
 0x4d7   : > { %v10585_v18 = vmax.f32 %v3132_v26, %v3141_v63 }
 0x50d   : > { %v8462_v50 = vpop.f32.mrb[42].mxu0 }
 0x50e   : > { %v4036_v6 = vadd.f32 %v8462_v50, %v9747_v29  ;;  %v3988_v24 = vpop.f32.mrb[43].mxu0 }
 0x50f   : > { %v4035_v54 = vadd.f32 %v3988_v24, %v9747_v29 }
 0x510   : > { %v4044_v45 = vmax.f32 %v4036_v6, 0.0 }
 0x511   : > { %v4043_v9 = vmax.f32 %v4035_v54, 0.0  ;;  %v8465_v35 = vpop.f32.mrb[44].mxu0 }
 0x512   : > { %v4052_v4 = vmul.f32 %v4044_v45, %v9755_v38  ;;  %v4038_v61 = vadd.f32 %v8465_v35, %v9747_v29  ;;  %v3998_v17 = vpop.f32.mrb[45].mxu0 }
 0x513   : > { %v4051_v3 = vmul.f32 %v4043_v9, %v9755_v38  ;;  %v4037_v57 = vadd.f32 %v3998_v17, %v9747_v29 }
 0x514   : > { %v4060_v32 = vadd.f32 %v4052_v4, %v9760_v42  ;;  %v4046_v22 = vmax.f32 %v4038_v61, 0.0 }
 0x515   : > { %v4059_v20 = vadd.f32 %v4051_v3, %v9760_v42  ;;  %v4045_v37 = vmax.f32 %v4037_v57, 0.0  ;;  %v8468_v41 = vpop.f32.mrb[46].mxu0 }
 0x516   : > { %v4124_v53 = vcombine.high %v4060_v32, %v4060_v32  ;;  %v4131_v58 = vrot.slane %v4060_v32, %v9763_v49  ;;  %v4054_v1 = vmul.f32 %v4046_v22, %v9755_v38  ;;  %v10598_v52 = vadd.f32 %v8468_v41, %v9747_v29  ;;  %v4008_v13 = vpop.f32.mrb[47].mxu0 }
 0x517   : > { %v4075_v44 = vcombine.high %v4059_v20, %v4059_v20  ;;  %v4082_v43 = vrot.slane %v4059_v20, %v9763_v49  ;;  %v4053_v0 = vmul.f32 %v4045_v37, %v9755_v38  ;;  %v10603_v2 = vadd.f32 %v4008_v13, %v9747_v29 }
 0x518   : > { %v4138_v7 = vrot.slane %v4124_v53, %v9763_v49  ;;  %v4139_v14 = vcombine.high %v4131_v58, %v4131_v58  ;;  %v4147_v36 = vrot.slane %v4131_v58, %v9763_v49  ;;  %v4062_v55 = vadd.f32 %v4054_v1, %v9760_v42 }
 0x519   : > { %v4089_v5 = vrot.slane %v4075_v44, %v9763_v49  ;;  %v4090_v10 = vcombine.high %v4082_v43, %v4082_v43  ;;  %v4098_v12 = vrot.slane %v4082_v43, %v9763_v49  ;;  %v10611_v39 = vadd.f32 %v4053_v0, %v9760_v42  ;;  %v10613_v27 = vpop.f32.mrb[48].mxu0 }
 0x51a   : > { %v4140_v33 = vcombine.high %v4138_v7, %v4138_v7  ;;  %v4154_v48 = vrot.slane %v4138_v7, %v9763_v49  ;;  %v4161_v16 = vrot.slane %v4139_v14, %v9763_v49  ;;  %v4169_v47 = vcombine.high %v4147_v36, %v4147_v36  ;;  %v10617_v59 = vpop.f32.mrb[49].mxu0 }
 0x51b   : > { %v4526_v11 = vrot.slane %v4147_v36, %v9763_v49  ;;  %v4091_v19 = vcombine.high %v4089_v5, %v4089_v5  ;;  %v4105_v26 = vrot.slane %v4089_v5, %v9763_v49  ;;  %v4112_v46 = vrot.slane %v4090_v10, %v9763_v49 }
 0x51c   : > { %v10623_v56 = vrot.slane %v4140_v33, %v9763_v49  ;;  %v4170_v62 = vcombine.high %v4154_v48, %v4154_v48  ;;  %v4171_v28 = vcombine.high %v4161_v16, %v4161_v16  ;;  %v4535_v34 = vcombine.low %v4161_v16, %v4169_v47 }
 0x51d   : > { %v4119_v8 = vrot.slane %v4091_v19, %v9763_v49  ;;  %v4120_v21 = vcombine.high %v4098_v12, %v4098_v12  ;;  %v4122_v63 = vcombine.high %v4112_v46, %v4112_v46  ;;  %v4466_v50 = vcombine.low %v4098_v12, %v4112_v46 }
 0x51e   : > { %v4542_v6 = vrot.slane %v4535_v34, %v9763_v49  ;;  %v4549_v24 = vrot.slane %v4171_v28, %v9763_v49  ;;  %v4558_v54 = vcombine.low %v4154_v48, %v10623_v56  ;;  %v4572_v45 = vrot.slane %v4170_v62, %v9763_v49 }
 0x51f   : > { %v4473_v9 = vrot.slane %v4466_v50, %v9763_v49  ;;  %v4480_v35 = vrot.slane %v4120_v21, %v9763_v49  ;;  %v4489_v4 = vcombine.low %v4122_v63, %v4105_v26  ;;  %v4503_v61 = vrot.slane %v4119_v8, %v9763_v49 }
 0x520   : > { %v4550_v17 = vcombine.low %v4542_v6, %v4549_v24  ;;  %v4565_v3 = vrot.slane %v4558_v54, %v9763_v49  ;;  %v7950_v57 = vcombine.high %v4105_v26, %v4119_v8  ;;  %v4222_v32 = vcombine.high %v4062_v55, %v4062_v55 }
 0x521   : > { %v4481_v22 = vcombine.low %v4473_v9, %v4480_v35  ;;  %v4496_v20 = vrot.slane %v4489_v4, %v9763_v49  ;;  %v4229_v37 = vrot.slane %v4062_v55, %v9763_v49  ;;  %v4172_v41 = vcombine.high %v10623_v56, %v10623_v56 }
 0x522   : > { %v4557_v53 = vrot.slane %v4550_v17, %v9763_v49  ;;  %v4573_v58 = vcombine.low %v4565_v3, %v4572_v45  ;;  %v4519_v1 = vrot.slane %v7950_v57, %v9763_v49  ;;  %v4236_v13 = vrot.slane %v4222_v32, %v9763_v49 }
 0x523   : > { %v4488_v44 = vrot.slane %v4481_v22, %v9763_v49  ;;  %v4504_v43 = vcombine.low %v4496_v20, %v4503_v61  ;;  %v4237_v0 = vcombine.high %v4229_v37, %v4229_v37  ;;  %v4245_v7 = vrot.slane %v4229_v37, %v9763_v49 }
 0x524   : > { %v4580_v14 = vrot.slane %v4573_v58, %v9763_v49  ;;  %v4991_v36 = vsel %vm2387_vm1, %v4557_v53, -inf  ;;  %v4527_v55 = vcombine.low %v4519_v1, %v4526_v11  ;;  %v4238_v5 = vcombine.high %v4236_v13, %v4236_v13 }
 0x525   : > { %v4992_v10 = vrot.slane %v4991_v36, 4  ;;  %v4511_v12 = vrot.slane %v4504_v43, %v9763_v49  ;;  %v4970_v33 = vsel %vm2387_vm1, %v4488_v44, -inf  ;;  %v10648_v48 = vrot.slane %v4236_v13, %v9763_v49 }
 0x526   : > { %v4998_v16 = vsel %vm2387_vm1, %v4580_v14, -inf  ;;  %v4534_v47 = vrot.slane %v4527_v55, %v9763_v49  ;;  %v4971_v19 = vrot.slane %v4970_v33, 4  ;;  %v4259_v26 = vrot.slane %v4237_v0, %v9763_v49 }
 0x527   : > { %v4993_v46 = vmax.f32 %v4991_v36, %v4992_v10  ;;  %v4999_v62 = vrot.slane %v4998_v16, 4  ;;  %v4977_v11 = vsel %vm2387_vm1, %v4511_v12, -inf  ;;  %v10655_v28 = vrot.slane %v4238_v5, %v9763_v49 }
 0x528   : > { %v4972_v34 = vmax.f32 %v4970_v33, %v4971_v19  ;;  %v4978_v8 = vrot.slane %v4977_v11, 4  ;;  %v4984_v21 = vsel %vm2387_vm1, %v4534_v47, -inf  ;;  %v4267_v63 = vcombine.high %v4245_v7, %v4245_v7 }
 0x529   : > { %v4994_v50 = vrot.slane %v4993_v46, 2  ;;  %v5000_v6 = vmax.f32 %v4998_v16, %v4999_v62  ;;  %v4985_v24 = vrot.slane %v4984_v21, 4  ;;  %v4269_v54 = vcombine.high %v4259_v26, %v4259_v26 }
 0x52a   : > { %v4973_v45 = vrot.slane %v4972_v34, 2  ;;  %v4979_v9 = vmax.f32 %v4977_v11, %v4978_v8  ;;  %v4650_v35 = vcombine.low %v4245_v7, %v4259_v26  ;;  %v4664_v4 = vrot.slane %v4267_v63, %v9763_v49 }
 0x52b   : > { %v4995_v61 = vmax.f32 %v4993_v46, %v4994_v50  ;;  %v5001_v17 = vrot.slane %v5000_v6, 2  ;;  %v4986_v3 = vmax.f32 %v4984_v21, %v4985_v24  ;;  %v4673_v57 = vcombine.low %v4269_v54, %v10648_v48 }
 0x52c   : > { %v4974_v32 = vmax.f32 %v4972_v34, %v4973_v45  ;;  %v4980_v22 = vrot.slane %v4979_v9, 2  ;;  %v4657_v20 = vrot.slane %v4650_v35, %v9763_v49  ;;  %v4687_v37 = vrot.slane %v10655_v28, %v9763_v49 }
 0x52d   : > { %v4996_v53 = vrot.slane %v4995_v61, 1  ;;  %v5002_v58 = vmax.f32 %v5000_v6, %v5001_v17  ;;  %v4987_v1 = vrot.slane %v4986_v3, 2  ;;  %v4680_v13 = vrot.slane %v4673_v57, %v9763_v49 }
 0x52e   : > { %v4975_v44 = vrot.slane %v4974_v32, 1  ;;  %v4981_v43 = vmax.f32 %v4979_v9, %v4980_v22  ;;  %v4665_v0 = vcombine.low %v4657_v20, %v4664_v4  ;;  %v7952_v7 = vcombine.high %v10648_v48, %v10655_v28 }
 0x52f   : > { %v10666_v14 = vmax.f32 %v4995_v61, %v4996_v53  ;;  %v5003_v36 = vrot.slane %v5002_v58, 1  ;;  %v4988_v55 = vmax.f32 %v4986_v3, %v4987_v1  ;;  %v4688_v5 = vcombine.low %v4680_v13, %v4687_v37 }
 0x530   : > { %v10668_v10 = vmax.f32 %v4974_v32, %v4975_v44  ;;  %v4982_v12 = vrot.slane %v4981_v43, 1  ;;  %v4672_v33 = vrot.slane %v4665_v0, %v9763_v49  ;;  %v4173_v16 = vcombine.high %v10611_v39, %v10611_v39 }
 0x531   : > { %v10673_v47 = vmax.f32 %v5002_v58, %v5003_v36  ;;  %v4989_v19 = vrot.slane %v4988_v55, 1  ;;  %v4695_v26 = vrot.slane %v4688_v5, %v9763_v49  ;;  %v4180_v46 = vrot.slane %v10611_v39, %v9763_v49 }
 0x532   : > { %v10678_v62 = vmax.f32 %v4981_v43, %v4982_v12  ;;  %v5026_v11 = vsel %vm2387_vm1, %v4672_v33, -inf  ;;  %v4187_v34 = vrot.slane %v4173_v16, %v9763_v49  ;;  %v4048_v8 = vmax.f32 %v10598_v52, 0.0 }
 0x533   : > { %v10683_v21 = vmax.f32 %v4988_v55, %v4989_v19  ;;  %v5027_v63 = vrot.slane %v5026_v11, 4  ;;  %v5033_v50 = vsel %vm2387_vm1, %v4695_v26, -inf  ;;  %v4188_v6 = vcombine.high %v4180_v46, %v4180_v46 }
 0x534   : > { %v5034_v24 = vrot.slane %v5033_v50, 4  ;;  %v4189_v54 = vcombine.high %v4187_v34, %v4187_v34  ;;  %v4196_v45 = vrot.slane %v4180_v46, %v9763_v49  ;;  %v4203_v39 = vrot.slane %v4187_v34, %v9763_v49 }
 0x535   : > { %v5028_v9 = vmax.f32 %v5026_v11, %v5027_v63  ;;  %v4210_v35 = vrot.slane %v4188_v6, %v9763_v49  ;;  %v4056_v4 = vmul.f32 %v4048_v8, %v9755_v38  ;;  %v4047_v61 = vmax.f32 %v10603_v2, 0.0 }
 0x536   : > { %v5035_v52 = vmax.f32 %v5033_v50, %v5034_v24  ;;  %v4217_v17 = vrot.slane %v4189_v54, %v9763_v49  ;;  %v4219_v3 = vcombine.high %v4203_v39, %v4203_v39  ;;  %v4581_v57 = vcombine.low %v4172_v41, %v4196_v45 }
 0x537   : > { %v5029_v32 = vrot.slane %v5028_v9, 2  ;;  %v4595_v22 = vrot.slane %v4210_v35, %v9763_v49  ;;  %v7951_v20 = vcombine.high %v4196_v45, %v4210_v35  ;;  %v4618_v37 = vrot.slane %v4203_v39, %v9763_v49 }
 0x538   : > { %v5036_v53 = vrot.slane %v5035_v52, 2  ;;  %v4221_v58 = vcombine.high %v4217_v17, %v4217_v17  ;;  %v4588_v1 = vrot.slane %v4581_v57, %v9763_v49  ;;  %v4627_v13 = vcombine.low %v4217_v17, %v4219_v3 }
 0x539   : > { %v5030_v2 = vmax.f32 %v5028_v9, %v5029_v32  ;;  %v4611_v44 = vrot.slane %v7951_v20, %v9763_v49  ;;  %v4064_v43 = vadd.f32 %v4056_v4, %v9760_v42  ;;  %v4055_v0 = vmul.f32 %v4047_v61, %v9755_v38 }
 0x53a   : > { %v5037_v56 = vmax.f32 %v5035_v52, %v5036_v53  ;;  %v4596_v41 = vcombine.low %v4588_v1, %v4595_v22  ;;  %v4634_v36 = vrot.slane %v4627_v13, %v9763_v49  ;;  %v4641_v55 = vrot.slane %v4221_v58, %v9763_v49 }
 0x53b   : > { %v5031_v5 = vrot.slane %v5030_v2, 1  ;;  %v4619_v12 = vcombine.low %v4611_v44, %v4618_v37  ;;  %v4320_v33 = vcombine.high %v4064_v43, %v4064_v43  ;;  %v4327_v16 = vrot.slane %v4064_v43, %v9763_v49 }
 0x53c   : > { %v5038_v19 = vrot.slane %v5037_v56, 1  ;;  %v4603_v26 = vrot.slane %v4596_v41, %v9763_v49  ;;  %v4642_v46 = vcombine.low %v4634_v36, %v4641_v55  ;;  %v4063_v11 = vadd.f32 %v4055_v0, %v9760_v42 }
 0x53d   : > { %v10706_v34 = vmax.f32 %v5030_v2, %v5031_v5  ;;  %v4626_v8 = vrot.slane %v4619_v12, %v9763_v49  ;;  %v4334_v63 = vrot.slane %v4320_v33, %v9763_v49  ;;  %v4335_v50 = vcombine.high %v4327_v16, %v4327_v16 }
 0x53e   : > { %v10710_v6 = vmax.f32 %v5037_v56, %v5038_v19  ;;  %v4649_v24 = vrot.slane %v4642_v46, %v9763_v49  ;;  %v5005_v54 = vsel %vm2387_vm1, %v4603_v26, -inf  ;;  %v4343_v45 = vrot.slane %v4327_v16, %v9763_v49 }
 0x53f   : > { %v5006_v39 = vrot.slane %v5005_v54, 4  ;;  %v5012_v9 = vsel %vm2387_vm1, %v4626_v8, -inf  ;;  %v4336_v35 = vcombine.high %v4334_v63, %v4334_v63  ;;  %v4350_v4 = vrot.slane %v4334_v63, %v9763_v49 }
 0x540   : > { %v5013_v61 = vrot.slane %v5012_v9, 4  ;;  %v5019_v52 = vsel %vm2387_vm1, %v4649_v24, -inf  ;;  %v10719_v17 = vrot.slane %v4335_v50, %v9763_v49  ;;  %v4271_v3 = vcombine.high %v4063_v11, %v4063_v11 }
 0x541   : > { %v5007_v57 = vmax.f32 %v5005_v54, %v5006_v39  ;;  %v5020_v32 = vrot.slane %v5019_v52, 4  ;;  %v4364_v22 = vrot.slane %v4336_v35, %v9763_v49  ;;  %v4366_v20 = vcombine.high %v4350_v4, %v4350_v4 }
 0x542   : > { %v5014_v37 = vmax.f32 %v5012_v9, %v5013_v61  ;;  %v4779_v53 = vrot.slane %v10719_v17, %v9763_v49  ;;  %v7953_v58 = vcombine.high %v4343_v45, %v10719_v17  ;;  %v4802_v1 = vrot.slane %v4350_v4, %v9763_v49 }
 0x543   : > { %v5008_v13 = vrot.slane %v5007_v57, 2  ;;  %v5021_v2 = vmax.f32 %v5019_v52, %v5020_v32  ;;  %v4368_v44 = vcombine.high %v4364_v22, %v4364_v22  ;;  %v4811_v43 = vcombine.low %v4364_v22, %v4366_v20 }
 0x544   : > { %v5015_v0 = vrot.slane %v5014_v37, 2  ;;  %v4795_v56 = vrot.slane %v7953_v58, %v9763_v49  ;;  %v4278_v41 = vrot.slane %v4063_v11, %v9763_v49  ;;  %v4285_v36 = vrot.slane %v4271_v3, %v9763_v49 }
 0x545   : > { %v5009_v55 = vmax.f32 %v5007_v57, %v5008_v13  ;;  %v5022_v5 = vrot.slane %v5021_v2, 2  ;;  %v4818_v12 = vrot.slane %v4811_v43, %v9763_v49  ;;  %v4825_v33 = vrot.slane %v4368_v44, %v9763_v49 }
 0x546   : > { %v5016_v16 = vmax.f32 %v5014_v37, %v5015_v0  ;;  %v4803_v19 = vcombine.low %v4795_v56, %v4802_v1  ;;  %v4286_v26 = vcombine.high %v4278_v41, %v4278_v41  ;;  %v4287_v46 = vcombine.high %v4285_v36, %v4285_v36 }
 0x547   : > { %v5010_v8 = vrot.slane %v5009_v55, 1  ;;  %v5023_v63 = vmax.f32 %v5021_v2, %v5022_v5  ;;  %v4826_v50 = vcombine.low %v4818_v12, %v4825_v33  ;;  %v4294_v24 = vrot.slane %v4278_v41, %v9763_v49 }
 0x548   : > { %v4810_v54 = vrot.slane %v4803_v19, %v9763_v49  ;;  %v4301_v11 = vrot.slane %v4285_v36, %v9763_v49  ;;  %v4308_v39 = vrot.slane %v4286_v26, %v9763_v49  ;;  %v4315_v9 = vrot.slane %v4287_v46, %v9763_v49 }
 0x549   : > { %v10736_v35 = vmax.f32 %v5009_v55, %v5010_v8  ;;  %v5024_v4 = vrot.slane %v5023_v63, 1  ;;  %v4833_v61 = vrot.slane %v4826_v50, %v9763_v49  ;;  %v4316_v52 = vcombine.high %v4294_v24, %v4294_v24 }
 0x54a   : > { %v5068_v17 = vsel %vm2387_vm1, %v4810_v54, -inf  ;;  %v4317_v3 = vcombine.high %v4301_v11, %v4301_v11  ;;  %v4318_v57 = vcombine.high %v4308_v39, %v4308_v39  ;;  %v4319_v32 = vcombine.high %v4315_v9, %v4315_v9 }
 0x54b   : > { %v10740_v22 = vmax.f32 %v5023_v63, %v5024_v4  ;;  %v5069_v20 = vrot.slane %v5068_v17, 4  ;;  %v5075_v37 = vsel %vm2387_vm1, %v4833_v61, -inf  ;;  %v4703_v58 = vrot.slane %v7952_v7, %v9763_v49 }
 0x54c   : > { %v5076_v1 = vrot.slane %v5075_v37, 4  ;;  %v4710_v13 = vrot.slane %v4294_v24, %v9763_v49  ;;  %v4719_v2 = vcombine.low %v4308_v39, %v4316_v52  ;;  %v4733_v44 = vrot.slane %v4318_v57, %v9763_v49 }
 0x54d   : > { %v4742_v43 = vcombine.low %v4301_v11, %v4315_v9  ;;  %v4756_v0 = vrot.slane %v4317_v3, %v9763_v49  ;;  %v4765_v56 = vcombine.low %v4319_v32, %v4343_v45  ;;  %v4042_v41 = vadd.f32 %v10613_v27, %v9747_v29 }
 0x54e   : > { %v10752_v36 = vmax.f32 %v5075_v37, %v5076_v1  ;;  %v4711_v55 = vcombine.low %v4703_v58, %v4710_v13  ;;  %v4726_v5 = vrot.slane %v4719_v2, %v9763_v49  ;;  %v4041_v48 = vadd.f32 %v10617_v59, %v9747_v29 }
 0x54f   : > { %v4749_v28 = vrot.slane %v4742_v43, %v9763_v49  ;;  %v4772_v7 = vrot.slane %v4765_v56, %v9763_v49  ;;  %v4050_v12 = vmax.f32 %v4042_v41, 0.0  ;;  %v5017_v33 = vrot.slane %v5016_v16, 1 }
 0x550   : > { %v5078_v19 = vrot.slane %v10752_v36, 2  ;;  %v4718_v45 = vrot.slane %v4711_v55, %v9763_v49  ;;  %v4734_v26 = vcombine.low %v4726_v5, %v4733_v44  ;;  %v4049_v27 = vmax.f32 %v4041_v48, 0.0 }
 0x551   : > { %v4757_v46 = vcombine.low %v4749_v28, %v4756_v0  ;;  %v10761_v8 = vcombine.low %v4772_v7, %v4779_v53  ;;  %v4058_v63 = vmul.f32 %v4050_v12, %v9755_v38  ;;  %v10764_v50 = vmax.f32 %v5016_v16, %v5017_v33 }
 0x552   : > { %v4741_v29 = vrot.slane %v4734_v26, %v9763_v49  ;;  %v5040_v59 = vsel %vm2387_vm1, %v4718_v45, -inf  ;;  %v4057_v24 = vmul.f32 %v4049_v27, %v9755_v38  ;;  %v5155_v54 = vsel %vm2566_vm9, %v10678_v62, %v10668_v10 }
 0x553   : > { %v4764_v11 = vrot.slane %v4757_v46, %v9763_v49  ;;  %v4787_v53 = vrot.slane %v10761_v8, %v9763_v49  ;;  %v5041_v39 = vrot.slane %v5040_v59, 4  ;;  %v4066_v9 = vadd.f32 %v4058_v63, %v9760_v42 }
 0x554   : > { %v5047_v16 = vsel %vm2387_vm1, %v4741_v29, -inf  ;;  %v4065_v4 = vadd.f32 %v4057_v24, %v9760_v42  ;;  %v5156_v61 = vsel %vm2554_vm14, %v10683_v21, %v5155_v54  ;;  %v10780_v38 = vmax.f32 %v5068_v17, %v5069_v20 }
 0x555   : > { %v5042_v52 = vmax.f32 %v5040_v59, %v5041_v39  ;;  %v5048_v3 = vrot.slane %v5047_v16, 4  ;;  %v5054_v57 = vsel %vm2387_vm1, %v4764_v11, -inf  ;;  %v4418_v32 = vcombine.high %v4066_v9, %v4066_v9 }
 0x556   : > { %v5055_v37 = vrot.slane %v5054_v57, 4  ;;  %v4425_v58 = vrot.slane %v4066_v9, %v9763_v49  ;;  %v4369_v1 = vcombine.high %v4065_v4, %v4065_v4  ;;  %v4376_v13 = vrot.slane %v4065_v4, %v9763_v49 }
 0x557   : > { %v5043_v2 = vrot.slane %v5042_v52, 2  ;;  %v5049_v44 = vmax.f32 %v5047_v16, %v5048_v3  ;;  %v4432_v42 = vrot.slane %v4418_v32, %v9763_v49  ;;  %v5157_v43 = vsel %vm2556_vm15, %v10666_v14, %v5156_v61 }
 0x558   : > { %v5056_v17 = vmax.f32 %v5054_v57, %v5055_v37  ;;  %v4433_v20 = vcombine.high %v4425_v58, %v4425_v58  ;;  %v4441_v0 = vrot.slane %v4425_v58, %v9763_v49  ;;  %v4383_v56 = vrot.slane %v4369_v1, %v9763_v49 }
 0x559   : > { %v5044_v41 = vmax.f32 %v5042_v52, %v5043_v2  ;;  %v5050_v55 = vrot.slane %v5049_v44, 2  ;;  %v4434_v5 = vcombine.high %v4432_v42, %v4432_v42  ;;  %v4448_v48 = vrot.slane %v4432_v42, %v9763_v49 }
 0x55a   : > { %v5057_v28 = vrot.slane %v5056_v17, 2  ;;  %v4455_v7 = vrot.slane %v4433_v20, %v9763_v49  ;;  %v4463_v12 = vcombine.high %v4441_v0, %v4441_v0  ;;  %v4894_v33 = vrot.slane %v4441_v0, %v9763_v49 }
 0x55b   : > { %v5045_v45 = vrot.slane %v5044_v41, 1  ;;  %v5051_v26 = vmax.f32 %v5049_v44, %v5050_v55  ;;  %v4462_v27 = vrot.slane %v4434_v5, %v9763_v49  ;;  %v4464_v46 = vcombine.high %v4448_v48, %v4448_v48 }
 0x55c   : > { %v4465_v63 = vcombine.high %v4455_v7, %v4455_v7  ;;  %v4903_v29 = vcombine.low %v4455_v7, %v4463_v12  ;;  %v4384_v59 = vcombine.high %v4376_v13, %v4376_v13  ;;  %v4385_v24 = vcombine.high %v4383_v56, %v4383_v56 }
 0x55d   : > { %v10794_v54 = vmax.f32 %v5044_v41, %v5045_v45  ;;  %v4926_v11 = vcombine.low %v4448_v48, %v4462_v27  ;;  %v10797_v39 = vrot.slane %v4464_v46, %v9763_v49  ;;  %v4392_v9 = vrot.slane %v4376_v13, %v9763_v49  ;;  %v8908_v46 = vld [vmem:[%s11350_s4] sm:$0xff] }
 0x55e   : > { %v4910_v16 = vrot.slane %v4903_v29, %v9763_v49  ;;  %v4917_v4 = vrot.slane %v4465_v63, %v9763_v49  ;;  %v4399_v61 = vrot.slane %v4383_v56, %v9763_v49  ;;  %v4406_v52 = vrot.slane %v4384_v59, %v9763_v49 }
 0x55f   : > { %v10805_v3 = vrot.slane %v4926_v11, %v9763_v49  ;;  %v4413_v57 = vrot.slane %v4385_v24, %v9763_v49  ;;  %v4414_v32 = vcombine.high %v4392_v9, %v4392_v9  ;;  %v5158_v37 = vsel %vm2558_vm2, %v10673_v47, %v5157_v43 }
 0x560   : > { %v4918_v58 = vcombine.low %v4910_v16, %v4917_v4  ;;  %v4416_v1 = vcombine.high %v4406_v52, %v4406_v52  ;;  %v4834_v13 = vcombine.low %v4392_v9, %v4406_v52  ;;  %v5159_v2 = vsel %vm2560_vm3, %v10736_v35, %v5158_v37 }
 0x561   : > { %v4848_v44 = vrot.slane %v4414_v32, %v9763_v49  ;;  %v4871_v42 = vrot.slane %v4413_v57, %v9763_v49  ;;  %v7954_v20 = vcombine.high %v4399_v61, %v4413_v57  ;;  %v5160_v0 = vsel %vm2562_vm4, %v10764_v50, %v5159_v2 }
 0x562   : > { %v4841_v56 = vrot.slane %v4834_v13, %v9763_v49  ;;  %v4857_v41 = vcombine.low %v4416_v1, %v4399_v61  ;;  %v5173_v55 = vsel %vm743_vm10, 0.0, %v5160_v0  ;;  %v5052_v43 = vrot.slane %v5051_v26, 1 }
 0x563   : > { %v4887_v5 = vrot.slane %v7954_v20, %v9763_v49  ;;  %8475 = vmatmul.mubr.msk.f32.vlgmr.msra.gmra.mrb[16].mxu1 %vm763_vm12, %v5173_v55  ;;  %v5058_v48 = vmax.f32 %v5056_v17, %v5057_v28  ;;  %v5061_v7 = vsel %vm2387_vm1, %v4787_v53, -inf  ;;  %v5071_v12 = vrot.slane %v10780_v38, 2 }
 0x564   : > { %v4849_v45 = vcombine.low %v4841_v56, %v4848_v44  ;;  %v4864_v27 = vrot.slane %v4857_v41, %v9763_v49  ;;  %8484 = vmatpush3.msra.mxu1 %v8908_v46  ;;  %8477 = vmatprep.mubr.msk.f32.mxu1 %vm9178_vm8, %v9177_v31  ;;  %v10831_v63 = vmax.f32 %v5051_v26, %v5052_v43  ;;  %v5062_v17 = vrot.slane %v5061_v7, 4 }
 0x565   : > { %v4895_v28 = vcombine.low %v4887_v5, %v4894_v33  ;;  %v5059_v8 = vrot.slane %v5058_v48, 1  ;;  %v5072_v53 = vmax.f32 %v10780_v38, %v5071_v12  ;;  %v5161_v29 = vsel %vm2564_vm5, %v10706_v34, %v10740_v22  ;;  %8494 = vmatprep.subr.mxu1 %v9177_v31 }
 0x566   : > { %v4856_v59 = vrot.slane %v4849_v45, %v9763_v49  ;;  %v4872_v24 = vcombine.low %v4864_v27, %v4871_v42  ;;  %v5063_v11 = vmax.f32 %v5061_v7, %v5062_v17  ;;  %v5162_v9 = vsel %vm2566_vm9, %v10710_v6, %v5161_v29 }
 0x567   : > { %v4902_v26 = vrot.slane %v4895_v28, %v9763_v49  ;;  %v10842_v16 = vmax.f32 %v5058_v48, %v5059_v8  ;;  %v5073_v33 = vrot.slane %v5072_v53, 1  ;;  %v5163_v38 = vsel %vm2554_vm14, %v10794_v54, %v5162_v9 }
 0x568   : > { %v4879_v4 = vrot.slane %v4872_v24, %v9763_v49  ;;  %v5082_v61 = vsel %vm2387_vm1, %v4856_v59, -inf  ;;  %v5064_v52 = vrot.slane %v5063_v11, 2  ;;  %v5164_v57 = vsel %vm2556_vm15, %v10831_v63, %v5163_v38 }
 0x569   : > { %v5083_v32 = vrot.slane %v5082_v61, 4  ;;  %v5096_v37 = vsel %vm2387_vm1, %v4902_v26, -inf  ;;  %v10851_v1 = vmax.f32 %v5072_v53, %v5073_v33  ;;  %v5165_v13 = vsel %vm2558_vm2, %v10842_v16, %v5164_v57 }
 0x56a   : > { %v5089_v2 = vsel %vm2387_vm1, %v4879_v4, -inf  ;;  %v5097_v44 = vrot.slane %v5096_v37, 4  ;;  %v5065_v42 = vmax.f32 %v5063_v11, %v5064_v52  ;;  %v4925_v20 = vrot.slane %v4918_v58, %v9763_v49 }
 0x56b   : > { %v5084_v0 = vmax.f32 %v5082_v61, %v5083_v32  ;;  %v5090_v56 = vrot.slane %v5089_v2, 4  ;;  %v5079_v41 = vmax.f32 %v10752_v36, %v5078_v19  ;;  %v5136_v55 = vsel %vm2554_vm14, %v10678_v62, %v10668_v10 }
 0x56c   : > { %v5098_v43 = vmax.f32 %v5096_v37, %v5097_v44  ;;  %v5066_v5 = vrot.slane %v5065_v42, 1  ;;  %v5103_v48 = vsel %vm2387_vm1, %v4925_v20, -inf  ;;  %v5137_v7 = vsel %vm2556_vm15, %v10683_v21, %v5136_v55 }
 0x56d   : > { %v5085_v12 = vrot.slane %v5084_v0, 2  ;;  %v5091_v45 = vmax.f32 %v5089_v2, %v5090_v56  ;;  %v5080_v58 = vrot.slane %v5079_v41, 1  ;;  %v5104_v27 = vrot.slane %v5103_v48, 4 }
 0x56e   : > { %v10866_v46 = vmax.f32 %v5065_v42, %v5066_v5  ;;  %v5099_v17 = vrot.slane %v5098_v43, 2  ;;  %v5138_v36 = vsel %vm2558_vm2, %v10666_v14, %v5137_v7  ;;  %v5141_v19 = vsel %vm2564_vm5, %v10740_v22, %v10764_v50 }
 0x56f   : > { %v5086_v28 = vmax.f32 %v5084_v0, %v5085_v12  ;;  %v5092_v8 = vrot.slane %v5091_v45, 2  ;;  %v10873_v53 = vmax.f32 %v5079_v41, %v5080_v58  ;;  %v5105_v29 = vmax.f32 %v5103_v48, %v5104_v27 }
 0x570   : > { %v5166_v59 = vsel %vm2560_vm3, %v10866_v46, %v5165_v13  ;;  %v5100_v24 = vmax.f32 %v5098_v43, %v5099_v17  ;;  %v5139_v11 = vsel %vm2560_vm3, %v10673_v47, %v5138_v36  ;;  %v5142_v9 = vsel %vm2566_vm9, %v10706_v34, %v5141_v19 }
 0x571   : > { %v5087_v26 = vrot.slane %v5086_v28, 1  ;;  %v5167_v33 = vsel %vm2562_vm4, %v10851_v1, %v5166_v59  ;;  %v5093_v38 = vmax.f32 %v5091_v45, %v5092_v8  ;;  %v5106_v4 = vrot.slane %v5105_v29, 2 }
 0x572   : > { %8478 = vmatmul.mubr.msk.f32.gmra.mrb[18].mxu1 %vm763_vm12, %v5167_v33  ;;  %v5101_v61 = vrot.slane %v5100_v24, 1  ;;  %v5140_v52 = vsel %vm2562_vm4, %v10736_v35, %v5139_v11  ;;  %v5143_v57 = vsel %vm2554_vm14, %v10710_v6, %v5142_v9  ;;  %v5148_v32 = vsel %vm2564_vm5, %v10873_v53, %v10851_v1 }
 0x573   : > { %8480 = vmatprep.mubr.msk.f32.mxu1 %vm9178_vm8, %v9177_v31  ;;  %v10893_v37 = vmax.f32 %v5086_v28, %v5087_v26  ;;  %v5094_v13 = vrot.slane %v5093_v38, 1  ;;  %v5107_v2 = vmax.f32 %v5105_v29, %v5106_v4  ;;  %v5153_v44 = vsel %vm608_vm0, 0.0, %v5140_v52 }
 0x574   : > { %v10896_v42 = vmax.f32 %v5100_v24, %v5101_v61  ;;  %v5144_v20 = vsel %vm2556_vm15, %v10794_v54, %v5143_v57  ;;  %v5349_v0 = vsel %vm2564_vm5, %v10678_v62, %v10668_v10  ;;  %v5356_v56 = vsel %vm2564_vm5, %v10710_v6, %v10706_v34 }
 0x575   : > { %v10906_v41 = vmax.f32 %v5093_v38, %v5094_v13  ;;  %v5108_v55 = vrot.slane %v5107_v2, 1  ;;  %v5168_v43 = vsel %vm2564_vm5, %v10893_v37, %v10873_v53  ;;  %v5145_v5 = vsel %vm2558_vm2, %v10831_v63, %v5144_v20 }
 0x576   : > { %v5146_v48 = vsel %vm2560_vm3, %v10842_v16, %v5145_v5  ;;  %v5149_v10 = vsel %vm2566_vm9, %v10893_v37, %v5148_v32  ;;  %v5350_v7 = vsel %vm2566_vm9, %v10683_v21, %v5349_v0  ;;  %v5357_v12 = vsel %vm2566_vm9, %v10794_v54, %v5356_v56  ;;  %v8909_v5 = vld [vmem:[%s11350_s4 + $0x10] sm:$0xff] }
 0x577   : > { %v5109_v45 = vmax.f32 %v5107_v2, %v5108_v55  ;;  %v5169_v58 = vsel %vm2566_vm9, %v10906_v41, %v5168_v43  ;;  %v5147_v27 = vsel %vm2562_vm4, %v10866_v46, %v5146_v48  ;;  %v5150_v17 = vsel %vm2554_vm14, %v10906_v41, %v5149_v10 }
 0x578   : > { %v5170_v36 = vsel %vm2554_vm14, %v10896_v42, %v5169_v58  ;;  %v5151_v19 = vsel %vm2556_vm15, %v10896_v42, %v5150_v17  ;;  %v5351_v28 = vsel %vm2554_vm14, %v10666_v14, %v5350_v7  ;;  %v5358_v8 = vsel %vm2554_vm14, %v10831_v63, %v5357_v12 }
 0x579   : > { %v5171_v29 = vsel %vm2556_vm15, %v5109_v45, %v5170_v36  ;;  %v5352_v59 = vsel %vm2556_vm15, %v10673_v47, %v5351_v28  ;;  %v5359_v24 = vsel %vm2556_vm15, %v10842_v16, %v5358_v8  ;;  %v4941_v11 = vcombine.low %v10805_v3, %v10797_v39 }
 0x57a   : > { %8481 = vmatmul.mubr.msk.f32.gmra.mrb[20].mxu1 %vm763_vm12, %v5171_v29  ;;  %v5353_v9 = vsel %vm2558_vm2, %v10736_v35, %v5352_v59  ;;  %v5360_v26 = vsel %vm2558_vm2, %v10866_v46, %v5359_v24  ;;  %v5363_v33 = vsel %vm2564_vm5, %v10906_v41, %v10893_v37  ;;  %v5456_v38 = vsel %vm2564_vm5, %v10683_v21, %v10678_v62 }
 0x57b   : > { %8485 = vmatprep.mubr.msk.f32.mxu1 %vm9178_vm8, %v9177_v31  ;;  %v5354_v39 = vsel %vm2560_vm3, %v10764_v50, %v5353_v9  ;;  %v5361_v3 = vsel %vm2560_vm3, %v10851_v1, %v5360_v26  ;;  %v4948_v4 = vrot.slane %v4941_v11, %v9763_v49  ;;  %v5364_v61 = vsel %vm2566_vm9, %v10896_v42, %v5363_v33  ;;  %v5713_v26 = vld [vmem:[#allocation9 + $0x28] sm:$0xff]  ;;  %v5715_v33 = vld [vmem:[#allocation9 + $0x38] sm:$0xff] }
 0x57c   : > { %v5355_v52 = vsel %vm2562_vm4, %v10740_v22, %v5354_v39  ;;  %v5362_v62 = vsel %vm2562_vm4, %v10873_v53, %v5361_v3  ;;  %v5365_v57 = vsel %vm2554_vm14, %v5109_v45, %v5364_v61  ;;  %v5457_v32 = vsel %vm2566_vm9, %v10666_v14, %v5456_v38  ;;  %v5712_v38 = vld [vmem:[#allocation9 + $0x20] sm:$0xff]  ;;  %v5714_v3 = vld [vmem:[#allocation9 + $0x30] sm:$0xff]  ;;  %v5706_v61 = vld [vmem:[#allocation9 + $0x18] sm:$0xff] }
 0x57d   : > { %v5110_v13 = vsel %vm2387_vm1, %v4948_v4, -inf  ;;  %v5458_v2 = vsel %vm2554_vm14, %v10673_v47, %v5457_v32  ;;  %v5463_v49 = vsel %vm2564_vm5, %v10794_v54, %v10710_v6  ;;  %v5470_v20 = vsel %vm2564_vm5, %v10896_v42, %v10906_v41  ;;  %v5704_v4 = vld [vmem:[#allocation9 + $0x8] sm:$0xff] }
 0x57e   : > { %8486 = vmatmul.mubr.msk.f32.vlgmr.msra.gmra.mrb[22].mxu1 %vm763_vm12, %v5153_v44  ;;  %v5111_v0 = vrot.slane %v5110_v13, 4  ;;  %v5459_v56 = vsel %vm2556_vm15, %v10736_v35, %v5458_v2  ;;  %v5464_v55 = vsel %vm2566_vm9, %v10831_v63, %v5463_v49  ;;  %v5471_v43 = vsel %vm2566_vm9, %v5109_v45, %v5470_v20 }
 0x57f   : > { %8495 = vmatpush3.msra.mxu1 %v8909_v5  ;;  %8488 = vmatprep.mubr.msk.f32.mxu1 %vm9178_vm8, %v9177_v31  ;;  %v5460_v44 = vsel %vm2558_vm2, %v10764_v50, %v5459_v56  ;;  %v5465_v48 = vsel %vm2554_vm14, %v10842_v16, %v5464_v55  ;;  %v5565_v10 = vsel %vm2564_vm5, %v10666_v14, %v10683_v21  ;;  %vm5716_vm0 = vcmask 130048  }
 0x580   : > { %8505 = vmatprep.subr.mxu1 %v9177_v31  ;;  %v5112_v7 = vmax.f32 %v5110_v13, %v5111_v0  ;;  %v5461_v12 = vsel %vm2560_vm3, %v10740_v22, %v5460_v44  ;;  %v5466_v58 = vsel %vm2556_vm15, %v10866_v46, %v5465_v48  ;;  %v5566_v17 = vsel %vm2566_vm9, %v10673_v47, %v5565_v10 }
 0x581   : > { %v5462_v36 = vsel %vm2562_vm4, %v10706_v34, %v5461_v12  ;;  %v5467_v28 = vsel %vm2558_vm2, %v10851_v1, %v5466_v58  ;;  %v5567_v14 = vsel %vm2554_vm14, %v10736_v35, %v5566_v17  ;;  %v5572_v21 = vsel %vm2564_vm5, %v10831_v63, %v10794_v54 }
 0x582   : > { %8489 = vmatmul.mubr.msk.f32.gmra.mrb[24].mxu1 %vm763_vm12, %v5147_v27  ;;  %v5113_v8 = vrot.slane %v5112_v7, 2  ;;  %v5468_v29 = vsel %vm2560_vm3, %v10873_v53, %v5467_v28  ;;  %v5568_v47 = vsel %vm2556_vm15, %v10764_v50, %v5567_v14  ;;  %v5573_v59 = vsel %vm2566_vm9, %v10842_v16, %v5572_v21 }
 0x583   : > { %8491 = vmatprep.mubr.msk.f32.mxu1 %vm9178_vm8, %v9177_v31  ;;  %v5469_v35 = vsel %vm2562_vm4, %v10893_v37, %v5468_v29  ;;  %v5569_v54 = vsel %vm2558_vm2, %v10740_v22, %v5568_v47  ;;  %v5574_v63 = vsel %vm2554_vm14, %v10866_v46, %v5573_v59  ;;  %v5579_v27 = vsel %vm2564_vm5, %v5109_v45, %v10896_v42  ;;  %v8910_v45 = vld [vmem:[%s11350_s4 + $0x18] sm:$0xff] }
 0x584   : > { %v5114_v24 = vmax.f32 %v5112_v7, %v5113_v8  ;;  %v5570_v50 = vsel %vm2560_vm3, %v10706_v34, %v5569_v54  ;;  %v5575_v16 = vsel %vm2556_vm15, %v10851_v1, %v5574_v63  ;;  %v8551_v39 = vpack.c.bf16 %v5715_v33, %v5713_v26 }
 0x585   : > { %v5571_v11 = vsel %vm2562_vm4, %v10710_v6, %v5570_v50  ;;  %v5576_v9 = vsel %vm2558_vm2, %v10873_v53, %v5575_v16 }
 0x586   : > { %8492 = vmatmul.mubr.msk.f32.gmra.mrb[26].mxu1 %vm763_vm12, %v5151_v19  ;;  %v5115_v22 = vrot.slane %v5114_v24, 1  ;;  %v5577_v46 = vsel %vm2560_vm3, %v10893_v37, %v5576_v9  ;;  %v8911_v37 = vld [vmem:[%s11350_s4 + $0x20] sm:$0xff] }
 0x587   : > { %8496 = vmatprep.mubr.msk.f32.mxu1 %vm9178_vm8, %v9177_v31  ;;  %v5578_v34 = vsel %vm2562_vm4, %v10906_v41, %v5577_v46 }
 0x588   : > { %v5116_v42 = vmax.f32 %v5114_v24, %v5115_v22 }
 0x58a   : > { %8497 = vmatmul.mubr.msk.f32.vlgmr.msra.gmra.mrb[28].mxu1 %vm763_vm12, %v5355_v52  ;;  %v5366_v6 = vsel %vm2556_vm15, %v5116_v42, %v5365_v57  ;;  %v5472_v1 = vsel %vm2554_vm14, %v5116_v42, %v5471_v43  ;;  %v5580_v53 = vsel %vm2566_vm9, %v5116_v42, %v5579_v27  ;;  %v8553_v52 = vpack.c.bf16 %v5714_v3, %v5712_v38 }
 0x58b   : > { %8506 = vmatpush3.msra.mxu1 %v8910_v45  ;;  %8499 = vmatprep.mubr.msk.f32.mxu1 %vm9178_vm8, %v9177_v31  ;;  %v5474_v41 = vsel %vm2904_vm6, %v5472_v1, 0.0  ;;  %v5582_v19 = vsel %vm3015_vm7, %v5580_v53, 0.0  ;;  %v5708_v3 = vrot.slane %v10580_v40, 1 }
 0x58c   : > { %8516 = vmatprep.subr.mxu1 %v9177_v31 }
 0x58e   : > { %8500 = vmatmul.mubr.msk.f32.gmra.mrb[30].mxu1 %vm763_vm12, %v5362_v62  ;;  %v8555_v62 = vpack.c.bf16 %v5706_v61, %v5704_v4  ;;  %v5865_v4 = vrot.slane %v10580_v40, 2 }
 0x58f   : > { %8502 = vmatprep.mubr.msk.f32.mxu1 %vm9178_vm8, %v9177_v31 }
 0x592   : > { %8503 = vmatmul.mubr.msk.f32.gmra.mrb[32].mxu1 %vm763_vm12, %v5366_v6 }
 0x593   : > { %8507 = vmatprep.mubr.msk.f32.mxu1 %vm9178_vm8, %v9177_v31 }
 0x596   : > { %8508 = vmatmul.mubr.msk.f32.vlgmr.msra.gmra.mrb[34].mxu1 %vm763_vm12, %v5462_v36 }
 0x597   : > { %8517 = vmatpush3.msra.mxu1 %v8911_v37  ;;  %8510 = vmatprep.mubr.msk.f32.mxu1 %vm9178_vm8, %v9177_v31 }
 0x598   : > { %8552 = vmatprep.subr.bf16.mxu1 %v8551_v39 }
 0x59a   : > { %8511 = vmatmul.mubr.msk.f32.gmra.mrb[36].mxu1 %vm763_vm12, %v5469_v35 }
 0x59b   : > { %8513 = vmatprep.mubr.msk.f32.mxu1 %vm9178_vm8, %v9177_v31 }
 0x59e   : > { %8514 = vmatmul.mubr.msk.f32.gmra.mrb[38].mxu1 %vm763_vm12, %v5474_v41 }
 0x59f   : > { %8518 = vmatprep.mubr.msk.f32.mxu1 %vm9178_vm8, %v9177_v31 }
 0x5a2   : > { %8519 = vmatmul.mubr.msk.f32.vlgmr.msra.gmra.mrb[40].mxu1 %vm763_vm12, %v5571_v11 }
 0x5a3   : > { %8521 = vmatprep.mubr.msk.f32.mxu1 %vm9178_vm8, %v9177_v31  ;;  %8554 = vmatpush1.bf16.msra.mxu1 %v8553_v52 }
 0x5a4   : > { %8556 = vmatprep.subr.bf16.mxu1 %v8555_v62  ;;  %v5951_v62 = vrot.slane %v10580_v40, 3 }
 0x5a6   : > { %8522 = vmatmul.mubr.msk.f32.gmra.mrb[42].mxu1 %vm763_vm12, %v5578_v34 }
 0x5a7   : > { %8524 = vmatprep.mubr.msk.f32.mxu1 %vm9178_vm8, %v9177_v31 }
 0x5aa   : > { %8525 = vmatmul.mubr.msk.f32.gmra.mrb[44].mxu1 %vm763_vm12, %v5582_v19 }
 0x5ab   : > { %5784 = vmatprep.mubr.f32.mxu1 %v9177_v31 }
 0x636   : > { %v5247_v57 = vpop.f32.mrb[16].mxu1 }
 0x637   : > { %v8476_v32 = vpop.f32.mrb[17].mxu1 }
 0x638   : > { %v5703_v32 = vld [vmem:[#allocation9] sm:$0xff] }
 0x645   : > { %v5252_v13 = vpop.f32.mrb[18].mxu1 }
 0x646   : > { %v8479_v2 = vpop.f32.mrb[19].mxu1 }
 0x647   : > { %v6123_v2 = vrot.slane %v10580_v40, 5 }
 0x64d   : > { %v5257_v49 = vpop.f32.mrb[20].mxu1 }
 0x64e   : > { %v8482_v20 = vpop.f32.mrb[21].mxu1 }
 0x64f   : > { %v6295_v20 = vrot.slane %v10580_v40, 7 }
 0x651   : > { %v5334_v0 = vpop.f32.mrb[22].mxu1 }
 0x652   : > { %v5335_v56 = vadd.f32 %v5334_v0, %v5247_v57  ;;  %v8487_v55 = vpop.f32.mrb[23].mxu1  ;;  %v6037_v57 = vrot.slane %v10580_v40, 4 }
 0x655   : > { %v5339_v43 = vpop.f32.mrb[24].mxu1 }
 0x656   : > { %v5340_v5 = vadd.f32 %v5339_v43, %v5252_v13  ;;  %v8490_v44 = vpop.f32.mrb[25].mxu1  ;;  %v5705_v13 = vld [vmem:[#allocation9 + $0x10] sm:$0xff]  ;;  %v5872_v43 = vld [vmem:[#allocation9 + $0x48] sm:$0xff] }
 0x657   : > { %v11098_v44 = vld [vmem:[#allocation9 + $0x40] sm:$0xff] }
 0x659   : > { %v5344_v48 = vpop.f32.mrb[26].mxu1 }
 0x65a   : > { %v5345_v10 = vadd.f32 %v5344_v48, %v5257_v49  ;;  %v8493_v7 = vpop.f32.mrb[27].mxu1  ;;  %v6209_v49 = vrot.slane %v10580_v40, 6  ;;  %v6467_v48 = vrot.slane %v10585_v18, 1 }
 0x65b   : > { %v11103_v7 = vld [vmem:[#allocation9 + $0x68] sm:$0xff] }
 0x65d   : > { %v5439_v12 = vpop.f32.mrb[28].mxu1 }
 0x65e   : > { %v5453_v58 = vadd.f32 %v5439_v12, %v5335_v56  ;;  %v8498_v17 = vpop.f32.mrb[29].mxu1  ;;  %v11105_v12 = vld [vmem:[#allocation9 + $0x78] sm:$0xff] }
 0x65f   : > { %v6637_v17 = vrot.slane %v10585_v18, 3 }
 0x661   : > { %v5444_v36 = vpop.f32.mrb[30].mxu1 }
 0x662   : > { %v5454_v28 = vadd.f32 %v5444_v36, %v5340_v5  ;;  %v8501_v14 = vpop.f32.mrb[31].mxu1  ;;  %v5874_v5 = vld [vmem:[#allocation9 + $0x58] sm:$0xff]  ;;  %v6723_v36 = vrot.slane %v10585_v18, 4 }
 0x663   : > { %v6809_v14 = vrot.slane %v10585_v18, 5 }
 0x665   : > { %v5449_v21 = vpop.f32.mrb[32].mxu1 }
 0x666   : > { %v5455_v8 = vadd.f32 %v5449_v21, %v5345_v10  ;;  %v8504_v29 = vpop.f32.mrb[33].mxu1  ;;  %v11101_v10 = vld [vmem:[#allocation9 + $0x50] sm:$0xff]  ;;  %v6895_v21 = vrot.slane %v10585_v18, 6 }
 0x667   : > { %v8557_v29 = vpack.c.bf16 %v5705_v13, %v5703_v32 }
 0x669   : > { %v5548_v47 = vpop.f32.mrb[34].mxu1 }
 0x66a   : > { %v5562_v59 = vadd.f32 %v5548_v47, %v5453_v58  ;;  %v8509_v35 = vpop.f32.mrb[35].mxu1  ;;  %v6551_v58 = vrot.slane %v10585_v18, 2  ;;  %v6981_v47 = vrot.slane %v10585_v18, 7 }
 0x66b   : > { %v8559_v35 = vpack.c.bf16 %v5874_v5, %v5872_v43 }
 0x66d   : > { %v5553_v54 = vpop.f32.mrb[36].mxu1 }
 0x66e   : > { %v5563_v63 = vadd.f32 %v5553_v54, %v5454_v28  ;;  %v8512_v27 = vpop.f32.mrb[37].mxu1  ;;  %v8561_v54 = vpack.c.bf16 %v11101_v10, %v11098_v44  ;;  %v5957_v44 = vld [vmem:[#allocation9 + $0x60] sm:$0xff] }
 0x671   : > { %v5558_v24 = vpop.f32.mrb[38].mxu1 }
 0x672   : > { %v5564_v50 = vadd.f32 %v5558_v24, %v5455_v8  ;;  %v8515_v16 = vpop.f32.mrb[39].mxu1 }
 0x675   : > { %v5656_v11 = vpop.f32.mrb[40].mxu1 }
 0x676   : > { %v5670_v9 = vadd.f32 %v5656_v11, %v5562_v59  ;;  %v8520_v22 = vpop.f32.mrb[41].mxu1 }
 0x678   : > { %v5673_v46 = vadd.f32 %v5670_v9, %v10561_v25 }
 0x679   : > { %v5661_v34 = vpop.f32.mrb[42].mxu1 }
 0x67a   : > { %v5676_v42 = vmax.f32 %v5673_v46, 0.0  ;;  %v5671_v6 = vadd.f32 %v5661_v34, %v5563_v63  ;;  %v8523_v1 = vpop.f32.mrb[43].mxu1  ;;  %v8563_v63 = vpack.c.bf16 %v11105_v12, %v11103_v7  ;;  %v6044_v12 = vld [vmem:[#allocation9 + $0x88] sm:$0xff] }
 0x67c   : > { %v5679_v53 = vmul.f32 %v5676_v42, %v10565_v60  ;;  %v5674_v45 = vadd.f32 %v5671_v6, %v10561_v25 }
 0x67d   : > { %v5666_v37 = vpop.f32.mrb[44].mxu1 }
 0x67e   : > { %v5677_v41 = vmax.f32 %v5674_v45, 0.0  ;;  %v5672_v19 = vadd.f32 %v5666_v37, %v5564_v50  ;;  %v8526_v26 = vpop.f32.mrb[45].mxu1  ;;  %v5682_v33 = vadd.f32 %v5679_v53, %v10570_v15 }
 0x680   : > { %v5680_v38 = vmul.f32 %v5677_v41, %v10565_v60  ;;  %v5675_v39 = vadd.f32 %v5672_v19, %v10561_v25  ;;  %v7153_v25 = vrot.slane %v10583_v51, 1  ;;  %v5688_v0 = vrot.slane %v5682_v33, 1 }
 0x682   : > { %v5683_v61 = vadd.f32 %v5680_v38, %v10570_v15  ;;  %v5678_v52 = vmax.f32 %v5675_v39, 0.0 }
 0x684   : > { %v5689_v56 = vrot.slane %v5683_v61, 1  ;;  %v5681_v55 = vmul.f32 %v5678_v52, %v10565_v60 }
 0x686   : > { %v5690_v60 = vsel %vm1139_vm11, %v5688_v0, %v5689_v56  ;;  %v5684_v28 = vadd.f32 %v5681_v55, %v10570_v15  ;;  %v7323_v0 = vrot.slane %v10583_v51, 3 }
 0x687   : > { %v5696_v8 = vmax.f32 %v5682_v33, %v5690_v60  ;;  %v6130_v60 = vld [vmem:[#allocation9 + $0xa8] sm:$0xff] }
 0x688   : > { %v5691_v59 = vrot.slane %v5684_v28, 1 }
 0x689   : > { %v5710_v27 = vsel %vm743_vm10, %v5708_v3, %v5696_v8  ;;  %v5700_v15 = vrot.slane %v5696_v8, 7  ;;  %v5867_v24 = vrot.slane %v5696_v8, 1  ;;  %v5953_v50 = vrot.slane %v5696_v8, 2 }
 0x68a   : > { %v5692_v16 = vsel %vm1139_vm11, %v5689_v56, %v5691_v59  ;;  %v5698_v11 = vmax.f32 %v5684_v28, %v5691_v59  ;;  %7970 = vmatmul.mubr.msk.f32.vlgmr.msra.gmra.mrb[46].mxu1 %vm5716_vm0, %v5710_v27  ;;  %v6039_v9 = vrot.slane %v5696_v8, 3  ;;  %v6125_v22 = vrot.slane %v5696_v8, 4  ;;  %v6132_v28 = vld [vmem:[#allocation9 + $0xb8] sm:$0xff]  ;;  %v7442_v59 = vld [vmem:[#allocation12 + $0x88] sm:$0xff] }
 0x68b   : > { %v5697_v46 = vmax.f32 %v5683_v61, %v5692_v16  ;;  %8558 = vmatpush1.bf16.msra.mxu1 %v8557_v29  ;;  %5858 = vmatprep.mubr.f32.mxu1 %v9177_v31  ;;  %v5702_v34 = vsel %vm743_vm10, %v10580_v40, %v5700_v15  ;;  %v5869_v42 = vsel %vm743_vm10, %v5865_v4, %v5867_v24  ;;  %v6211_v6 = vrot.slane %v5696_v8, 5  ;;  %v6131_v29 = vld [vmem:[#allocation9 + $0xb0] sm:$0xff]  ;;  %v7444_v15 = vld [vmem:[#allocation12 + $0x98] sm:$0xff]  ;;  %v6216_v24 = vld [vmem:[#allocation9 + $0xc8] sm:$0xff] }
 0x68c   : > { %8560 = vmatprep.subr.bf16.mxu1 %v8559_v35  ;;  %v5955_v1 = vsel %vm743_vm10, %v5951_v62, %v5953_v50  ;;  %v11128_v53 = vsel %vm743_vm10, %v6037_v57, %v6039_v9  ;;  %v11131_v45 = vsel %vm743_vm10, %v6123_v2, %v6125_v22  ;;  %v6297_v37 = vrot.slane %v5696_v8, 6  ;;  %v6129_v8 = vld [vmem:[#allocation9 + $0xa0] sm:$0xff]  ;;  %v7443_v27 = vld [vmem:[#allocation12 + $0x90] sm:$0xff] }
 0x68d   : > { %v11134_v41 = vsel %vm743_vm10, %v6209_v49, %v6211_v6  ;;  %v6382_v19 = vrot.slane %v5697_v46, 7  ;;  %v11137_v26 = vsel %vm743_vm10, %v6467_v48, %v5697_v46  ;;  %v6553_v40 = vrot.slane %v5697_v46, 1  ;;  %v5959_v48 = vld [vmem:[#allocation9 + $0x70] sm:$0xff]  ;;  %v7425_v35 = vld [vmem:[#allocation12] sm:$0xff]  ;;  %v7428_v9 = vld [vmem:[#allocation12 + $0x18] sm:$0xff] }
 0x68e   : > { %v11140_v33 = vsel %vm743_vm10, %v6295_v20, %v6297_v37  ;;  %v6639_v38 = vrot.slane %v5697_v46, 2  ;;  %v6725_v39 = vrot.slane %v5697_v46, 3  ;;  %v6811_v3 = vrot.slane %v5697_v46, 4  ;;  %v6218_v22 = vld [vmem:[#allocation9 + $0xd8] sm:$0xff]  ;;  %v7430_v37 = vld [vmem:[#allocation12 + $0x28] sm:$0xff] }
 0x68f   : > { %v11144_v4 = vsel %vm743_vm10, %v10585_v18, %v6382_v19  ;;  %v11147_v61 = vsel %vm743_vm10, %v6551_v58, %v6553_v40  ;;  %v6897_v52 = vrot.slane %v5697_v46, 5  ;;  %v6983_v62 = vrot.slane %v5697_v46, 6  ;;  %v6046_v58 = vld [vmem:[#allocation9 + $0x98] sm:$0xff]  ;;  %v7445_v46 = vld [vmem:[#allocation12 + $0xa0] sm:$0xff] }
 0x690   : > { %v11150_v57 = vsel %vm743_vm10, %v6637_v17, %v6639_v38  ;;  %v11153_v32 = vsel %vm743_vm10, %v6723_v36, %v6725_v39  ;;  %v11156_v13 = vsel %vm743_vm10, %v6809_v14, %v6811_v3  ;;  %v7068_v2 = vrot.slane %v5698_v11, 7  ;;  %v6045_v36 = vld [vmem:[#allocation9 + $0x90] sm:$0xff]  ;;  %v7448_v39 = vld [vmem:[#allocation12 + $0xb8] sm:$0xff] }
 0x691   : > { %v11159_v49 = vsel %vm743_vm10, %v6895_v21, %v6897_v52  ;;  %v11162_v18 = vsel %vm743_vm10, %v6981_v47, %v6983_v62  ;;  %v7237_v20 = vrot.slane %v10583_v51, 2  ;;  %v11174_v55 = vsel %vm743_vm10, %v7153_v25, %v5698_v11  ;;  %v6043_v25 = vld [vmem:[#allocation9 + $0x80] sm:$0xff]  ;;  %v7447_v38 = vld [vmem:[#allocation12 + $0xb0] sm:$0xff] }
 0x692   : > { %7971 = vmatmul.mubr.msk.f32.vlgmr.msra.gmra.mrb[46].mxu1 %vm5716_vm0, %v5702_v34  ;;  %v11169_v56 = vsel %vm743_vm10, %v10583_v51, %v7068_v2  ;;  %v7239_v43 = vrot.slane %v5698_v11, 1  ;;  %v7325_v5 = vrot.slane %v5698_v11, 2  ;;  %v8565_v51 = vpack.c.bf16 %v5959_v48, %v5957_v44  ;;  %v7441_v47 = vld [vmem:[#allocation12 + $0x80] sm:$0xff]  ;;  %v7427_v11 = vld [vmem:[#allocation12 + $0x10] sm:$0xff]  ;;  %v7446_v34 = vld [vmem:[#allocation12 + $0xa8] sm:$0xff] }
 0x693   : > { %8562 = vmatpush1.bf16.msra.mxu1 %v8561_v54  ;;  %5942 = vmatprep.mubr.f32.mxu1 %v9177_v31  ;;  %v8567_v17 = vpack.c.bf16 %v6046_v58, %v6044_v12  ;;  %v8569_v14 = vpack.c.bf16 %v6045_v36, %v6043_v25  ;;  %v8571_v21 = vpack.c.bf16 %v6132_v28, %v6130_v60  ;;  %v7431_v62 = vld [vmem:[#allocation12 + $0x30] sm:$0xff]  ;;  %v7432_v2 = vld [vmem:[#allocation12 + $0x38] sm:$0xff]  ;;  %v7449_v44 = vld [vmem:[#allocation12 + $0xc0] sm:$0xff]  ;;  %vm7661_vm11 = vcmask 58400  }
 0x694   : > { %8564 = vmatprep.subr.bf16.mxu1 %v8563_v63  ;;  %v11178_v10 = vsel %vm743_vm10, %v7237_v20, %v7239_v43  ;;  %v11181_v7 = vsel %vm743_vm10, %v7323_v0, %v7325_v5  ;;  %v8631_v54 = vpack.c.bf16 %v7442_v59, %v7441_v47  ;;  %v7426_v63 = vld [vmem:[#allocation12 + $0x8] sm:$0xff]  ;;  %v8635_v16 = vpack.c.bf16 %v7444_v15, %v7443_v27  ;;  %v6215_v20 = vld [vmem:[#allocation9 + $0xc0] sm:$0xff]  ;;  %v6304_v5 = vld [vmem:[#allocation9 + $0xf8] sm:$0xff] }
 0x695   : > { %v8633_v50 = vpack.c.bf16 %v7426_v63, %v7425_v35  ;;  %v8573_v6 = vpack.c.bf16 %v6131_v29, %v6129_v8  ;;  %v8575_v19 = vpack.c.bf16 %v6218_v22, %v6216_v24  ;;  %v8639_v40 = vpack.c.bf16 %v7446_v34, %v7445_v46  ;;  %v6217_v0 = vld [vmem:[#allocation9 + $0xd0] sm:$0xff]  ;;  %v6302_v43 = vld [vmem:[#allocation9 + $0xe8] sm:$0xff]  ;;  %v7452_v60 = vld [vmem:[#allocation12 + $0xd8] sm:$0xff] }
 0x696   : > { %8632 = vmatprep.subr.bf16.mxu0 %v8631_v54  ;;  %v8643_v52 = vpack.c.bf16 %v7448_v39, %v7447_v38  ;;  %v7450_v48 = vld [vmem:[#allocation12 + $0xc8] sm:$0xff]  ;;  %v8645_v12 = vpack.c.bf16 %v7432_v2, %v7431_v62  ;;  %v8577_v58 = vpack.c.bf16 %v6217_v0, %v6215_v20  ;;  %v7451_v36 = vld [vmem:[#allocation12 + $0xd0] sm:$0xff]  ;;  %v7436_v8 = vld [vmem:[#allocation12 + $0x58] sm:$0xff]  ;;  %vm7643_vm10 = vcmask 25600  }
 0x697   : > { %8634 = vmatpush3.bf16.msra.mxu0 %v8633_v50  ;;  %v8647_v25 = vpack.c.bf16 %v7450_v48, %v7449_v44  ;;  %v6301_v29 = vld [vmem:[#allocation9 + $0xe0] sm:$0xff]  ;;  %v6303_v47 = vld [vmem:[#allocation9 + $0xf0] sm:$0xff]  ;;  %v6387_v59 = vld [vmem:[#allocation9 + $0x108] sm:$0xff] }
 0x698   : > { %8636 = vmatprep.subr.bf16.mxu0 %v8635_v16  ;;  %v6389_v35 = vld [vmem:[#allocation9 + $0x118] sm:$0xff]  ;;  %v7453_v54 = vld [vmem:[#allocation12 + $0xe0] sm:$0xff]  ;;  %v7454_v63 = vld [vmem:[#allocation12 + $0xe8] sm:$0xff]  ;;  %v8581_v15 = vpack.c.bf16 %v6303_v47, %v6301_v29 }
 0x699   : > { %v7438_v24 = vld [vmem:[#allocation12 + $0x68] sm:$0xff]  ;;  %v8583_v50 = vpack.c.bf16 %v6389_v35, %v6387_v59  ;;  %v8655_v16 = vpack.c.bf16 %v7454_v63, %v7453_v54  ;;  %v6474_v34 = vld [vmem:[#allocation9 + $0x138] sm:$0xff]  ;;  %v6557_v39 = vld [vmem:[#allocation9 + $0x140] sm:$0xff] }
 0x69a   : > { %7972 = vmatmul.mubr.msk.f32.vlgmr.msra.gmra.mrb[46].mxu1 %vm5716_vm0, %v5869_v42  ;;  %v8637_v42 = vpack.c.bf16 %v7428_v9, %v7427_v11  ;;  %v6386_v9 = vld [vmem:[#allocation9 + $0x100] sm:$0xff]  ;;  %v6388_v22 = vld [vmem:[#allocation9 + $0x110] sm:$0xff]  ;;  %v6472_v46 = vld [vmem:[#allocation9 + $0x128] sm:$0xff] }
 0x69b   : > { %8566 = vmatpush1.bf16.msra.mxu1 %v8565_v51  ;;  %6028 = vmatprep.mubr.f32.mxu1 %v9177_v31  ;;  %v7434_v51 = vld [vmem:[#allocation12 + $0x48] sm:$0xff]  ;;  %v6643_v20 = vld [vmem:[#allocation9 + $0x160] sm:$0xff]  ;;  %v7075_v54 = vld [vmem:[#allocation9 + $0x218] sm:$0xff] }
 0x69c   : > { %8568 = vmatprep.subr.bf16.mxu1 %v8567_v17  ;;  %8638 = vmatpush3.bf16.msra.mxu0 %v8637_v42  ;;  %v8579_v17 = vpack.c.bf16 %v6304_v5, %v6302_v43  ;;  %v8585_v42 = vpack.c.bf16 %v6388_v22, %v6386_v9  ;;  %v6645_v0 = vld [vmem:[#allocation9 + $0x170] sm:$0xff]  ;;  %v6732_v43 = vld [vmem:[#allocation9 + $0x198] sm:$0xff]  ;;  %v6729_v48 = vld [vmem:[#allocation9 + $0x180] sm:$0xff] }
 0x69d   : > { %8640 = vmatprep.subr.bf16.mxu0 %v8639_v40  ;;  %v8597_v5 = vpack.c.bf16 %v6645_v0, %v6643_v20  ;;  %v6987_v59 = vld [vmem:[#allocation9 + $0x1e0] sm:$0xff]  ;;  %v6989_v35 = vld [vmem:[#allocation9 + $0x1f0] sm:$0xff]  ;;  %v7246_v22 = vld [vmem:[#allocation9 + $0x258] sm:$0xff] }
 0x69e   : > { %v8613_v63 = vpack.c.bf16 %v6989_v35, %v6987_v59  ;;  %v7159_v9 = vld [vmem:[#allocation9 + $0x230] sm:$0xff]  ;;  %v7558_v35 = vld [vmem:[%s11356_s10 + $0xc0] sm:$0xff] }
 0x69f   : > { %v7541_v59 = vld [vmem:[%s11356_s10 + $0x38] sm:$0xff] }
 0x6a2   : > { %7973 = vmatmul.mubr.msk.f32.vlgmr.msra.gmra.mrb[46].mxu1 %vm5716_vm0, %v5955_v1  ;;  %v7429_v1 = vld [vmem:[#allocation12 + $0x20] sm:$0xff] }
 0x6a3   : > { %8570 = vmatpush1.bf16.msra.mxu1 %v8569_v14  ;;  %6114 = vmatprep.mubr.f32.mxu1 %v9177_v31  ;;  %v8641_v3 = vpack.c.bf16 %v7430_v37, %v7429_v1  ;;  %v8651_v14 = vpack.c.bf16 %v7452_v60, %v7451_v36  ;;  %v6473_v1 = vld [vmem:[#allocation9 + $0x130] sm:$0xff]  ;;  %v6558_v37 = vld [vmem:[#allocation9 + $0x148] sm:$0xff]  ;;  %v6904_v36 = vld [vmem:[#allocation9 + $0x1d8] sm:$0xff] }
 0x6a4   : > { %8572 = vmatprep.subr.bf16.mxu1 %v8571_v21  ;;  %v7435_v21 = vld [vmem:[#allocation12 + $0x50] sm:$0xff] }
 0x6a5   : > { %8642 = vmatpush3.bf16.msra.mxu0 %v8641_v3  ;;  %v8653_v27 = vpack.c.bf16 %v7436_v8, %v7435_v21  ;;  %v6559_v3 = vld [vmem:[#allocation9 + $0x150] sm:$0xff]  ;;  %v6990_v8 = vld [vmem:[#allocation9 + $0x1f8] sm:$0xff] }
 0x6a6   : > { %8644 = vmatprep.subr.bf16.mxu0 %v8643_v52  ;;  %v6646_v52 = vld [vmem:[#allocation9 + $0x178] sm:$0xff]  ;;  %v8593_v62 = vpack.c.bf16 %v6559_v3, %v6557_v39  ;;  %v6903_v21 = vld [vmem:[#allocation9 + $0x1d0] sm:$0xff] }
 0x6a7   : > { %v7456_v39 = vld [vmem:[#allocation12 + $0xf8] sm:$0xff]  ;;  %v7439_v3 = vld [vmem:[#allocation12 + $0x70] sm:$0xff] }
 0x6a9   : > { %8646 = vmatpush3.bf16.msra.mxu0 %v8645_v12  ;;  %v6731_v12 = vld [vmem:[#allocation9 + $0x190] sm:$0xff] }
 0x6aa   : > { %7974 = vmatmul.mubr.msk.f32.vlgmr.msra.gmra.mrb[46].mxu1 %vm5716_vm0, %v11128_v53  ;;  %v7433_v53 = vld [vmem:[#allocation12 + $0x40] sm:$0xff]  ;;  %8648 = vmatprep.subr.bf16.mxu0 %v8647_v25  ;;  %v6817_v25 = vld [vmem:[#allocation9 + $0x1b0] sm:$0xff] }
 0x6ab   : > { %8574 = vmatpush1.bf16.msra.mxu1 %v8573_v6  ;;  %6200 = vmatprep.mubr.f32.mxu1 %v9177_v31  ;;  %v8649_v28 = vpack.c.bf16 %v7434_v51, %v7433_v53  ;;  %v8587_v6 = vpack.c.bf16 %v6474_v34, %v6472_v46  ;;  %v8601_v53 = vpack.c.bf16 %v6731_v12, %v6729_v48  ;;  %v7552_v12 = vld [vmem:[%s11356_s10 + $0x90] sm:$0xff] }
 0x6ac   : > { %8576 = vmatprep.subr.bf16.mxu1 %v8575_v19  ;;  %v6560_v19 = vld [vmem:[#allocation9 + $0x158] sm:$0xff] }
 0x6ad   : > { %8650 = vmatpush3.bf16.msra.mxu0 %v8649_v28  ;;  %v8591_v38 = vpack.c.bf16 %v6560_v19, %v6558_v37  ;;  %v7329_v19 = vld [vmem:[#allocation9 + $0x260] sm:$0xff] }
 0x6ae   : > { %8652 = vmatprep.subr.bf16.mxu0 %v8651_v14  ;;  %v6901_v14 = vld [vmem:[#allocation9 + $0x1c0] sm:$0xff] }
 0x6af   : > { %v8609_v29 = vpack.c.bf16 %v6903_v21, %v6901_v14  ;;  %v7539_v14 = vld [vmem:[%s11356_s10 + $0x28] sm:$0xff]  ;;  %v7556_v21 = vld [vmem:[%s11356_s10 + $0xb0] sm:$0xff] }
 0x6b1   : > { %8654 = vmatpush3.bf16.msra.mxu0 %v8653_v27 }
 0x6b2   : > { %7975 = vmatmul.mubr.msk.f32.vlgmr.msra.gmra.mrb[46].mxu1 %vm5716_vm0, %v11131_v45  ;;  %v7437_v45 = vld [vmem:[#allocation12 + $0x60] sm:$0xff]  ;;  %8656 = vmatprep.subr.bf16.mxu0 %v8655_v16 }
 0x6b3   : > { %8578 = vmatpush1.bf16.msra.mxu1 %v8577_v58  ;;  %6286 = vmatprep.mubr.f32.mxu1 %v9177_v31  ;;  %v8657_v11 = vpack.c.bf16 %v7438_v24, %v7437_v45  ;;  %v6818_v58 = vld [vmem:[#allocation9 + $0x1b8] sm:$0xff]  ;;  %v7074_v45 = vld [vmem:[#allocation9 + $0x210] sm:$0xff] }
 0x6b4   : > { %8580 = vmatprep.subr.bf16.mxu1 %v8579_v17  ;;  %v6815_v17 = vld [vmem:[#allocation9 + $0x1a0] sm:$0xff]  ;;  %v7160_v24 = vld [vmem:[#allocation9 + $0x238] sm:$0xff] }
 0x6b5   : > { %8658 = vmatpush3.bf16.msra.mxu0 %v8657_v11  ;;  %v8605_v60 = vpack.c.bf16 %v6817_v25, %v6815_v17  ;;  %v7157_v11 = vld [vmem:[#allocation9 + $0x220] sm:$0xff]  ;;  %v7537_v17 = vld [vmem:[%s11356_s10 + $0x18] sm:$0xff]  ;;  %v7554_v25 = vld [vmem:[%s11356_s10 + $0xa0] sm:$0xff] }
 0x6b6   : > { %v8621_v46 = vpack.c.bf16 %v7159_v9, %v7157_v11  ;;  %v7545_v11 = vld [vmem:[%s11356_s10 + $0x58] sm:$0xff]  ;;  %v7562_v9 = vld [vmem:[%s11356_s10 + $0xe0] sm:$0xff] }
 0x6ba   : > { %7976 = vmatmul.mubr.msk.f32.vlgmr.msra.gmra.mrb[46].mxu1 %vm5716_vm0, %v11134_v41  ;;  %v6471_v41 = vld [vmem:[#allocation9 + $0x120] sm:$0xff] }
 0x6bb   : > { %8582 = vmatpush1.bf16.msra.mxu1 %v8581_v15  ;;  %6372 = vmatprep.mubr.f32.mxu1 %v9177_v31  ;;  %v8589_v40 = vpack.c.bf16 %v6473_v1, %v6471_v41  ;;  %v7072_v15 = vld [vmem:[#allocation9 + $0x200] sm:$0xff]  ;;  %v7332_v41 = vld [vmem:[#allocation9 + $0x278] sm:$0xff] }
 0x6bc   : > { %8584 = vmatprep.subr.bf16.mxu1 %v8583_v50  ;;  %v8617_v50 = vpack.c.bf16 %v7074_v45, %v7072_v15  ;;  %v7543_v15 = vld [vmem:[%s11356_s10 + $0x48] sm:$0xff]  ;;  %v7560_v45 = vld [vmem:[%s11356_s10 + $0xd0] sm:$0xff] }
 0x6c2   : > { %7977 = vmatmul.mubr.msk.f32.vlgmr.msra.gmra.mrb[46].mxu1 %vm5716_vm0, %v11140_v33  ;;  %v6644_v33 = vld [vmem:[#allocation9 + $0x168] sm:$0xff] }
 0x6c3   : > { %8586 = vmatpush1.bf16.msra.mxu1 %v8585_v42  ;;  %6457 = vmatprep.mubr.f32.mxu1 %v9177_v31  ;;  %v8595_v2 = vpack.c.bf16 %v6646_v52, %v6644_v33  ;;  %v7243_v42 = vld [vmem:[#allocation9 + $0x240] sm:$0xff] }
 0x6c4   : > { %8588 = vmatprep.subr.bf16.mxu1 %v8587_v6  ;;  %v7245_v6 = vld [vmem:[#allocation9 + $0x250] sm:$0xff]  ;;  %v7440_v33 = vld [vmem:[#allocation12 + $0x78] sm:$0xff] }
 0x6c5   : > { %v8625_v1 = vpack.c.bf16 %v7245_v6, %v7243_v42  ;;  %v8661_v52 = vpack.c.bf16 %v7440_v33, %v7439_v3  ;;  %v7547_v42 = vld [vmem:[%s11356_s10 + $0x68] sm:$0xff]  ;;  %v7564_v6 = vld [vmem:[%s11356_s10 + $0xf0] sm:$0xff] }
 0x6ca   : > { %7978 = vmatmul.mubr.msk.f32.vlgmr.msra.gmra.mrb[46].mxu1 %vm5716_vm0, %v11144_v4  ;;  %v6730_v4 = vld [vmem:[#allocation9 + $0x188] sm:$0xff] }
 0x6cb   : > { %8590 = vmatpush1.bf16.msra.mxu1 %v8589_v40  ;;  %6542 = vmatprep.mubr.f32.mxu1 %v9177_v31  ;;  %v8599_v44 = vpack.c.bf16 %v6732_v43, %v6730_v4  ;;  %v7331_v40 = vld [vmem:[#allocation9 + $0x270] sm:$0xff] }
 0x6cc   : > { %8592 = vmatprep.subr.bf16.mxu1 %v8591_v38  ;;  %v7455_v38 = vld [vmem:[#allocation12 + $0xf0] sm:$0xff] }
 0x6d2   : > { %7979 = vmatmul.mubr.msk.f32.vlgmr.msra.gmra.mrb[46].mxu1 %vm5716_vm0, %v11137_v26  ;;  %v6816_v26 = vld [vmem:[#allocation9 + $0x1a8] sm:$0xff] }
 0x6d3   : > { %8594 = vmatpush1.bf16.msra.mxu1 %v8593_v62  ;;  %6628 = vmatprep.mubr.f32.mxu1 %v9177_v31  ;;  %v8603_v51 = vpack.c.bf16 %v6818_v58, %v6816_v26  ;;  %v7550_v62 = vld [vmem:[%s11356_s10 + $0x80] sm:$0xff] }
 0x6d4   : > { %8596 = vmatprep.subr.bf16.mxu1 %v8595_v2 }
 0x6da   : > { %7980 = vmatmul.mubr.msk.f32.vlgmr.msra.gmra.mrb[46].mxu1 %vm5716_vm0, %v11147_v61  ;;  %v6902_v61 = vld [vmem:[#allocation9 + $0x1c8] sm:$0xff] }
 0x6db   : > { %8598 = vmatpush1.bf16.msra.mxu1 %v8597_v5  ;;  %6714 = vmatprep.mubr.f32.mxu1 %v9177_v31  ;;  %v8607_v28 = vpack.c.bf16 %v6904_v36, %v6902_v61  ;;  %v7534_v5 = vld [vmem:[%s11356_s10] sm:$0xff]  ;;  %v7555_v61 = vld [vmem:[%s11356_s10 + $0xa8] sm:$0xff] }
 0x6dc   : > { %8600 = vmatprep.subr.bf16.mxu1 %v8599_v44  ;;  %v7535_v44 = vld [vmem:[%s11356_s10 + $0x8] sm:$0xff] }
 0x6dd   : > { %v8665_v26 = vpack.c.bf16 %v7535_v44, %v7534_v5 }
 0x6e2   : > { %7981 = vmatmul.mubr.msk.f32.vlgmr.msra.gmra.mrb[46].mxu1 %vm5716_vm0, %v11150_v57  ;;  %v6988_v57 = vld [vmem:[#allocation9 + $0x1e8] sm:$0xff] }
 0x6e3   : > { %8602 = vmatpush1.bf16.msra.mxu1 %v8601_v53  ;;  %6800 = vmatprep.mubr.f32.mxu1 %v9177_v31  ;;  %v8611_v47 = vpack.c.bf16 %v6990_v8, %v6988_v57  ;;  %v7557_v57 = vld [vmem:[%s11356_s10 + $0xb8] sm:$0xff] }
 0x6e4   : > { %8604 = vmatprep.subr.bf16.mxu1 %v8603_v51  ;;  %v7536_v51 = vld [vmem:[%s11356_s10 + $0x10] sm:$0xff] }
 0x6e5   : > { %v8669_v36 = vpack.c.bf16 %v7537_v17, %v7536_v51 }
 0x6ea   : > { %7982 = vmatmul.mubr.msk.f32.vlgmr.msra.gmra.mrb[46].mxu1 %vm5716_vm0, %v11153_v32  ;;  %v7073_v32 = vld [vmem:[#allocation9 + $0x208] sm:$0xff] }
 0x6eb   : > { %8606 = vmatpush1.bf16.msra.mxu1 %v8605_v60  ;;  %6886 = vmatprep.mubr.f32.mxu1 %v9177_v31  ;;  %v8615_v27 = vpack.c.bf16 %v7075_v54, %v7073_v32  ;;  %v8671_v60 = vpack.c.bf16 %v7555_v61, %v7554_v25  ;;  %v7559_v32 = vld [vmem:[%s11356_s10 + $0xc8] sm:$0xff] }
 0x6ec   : > { %8608 = vmatprep.subr.bf16.mxu1 %v8607_v28  ;;  %v7538_v28 = vld [vmem:[%s11356_s10 + $0x20] sm:$0xff] }
 0x6ed   : > { %v8673_v8 = vpack.c.bf16 %v7539_v14, %v7538_v28 }
 0x6f2   : > { %7983 = vmatmul.mubr.msk.f32.vlgmr.msra.gmra.mrb[46].mxu1 %vm5716_vm0, %v11156_v13  ;;  %v7158_v13 = vld [vmem:[#allocation9 + $0x228] sm:$0xff] }
 0x6f3   : > { %8610 = vmatpush1.bf16.msra.mxu1 %v8609_v29  ;;  %6972 = vmatprep.mubr.f32.mxu1 %v9177_v31  ;;  %v8619_v16 = vpack.c.bf16 %v7160_v24, %v7158_v13  ;;  %v8675_v29 = vpack.c.bf16 %v7557_v57, %v7556_v21  ;;  %v7561_v13 = vld [vmem:[%s11356_s10 + $0xd8] sm:$0xff] }
 0x6f4   : > { %8612 = vmatprep.subr.bf16.mxu1 %v8611_v47  ;;  %v7540_v47 = vld [vmem:[%s11356_s10 + $0x30] sm:$0xff] }
 0x6f5   : > { %v8677_v54 = vpack.c.bf16 %v7541_v59, %v7540_v47 }
 0x6fa   : > { %7984 = vmatmul.mubr.msk.f32.vlgmr.msra.gmra.mrb[46].mxu1 %vm5716_vm0, %v11159_v49  ;;  %v7244_v49 = vld [vmem:[#allocation9 + $0x248] sm:$0xff] }
 0x6fb   : > { %8614 = vmatpush1.bf16.msra.mxu1 %v8613_v63  ;;  %7058 = vmatprep.mubr.f32.mxu1 %v9177_v31  ;;  %v8623_v34 = vpack.c.bf16 %v7246_v22, %v7244_v49  ;;  %v8679_v63 = vpack.c.bf16 %v7559_v32, %v7558_v35  ;;  %v7563_v49 = vld [vmem:[%s11356_s10 + $0xe8] sm:$0xff] }
 0x6fc   : > { %8616 = vmatprep.subr.bf16.mxu1 %v8615_v27  ;;  %v7542_v27 = vld [vmem:[%s11356_s10 + $0x40] sm:$0xff] }
 0x6fd   : > { %v8681_v24 = vpack.c.bf16 %v7543_v15, %v7542_v27 }
 0x702   : > { %7985 = vmatmul.mubr.msk.f32.vlgmr.msra.gmra.mrb[46].mxu1 %vm5716_vm0, %v11162_v18  ;;  %v7330_v18 = vld [vmem:[#allocation9 + $0x268] sm:$0xff] }
 0x703   : > { %8618 = vmatpush1.bf16.msra.mxu1 %v8617_v50  ;;  %7143 = vmatprep.mubr.f32.mxu1 %v9177_v31  ;;  %v8627_v37 = vpack.c.bf16 %v7332_v41, %v7330_v18  ;;  %v8683_v50 = vpack.c.bf16 %v7561_v13, %v7560_v45  ;;  %v7565_v18 = vld [vmem:[%s11356_s10 + $0xf8] sm:$0xff] }
 0x704   : > { %8620 = vmatprep.subr.bf16.mxu1 %v8619_v16  ;;  %v7544_v16 = vld [vmem:[%s11356_s10 + $0x50] sm:$0xff] }
 0x705   : > { %v8685_v22 = vpack.c.bf16 %v7545_v11, %v7544_v16 }
 0x70a   : > { %7986 = vmatmul.mubr.msk.f32.vlgmr.msra.gmra.mrb[46].mxu1 %vm5716_vm0, %v11169_v56  ;;  %v8629_v56 = vpack.c.bf16 %v7331_v40, %v7329_v19  ;;  %v7549_v19 = vld [vmem:[%s11356_s10 + $0x78] sm:$0xff] }
 0x70b   : > { %8622 = vmatpush1.bf16.msra.mxu1 %v8621_v46  ;;  %7228 = vmatprep.mubr.f32.mxu1 %v9177_v31  ;;  %v8687_v46 = vpack.c.bf16 %v7563_v49, %v7562_v9 }
 0x70c   : > { %8624 = vmatprep.subr.bf16.mxu1 %v8623_v34  ;;  %v7546_v34 = vld [vmem:[%s11356_s10 + $0x60] sm:$0xff] }
 0x70d   : > { %v8689_v41 = vpack.c.bf16 %v7547_v42, %v7546_v34 }
 0x712   : > { %7987 = vmatmul.mubr.msk.f32.vlgmr.msra.gmra.mrb[46].mxu1 %vm5716_vm0, %v11174_v55  ;;  %v8659_v55 = vpack.c.bf16 %v7456_v39, %v7455_v38  ;;  %v7990_v38 = vld [vmem:[#allocation13] ss:$0 sm:$0xff] }
 0x713   : > { %8626 = vmatpush1.bf16.msra.mxu1 %v8625_v1  ;;  %7314 = vmatprep.mubr.f32.mxu1 %v9177_v31  ;;  %v8691_v1 = vpack.c.bf16 %v7565_v18, %v7564_v6 }
 0x714   : > { %8628 = vmatprep.subr.bf16.mxu1 %v8627_v37  ;;  %8660 = vmatprep.subr.bf16.mxu0 %v8659_v55  ;;  %v7548_v37 = vld [vmem:[%s11356_s10 + $0x70] sm:$0xff] }
 0x715   : > { %8662 = vmatpush3.bf16.msra.mxu0 %v8661_v52  ;;  %v8693_v40 = vpack.c.bf16 %v7549_v19, %v7548_v37 }
 0x71a   : > { %7988 = vmatmul.mubr.msk.f32.vlgmr.msra.gmra.mrb[46].mxu1 %vm5716_vm0, %v11178_v10  ;;  %v7551_v10 = vld [vmem:[%s11356_s10 + $0x88] sm:$0xff] }
 0x71b   : > { %8630 = vmatpush1.bf16.msra.mxu1 %v8629_v56  ;;  %7400 = vmatprep.mubr.f32.mxu1 %v9177_v31  ;;  %v8663_v2 = vpack.c.bf16 %v7551_v10, %v7550_v62  ;;  %v7409_v31 = vld [vmem:[#allocation10] sm:$0x3]  ;;  %v7991_v62 = vld [vmem:[%s11384_s30] ss:$0 sm:$0xff] }
 0x71c   : > { %v7418_v20 = vrot.slane %v7409_v31, %v9750_v30 }
 0x71d   : > { %8664 = vmatprep.subr.bf16.mxu0 %v8663_v2 }
 0x722   : > { %7989 = vmatmul.mubr.msk.f32.vlgmr.msra.gmra.mrb[46].mxu1 %vm5716_vm0, %v11181_v7  ;;  %v7414_v7 = vrot.slane %v7409_v31, %v9744_v23  ;;  %v7553_v23 = vld [vmem:[%s11356_s10 + $0x98] sm:$0xff] }
 0x723   : > { %v8667_v53 = vpack.c.bf16 %v7553_v23, %v7552_v12 }
 0x7f5   : > { %v7402_v0 = vpop.f32.mrb[46].mxu1 }
 0x7f6   : > { %v11242_v4 = vadd.f32 %v7414_v7, %v7402_v0  ;;  %v7404_v43 = vpop.f32.mrb[47].mxu1 }
 0x7f7   : > { %v7422_v48 = vadd.f32 %v7418_v20, %v7404_v43 }
 0x7f8   : > { %v7423_v58 = vmax.f32 %v11242_v4, 0.0 }
 0x7f9   : > { %v7424_v30 = vmax.f32 %v7422_v48, 0.0 }
 0x7fb   : > { %7528 = vmatprep.mubr.f32.mxu0 %v7424_v30 }
 0x7fc   : > { %7529 = vmatmul.mubr.f32.vlgmr.msra.gmra.mrb[50].mxu0 %v7423_v58 }
 0x7fd   : > { %8666 = vmatpush3.bf16.msra.mxu0 %v8665_v26  ;;  %7637 = vmatprep.mubr.f32.mxu0 %v7424_v30 }
 0x7fe   : > { %8668 = vmatprep.subr.bf16.mxu0 %v8667_v53 }
 0x801   : > { %8670 = vmatpush3.bf16.msra.mxu0 %v8669_v36 }
 0x802   : > { %8672 = vmatprep.subr.bf16.mxu0 %v8671_v60 }
 0x805   : > { %8674 = vmatpush3.bf16.msra.mxu0 %v8673_v8 }
 0x806   : > { %8676 = vmatprep.subr.bf16.mxu0 %v8675_v29 }
 0x809   : > { %8678 = vmatpush3.bf16.msra.mxu0 %v8677_v54 }
 0x80a   : > { %8680 = vmatprep.subr.bf16.mxu0 %v8679_v63 }
 0x80d   : > { %8682 = vmatpush3.bf16.msra.mxu0 %v8681_v24 }
 0x80e   : > { %8684 = vmatprep.subr.bf16.mxu0 %v8683_v50 }
 0x811   : > { %8686 = vmatpush3.bf16.msra.mxu0 %v8685_v22 }
 0x812   : > { %8688 = vmatprep.subr.bf16.mxu0 %v8687_v46 }
 0x815   : > { %8690 = vmatpush3.bf16.msra.mxu0 %v8689_v41 }
 0x816   : > { %8692 = vmatprep.subr.bf16.mxu0 %v8691_v1 }
 0x819   : > { %8694 = vmatpush3.bf16.msra.mxu0 %v8693_v40 }
 0x81c   : > { %7638 = vmatmul.mubr.f32.vlgmr.msra.gmra.mrb[52].mxu0 %v7423_v58 }
 0x8cf   : > { %v8187_v56 = vpop.f32.mrb[50].mxu0 }
 0x8d0   : > { %v8188_v39 = vpop.f32.mrb[51].mxu0 }
 0x8d1   : > { %v8189_v3 = vadd.f32 %v8188_v39, %v8187_v56 }
 0x8d3   : > { %v7531_v55 = vadd.f32 %v8189_v3, %v7990_v38 }
 0x8d5   : > { %7656 = vst.msk [vmem:[%s525_s26] sm:$0x3] %vm7643_vm10, %v7531_v55 }
 0x8ef   : > { %v8222_v33 = vpop.f32.mrb[52].mxu0 }
 0x8f0   : > { %v8223_v52 = vpop.f32.mrb[53].mxu0 }
 0x8f1   : > { %v8224_v10 = vadd.f32 %v8223_v52, %v8222_v33 }
 0x8f3   : > { %v7640_v2 = vadd.f32 %v8224_v10, %v7991_v62 }
 0x8f5   : > { %v7644_v31 = vsel %vm7643_vm10, %v7640_v2, -inf }
 0x8f6   : > { %7645 = vmax.xlane.f32.xlu0 %v7644_v31 }
 0x983   : > { %v7646_v7 = vpop.xlane.xlu0 %7645 }
 0x984   : > { %v7647_v20 = vsub.f32 %v7640_v2, %v7646_v7 }
 0x986   : > { %v7648_v0 = vmul.f32 1.442695, %v7647_v20 }
 0x988   : > { %8899 = vpow2.f32 %v7648_v0 }
 0x992   : > { %v8900_v4 = vpop.eup %8899 }
 0x993   : > { %v7650_v43 = vsel %vm7643_vm10, %v8900_v4, 0.0 }
 0x994   : > { %7651 = vadd.xlane.f32.xlu1 %v7650_v43 }
 0xa21   : > { %v7652_v5 = vpop.xlane.xlu1 %7651 }
 0xa22   : > { %8901 = vlog2.f32 %v7652_v5 }
 0xa2c   : > { %v8902_v44 = vpop.eup %8901 }
 0xa2d   : > { %v7654_v48 = vmul.f32 0.6931472, %v8902_v44 }
 0xa2f   : > { %v7655_v12 = vsub.f32 %v7647_v20, %v7654_v48 }
 0xa31   : > { %7658 = vrot.lane.b32.xlu0 %v7655_v12, %s9180_s22 }
 0xaa3   : > { %v7659_v23 = vpop.permute.xlu0 %7658 }
 0xaa4   : > { %7662 = vst.msk [vmem:[%s525_s26] sm:$0x3] %vm7661_vm11, %v7659_v23 }
 0xaa5 PF: > { %s11385_s16 = sld [smem:[#allocation20_spill]] }
 0xaab   : > { %s27_s21 = sadd.s32 1, %s11385_s16  }
 0xaac   : > { %p24_p12 = scmp.ge.s32.totalorder %s27_s21, 4  }
 0xaae   :  { %26 = sbr.rel (!%p24_p12) target bundleno = 8 (0x8), region = 159 }
 0xab5   :  { %7682 = vsyncpa [#allocation3], 1 }
 0xab6   :  { %7684 = vsyncpa [#allocation3 + $0x1], 1 }
 0xab7   :  { %7685 = vsyncpa [#allocation5], 1 }
 0xab8   :  { %7686 = vsyncpa [#allocation8], 1 }
 0xab9   :  { %7687 = vsyncpa [#allocation11], 1 }
 0xaba   :  { %7688 = vsyncpa [#allocation14], 1 }

</bundles_post_ra>
